<compile_context>
chip_gen: v6e
topology: v6e:2x2x1
jax: 0.10.0
libtpu: 0.0.40
codegen_flags: <defaults>
</compile_context>

<pallas_src>
import functools
import math

import jax
import jax.numpy as jnp
from jax.experimental import pallas as pl
from jax.experimental.pallas import tpu as pltpu


# ----------------------------- static model config -----------------------------

class CFG:
    # text tower
    D = 32            # text transformer width (ctx_dim)
    text_heads = 2
    text_layers = 2
    n_cls = 3         # len(classnames[2])
    n_ctx = 4
    ctx_len = 16      # prompt length L = 1 prefix + 4 ctx + 11 suffix
    # vision tower
    DV = 32
    vis_heads = 2
    vis_layers = 2
    cin = 3
    patch = 8
    img = 16
    # joint embedding
    E = 32


_LAYER_KEYS = ("ln1_g", "ln1_b", "qkv_w", "qkv_b", "proj_w", "proj_b",
               "ln2_g", "ln2_b", "fc_w", "fc_b", "fc2_w", "fc2_b")


# ----------------------------- in-kernel helpers (traced) -----------------------------

def _ln(x, g, b, eps=1e-5):
    """Row-wise LayerNorm with (1, D) affine params."""
    mu = jnp.mean(x, axis=-1, keepdims=True)
    var = jnp.mean(jnp.square(x - mu), axis=-1, keepdims=True)
    return (x - mu) * jax.lax.rsqrt(var + eps) * g + b


def _transformer_stack(x, layers, *, batch, seq, n_heads, n_layers, causal):
    """Pre-LN CLIP residual attention blocks on a VMEM-resident (batch*seq, D)
    activation.  Batch is folded into a single (BT, BT) score matmul with a
    block-diagonal (+causal) additive mask; heads are statically unrolled and
    out-projected per head-slice (no reshape / transpose / concat in-kernel)."""
    (g1, b1, wqkv, bqkv, wproj, bproj, g2, b2, wfc, bfc, wfc2, bfc2) = layers
    BT = batch * seq
    D = x.shape[-1]
    dh = D // n_heads
    scale = 1.0 / math.sqrt(dh)
    neg = jnp.float32(-1e9)

    # Additive attention mask, built once (hoisted out of the layer/head loops).
    # Block-diagonal over batch; float-floor avoids vector integer div/mod.
    r = jax.lax.broadcasted_iota(jnp.int32, (BT, BT), 0)
    c = jax.lax.broadcasted_iota(jnp.int32, (BT, BT), 1)
    inv_seq = jnp.float32(1.0 / seq)
    rb = jnp.floor(r.astype(jnp.float32) * inv_seq)
    cb = jnp.floor(c.astype(jnp.float32) * inv_seq)
    mask = jnp.where(rb == cb, jnp.float32(0.0), neg)
    if causal:
        mask = mask + jnp.where(c > r, neg, jnp.float32(0.0))

    for l in range(n_layers):
        # ---- multi-head self-attention ----
        y = _ln(x, g1[l], b1[l])
        qkv = jnp.dot(y, wqkv[l], preferred_element_type=jnp.float32) + bqkv[l]
        wo = wproj[l]
        attn = None
        for h in range(n_heads):
            q = qkv[:, h * dh:(h + 1) * dh]
            k = qkv[:, D + h * dh:D + (h + 1) * dh]
            v = qkv[:, 2 * D + h * dh:2 * D + (h + 1) * dh]
            s = jax.lax.dot_general(q, k, (((1,), (1,)), ((), ())),
                                    preferred_element_type=jnp.float32)
            s = s * scale + mask
            s = s - jnp.max(s, axis=-1, keepdims=True)
            p = jnp.exp(s)
            p = p * pl.reciprocal(jnp.sum(p, axis=-1, keepdims=True), approx=True)
            o_h = jnp.dot(p, v, preferred_element_type=jnp.float32)
            # out-projection applied to this head's weight rows and accumulated
            o_h = jnp.dot(o_h, wo[h * dh:(h + 1) * dh, :],
                          preferred_element_type=jnp.float32)
            attn = o_h if attn is None else attn + o_h
        x = x + attn + bproj[l]
        # ---- MLP with QuickGELU: x * sigmoid(1.702 x) ----
        y = _ln(x, g2[l], b2[l])
        hdn = jnp.dot(y, wfc[l], preferred_element_type=jnp.float32) + bfc[l]
        hdn = hdn * (1.0 / (1.0 + jnp.exp(-1.702 * hdn)))
        x = x + jnp.dot(hdn, wfc2[l], preferred_element_type=jnp.float32) + bfc2[l]
    return x


# ----------------------------- fused Pallas kernels -----------------------------

def _vit_kernel(patches_ref, conv_w_ref, tok_ref, lnpre_g, lnpre_b,
                g1, b1, wqkv, bqkv, wproj, bproj, g2, b2, wfc, bfc, wfc2, bfc2,
                lnpost_g, lnpost_b, vproj_ref, out_ref,
                *, B, T, n_heads, n_layers):
    """Whole CLIP ViT image encoder in one kernel invocation."""
    BT = B * T
    # Patch embedding (Conv2d as a bias-free matmul). Class-token rows of
    # `patches` are zero; `tok_ref` already holds class_embedding + positional
    # embedding per token row, so one add covers both.
    x = jnp.dot(patches_ref[...], conv_w_ref[...], preferred_element_type=jnp.float32)
    x = x + tok_ref[...]
    x = _ln(x, lnpre_g[...], lnpre_b[...])
    x = _transformer_stack(
        x, (g1, b1, wqkv, bqkv, wproj, bproj, g2, b2, wfc, bfc, wfc2, bfc2),
        batch=B, seq=T, n_heads=n_heads, n_layers=n_layers, causal=False)
    # Select the class-token row of each image (rows 0, T, 2T, ...) with a
    # one-hot matmul (keeps everything 2-D, no strided sublane gather).
    rr = jax.lax.broadcasted_iota(jnp.int32, (B, BT), 0)
    cc = jax.lax.broadcasted_iota(jnp.int32, (B, BT), 1)
    sel = jnp.where(cc == rr * T, jnp.float32(1.0), jnp.float32(0.0))
    cls = jnp.dot(sel, x, preferred_element_type=jnp.float32)
    cls = _ln(cls, lnpost_g[...], lnpost_b[...])
    out_ref[...] = jnp.dot(cls, vproj_ref[...],
                           preferred_element_type=jnp.float32).astype(out_ref.dtype)


def _text_kernel(x0_ref, eot_sel_ref,
                 g1, b1, wqkv, bqkv, wproj, bproj, g2, b2, wfc, bfc, wfc2, bfc2,
                 lnf_g, lnf_b, tproj_ref, out_ref,
                 *, C, L, n_heads, n_layers):
    """Whole CLIP text encoder (causal transformer + EOT gather + proj)."""
    x = _transformer_stack(
        x0_ref[...],
        (g1, b1, wqkv, bqkv, wproj, bproj, g2, b2, wfc, bfc, wfc2, bfc2),
        batch=C, seq=L, n_heads=n_heads, n_layers=n_layers, causal=True)
    x = _ln(x, lnf_g[...], lnf_b[...])
    # EOT-token gather as a one-hot matmul (eot_sel is (C, C*L)).
    eot = jnp.dot(eot_sel_ref[...], x, preferred_element_type=jnp.float32)
    out_ref[...] = jnp.dot(eot, tproj_ref[...],
                           preferred_element_type=jnp.float32).astype(out_ref.dtype)


def _logits_kernel(img_ref, txt_ref, scale_ref, o_ref):
    img = img_ref[...]
    txt = txt_ref[...]
    # L2-normalize each feature row, as in the PyTorch forward.
    img = img * jax.lax.rsqrt(jnp.sum(img * img, axis=-1, keepdims=True))
    txt = txt * jax.lax.rsqrt(jnp.sum(txt * txt, axis=-1, keepdims=True))
    ls = jnp.exp(scale_ref[0, 0])                 # logit_scale.exp()
    logits = jax.lax.dot_general(img, txt, (((1,), (1,)), ((), ())),
                                 preferred_element_type=jnp.float32)
    o_ref[...] = (ls * logits).astype(o_ref.dtype)


# ----------------------------- pallas_call wrappers -----------------------------

def _full_spec(shape):
    return pl.BlockSpec(shape, lambda i, _n=len(shape): (0,) * _n)


def encode_image(patches, tok, p, *, B, T):
    lyr = p["vis_blocks"]
    args = [patches, p["conv_w"], tok, p["ln_pre_g"], p["ln_pre_b"],
            *[lyr[k] for k in _LAYER_KEYS],
            p["ln_post_g"], p["ln_post_b"], p["vis_proj"]]
    kern = functools.partial(_vit_kernel, B=B, T=T,
                             n_heads=CFG.vis_heads, n_layers=CFG.vis_layers)
    return pl.pallas_call(
        kern,
        out_shape=jax.ShapeDtypeStruct((B, CFG.E), jnp.float32),
        grid=(1,),
        in_specs=[_full_spec(a.shape) for a in args],
        out_specs=_full_spec((B, CFG.E)),
    )(*args)


def encode_text(x0, eot_sel, p):
    lyr = p["text_blocks"]
    args = [x0, eot_sel, *[lyr[k] for k in _LAYER_KEYS],
            p["ln_final_g"], p["ln_final_b"], p["text_proj"]]
    kern = functools.partial(_text_kernel, C=CFG.n_cls, L=CFG.ctx_len,
                             n_heads=CFG.text_heads, n_layers=CFG.text_layers)
    return pl.pallas_call(
        kern,
        out_shape=jax.ShapeDtypeStruct((CFG.n_cls, CFG.E), jnp.float32),
        grid=(1,),
        in_specs=[_full_spec(a.shape) for a in args],
        out_specs=_full_spec((CFG.n_cls, CFG.E)),
    )(*args)


def clip_logits(img_feat, txt_feat, logit_scale):
    B, E = img_feat.shape
    C = txt_feat.shape[0]
    return pl.pallas_call(
        _logits_kernel,
        out_shape=jax.ShapeDtypeStruct((B, C), jnp.float32),
        grid=(1,),
        in_specs=[_full_spec((B, E)), _full_spec((C, E)),
                  pl.BlockSpec(memory_space=pltpu.MemorySpace.SMEM)],
        out_specs=_full_spec((B, C)),
    )(img_feat, txt_feat, logit_scale.reshape(1, 1).astype(jnp.float32))


# ----------------------------- model forward (thin glue) -----------------------------

def custom_clip_forward(image, p):
    B = image.shape[0]
    ps = CFG.patch
    gh = CFG.img // ps
    P = gh * gh
    T = P + 1
    K = CFG.cin * ps * ps
    DV = CFG.DV

    # --- image tower glue: patchify + (cls + pos) token prep; all compute in-kernel ---
    patches = (image.reshape(B, CFG.cin, gh, ps, gh, ps)
               .transpose(0, 2, 4, 1, 3, 5)
               .reshape(B, P, K))
    # prepend a zero "patch" per image for the class-token slot
    patches = jnp.concatenate([jnp.zeros((B, 1, K), jnp.float32), patches],
                              axis=1).reshape(B * T, K)
    # per-token additive term: class embedding at token 0 + positional embedding
    tok = jnp.tile(
        jnp.concatenate([p["class_emb"][None, :],
                         jnp.zeros((P, DV), jnp.float32)], axis=0) + p["vis_pos"],
        (B, 1))                                                    # (B*T, DV)
    image_features = encode_image(patches, tok, p, B=B, T=T)       # (B, E)

    # --- PromptLearner_ori('end') + TextEncoder glue ---
    C, L, D = CFG.n_cls, CFG.ctx_len, CFG.D
    ctx = jnp.broadcast_to(p["ctx"][None], (C, CFG.n_ctx, D))
    prompts = jnp.concatenate([p["token_prefix"], ctx, p["token_suffix"]], axis=1)
    x0 = (prompts + p["text_pos"][None]).reshape(C * L, D)
    eot = jnp.argmax(p["tokenized_prompts"], axis=-1)              # EOT position per class
    eot_sel = jax.nn.one_hot(jnp.arange(C) * L + eot, C * L, dtype=jnp.float32)
    text_features2 = encode_text(x0, eot_sel, p)                   # (C, E)

    # normalization, logit_scale.exp() and the feature matmul fused in one kernel
    return clip_logits(image_features, text_features2, p["logit_scale"])  # (B, C)


# ----------------------------- deterministic init -----------------------------

def _normal(key, shape, std=0.02):
    return jax.random.normal(key, shape, jnp.float32) * std


def init_blocks(key, D, n_layers):
    """Per-layer transformer weights stacked along a leading layer axis."""
    ks = jax.random.split(key, 4 * n_layers)
    return dict(
        ln1_g=jnp.ones((n_layers, 1, D), jnp.float32),
        ln1_b=jnp.zeros((n_layers, 1, D), jnp.float32),
        qkv_w=jnp.stack([_normal(ks[4 * l + 0], (D, 3 * D)) for l in range(n_layers)]),
        qkv_b=jnp.zeros((n_layers, 1, 3 * D), jnp.float32),
        proj_w=jnp.stack([_normal(ks[4 * l + 1], (D, D)) for l in range(n_layers)]),
        proj_b=jnp.zeros((n_layers, 1, D), jnp.float32),
        ln2_g=jnp.ones((n_layers, 1, D), jnp.float32),
        ln2_b=jnp.zeros((n_layers, 1, D), jnp.float32),
        fc_w=jnp.stack([_normal(ks[4 * l + 2], (D, 4 * D)) for l in range(n_layers)]),
        fc_b=jnp.zeros((n_layers, 1, 4 * D), jnp.float32),
        fc2_w=jnp.stack([_normal(ks[4 * l + 3], (4 * D, D)) for l in range(n_layers)]),
        fc2_b=jnp.zeros((n_layers, 1, D), jnp.float32),
    )


def init_params(key):
    D, DV = CFG.D, CFG.DV
    C, n_ctx, L = CFG.n_cls, CFG.n_ctx, CFG.ctx_len
    ps = CFG.patch
    P = (CFG.img // ps) ** 2
    T = P + 1
    keys = iter(jax.random.split(key, 16))
    p = {}
    # vision tower
    p["conv_w"] = _normal(next(keys), (CFG.cin * ps * ps, DV))
    p["class_emb"] = _normal(next(keys), (DV,))
    p["vis_pos"] = _normal(next(keys), (T, DV), 0.01)
    p["ln_pre_g"] = jnp.ones((1, DV), jnp.float32)
    p["ln_pre_b"] = jnp.zeros((1, DV), jnp.float32)
    p["ln_post_g"] = jnp.ones((1, DV), jnp.float32)
    p["ln_post_b"] = jnp.zeros((1, DV), jnp.float32)
    p["vis_proj"] = _normal(next(keys), (DV, CFG.E))
    p["vis_blocks"] = init_blocks(next(keys), DV, CFG.vis_layers)
    # prompt learner (synthetic embeddings) + text tower
    # TODO(synk): the real _Tokenizer / clip.tokenize + token_embedding lookup has no
    # Pallas equivalent here; prefix/suffix embeddings and token ids are synthesized.
    p["ctx"] = _normal(next(keys), (n_ctx, D))
    p["token_prefix"] = _normal(next(keys), (C, 1, D))
    p["token_suffix"] = _normal(next(keys), (C, L - 1 - n_ctx, D))
    p["text_pos"] = _normal(next(keys), (L, D), 0.01)
    p["ln_final_g"] = jnp.ones((1, D), jnp.float32)
    p["ln_final_b"] = jnp.zeros((1, D), jnp.float32)
    p["text_proj"] = _normal(next(keys), (D, CFG.E))
    p["text_blocks"] = init_blocks(next(keys), D, CFG.text_layers)
    # tokenized_prompts: EOT token id (49407) is the max, so argmax(-1) is its position.
    tok = jnp.tile(jnp.arange(L, dtype=jnp.int32) % 7, (C, 1))
    eot_idx = jnp.array([6, 7, 8], dtype=jnp.int32)      # 1 + n_ctx + name_len
    tok = tok.at[jnp.arange(C), eot_idx].set(49407)
    p["tokenized_prompts"] = tok
    p["logit_scale"] = jnp.array(math.log(1.0 / 0.07), jnp.float32)
    return p


if __name__ == "__main__":
    key = jax.random.PRNGKey(0)
    kparams, kimg = jax.random.split(key)
    params = init_params(kparams)
    image = jax.random.normal(kimg, (2, CFG.cin, CFG.img, CFG.img), jnp.float32)  # NCHW

    fwd = jax.jit(custom_clip_forward)
    logits2 = jax.block_until_ready(fwd(image, params))
    assert logits2.shape == (2, CFG.n_cls) and logits2.dtype == jnp.float32
    assert bool(jnp.all(jnp.isfinite(logits2)))
    print("KERNEL_OK")
</pallas_src>

<mosaic_0001>
module attributes {stable_mosaic.version = 11 : i64} {
  func.func @_text_kernel(%arg0: i32, %arg1: memref<48x32xf32, #tpu.memory_space<vmem>>, %arg2: memref<3x48xf32, #tpu.memory_space<vmem>>, %arg3: memref<2x1x32xf32, #tpu.memory_space<vmem>>, %arg4: memref<2x1x32xf32, #tpu.memory_space<vmem>>, %arg5: memref<2x32x96xf32, #tpu.memory_space<vmem>>, %arg6: memref<2x1x96xf32, #tpu.memory_space<vmem>>, %arg7: memref<2x32x32xf32, #tpu.memory_space<vmem>>, %arg8: memref<2x1x32xf32, #tpu.memory_space<vmem>>, %arg9: memref<2x1x32xf32, #tpu.memory_space<vmem>>, %arg10: memref<2x1x32xf32, #tpu.memory_space<vmem>>, %arg11: memref<2x32x128xf32, #tpu.memory_space<vmem>>, %arg12: memref<2x1x128xf32, #tpu.memory_space<vmem>>, %arg13: memref<2x128x32xf32, #tpu.memory_space<vmem>>, %arg14: memref<2x1x32xf32, #tpu.memory_space<vmem>>, %arg15: memref<1x32xf32, #tpu.memory_space<vmem>>, %arg16: memref<1x32xf32, #tpu.memory_space<vmem>>, %arg17: memref<32x32xf32, #tpu.memory_space<vmem>>, %arg18: memref<3x32xf32, #tpu.memory_space<vmem>>) attributes {dimension_semantics = [#tpu.dimension_semantics<arbitrary>], iteration_bounds = array<i64: 1>, scalar_prefetch = 0 : i64, scratch_operands = 0 : i64, tpu.core_type = #tpu.core_type<tc>, window_params = [{pipeline_mode = #tpu.pipeline_mode<synchronous>, transform_indices = @transform_0, window_bounds = array<i64: 48, 32>}, {pipeline_mode = #tpu.pipeline_mode<synchronous>, transform_indices = @transform_1, window_bounds = array<i64: 3, 48>}, {pipeline_mode = #tpu.pipeline_mode<synchronous>, transform_indices = @transform_2, window_bounds = array<i64: 2, 1, 32>}, {pipeline_mode = #tpu.pipeline_mode<synchronous>, transform_indices = @transform_3, window_bounds = array<i64: 2, 1, 32>}, {pipeline_mode = #tpu.pipeline_mode<synchronous>, transform_indices = @transform_4, window_bounds = array<i64: 2, 32, 96>}, {pipeline_mode = #tpu.pipeline_mode<synchronous>, transform_indices = @transform_5, window_bounds = array<i64: 2, 1, 96>}, {pipeline_mode = #tpu.pipeline_mode<synchronous>, transform_indices = @transform_6, window_bounds = array<i64: 2, 32, 32>}, {pipeline_mode = #tpu.pipeline_mode<synchronous>, transform_indices = @transform_7, window_bounds = array<i64: 2, 1, 32>}, {pipeline_mode = #tpu.pipeline_mode<synchronous>, transform_indices = @transform_8, window_bounds = array<i64: 2, 1, 32>}, {pipeline_mode = #tpu.pipeline_mode<synchronous>, transform_indices = @transform_9, window_bounds = array<i64: 2, 1, 32>}, {pipeline_mode = #tpu.pipeline_mode<synchronous>, transform_indices = @transform_10, window_bounds = array<i64: 2, 32, 128>}, {pipeline_mode = #tpu.pipeline_mode<synchronous>, transform_indices = @transform_11, window_bounds = array<i64: 2, 1, 128>}, {pipeline_mode = #tpu.pipeline_mode<synchronous>, transform_indices = @transform_12, window_bounds = array<i64: 2, 128, 32>}, {pipeline_mode = #tpu.pipeline_mode<synchronous>, transform_indices = @transform_13, window_bounds = array<i64: 2, 1, 32>}, {pipeline_mode = #tpu.pipeline_mode<synchronous>, transform_indices = @transform_14, window_bounds = array<i64: 1, 32>}, {pipeline_mode = #tpu.pipeline_mode<synchronous>, transform_indices = @transform_15, window_bounds = array<i64: 1, 32>}, {pipeline_mode = #tpu.pipeline_mode<synchronous>, transform_indices = @transform_16, window_bounds = array<i64: 32, 32>}, {pipeline_mode = #tpu.pipeline_mode<synchronous>, transform_indices = @transform_17, window_bounds = array<i64: 3, 32>}]} {
    %c0 = arith.constant 0 : index
    %c0_0 = arith.constant 0 : index
    %0 = vector.load %arg1[%c0, %c0_0] : memref<48x32xf32, #tpu.memory_space<vmem>>, vector<48x32xf32>
    %1 = tpu.iota {dimensions = array<i32: 0>} : vector<48x48xi32>
    %2 = tpu.iota {dimensions = array<i32: 1>} : vector<48x48xi32>
    %3 = arith.sitofp %1 : vector<48x48xi32> to vector<48x48xf32>
    %cst = arith.constant 6.250000e-02 : f32
    %4 = vector.broadcast %cst : f32 to vector<48x48xf32>
    %5 = arith.mulf %3, %4 : vector<48x48xf32>
    %6 = math.floor %5 : vector<48x48xf32>
    %7 = arith.sitofp %2 : vector<48x48xi32> to vector<48x48xf32>
    %cst_1 = arith.constant 6.250000e-02 : f32
    %8 = vector.broadcast %cst_1 : f32 to vector<48x48xf32>
    %9 = arith.mulf %7, %8 : vector<48x48xf32>
    %10 = math.floor %9 : vector<48x48xf32>
    %11 = arith.cmpf oeq, %6, %10 : vector<48x48xf32>
    %cst_2 = arith.constant 0.000000e+00 : f32
    %cst_3 = arith.constant -1.000000e+09 : f32
    %12 = vector.broadcast %cst_2 : f32 to vector<48x48xf32>
    %13 = vector.broadcast %cst_3 : f32 to vector<48x48xf32>
    %14 = arith.select %11, %12, %13 : vector<48x48xi1>, vector<48x48xf32>
    %15 = arith.cmpi sgt, %2, %1 : vector<48x48xi32>
    %cst_4 = arith.constant -1.000000e+09 : f32
    %cst_5 = arith.constant 0.000000e+00 : f32
    %16 = vector.broadcast %cst_4 : f32 to vector<48x48xf32>
    %17 = vector.broadcast %cst_5 : f32 to vector<48x48xf32>
    %18 = arith.select %15, %16, %17 : vector<48x48xi1>, vector<48x48xf32>
    %19 = arith.addf %14, %18 : vector<48x48xf32>
    %c0_6 = arith.constant 0 : index
    %c0_7 = arith.constant 0 : index
    %c0_8 = arith.constant 0 : index
    %20 = vector.load %arg3[%c0_6, %c0_7, %c0_8] : memref<2x1x32xf32, #tpu.memory_space<vmem>>, vector<1x1x32xf32>
    %21 = vector.shape_cast %20 : vector<1x1x32xf32> to vector<1x32xf32>
    %c0_9 = arith.constant 0 : index
    %c0_10 = arith.constant 0 : index
    %c0_11 = arith.constant 0 : index
    %22 = vector.load %arg4[%c0_9, %c0_10, %c0_11] : memref<2x1x32xf32, #tpu.memory_space<vmem>>, vector<1x1x32xf32>
    %23 = vector.shape_cast %22 : vector<1x1x32xf32> to vector<1x32xf32>
    %cst_12 = arith.constant dense<0.000000e+00> : vector<48xf32>
    %24 = vector.multi_reduction <add>, %0, %cst_12 [1] : vector<48x32xf32> to vector<48xf32>
    %25 = vector.shape_cast %24 : vector<48xf32> to vector<48x1xf32>
    %cst_13 = arith.constant 3.200000e+01 : f32
    %26 = vector.broadcast %cst_13 : f32 to vector<48x1xf32>
    %27 = arith.divf %25, %26 : vector<48x1xf32>
    %28 = vector.broadcast %27 : vector<48x1xf32> to vector<48x32xf32>
    %29 = arith.subf %0, %28 : vector<48x32xf32>
    %30 = arith.mulf %29, %29 : vector<48x32xf32>
    %cst_14 = arith.constant dense<0.000000e+00> : vector<48xf32>
    %31 = vector.multi_reduction <add>, %30, %cst_14 [1] : vector<48x32xf32> to vector<48xf32>
    %32 = vector.shape_cast %31 : vector<48xf32> to vector<48x1xf32>
    %cst_15 = arith.constant 3.200000e+01 : f32
    %33 = vector.broadcast %cst_15 : f32 to vector<48x1xf32>
    %34 = arith.divf %32, %33 : vector<48x1xf32>
    %35 = vector.broadcast %27 : vector<48x1xf32> to vector<48x32xf32>
    %36 = arith.subf %0, %35 : vector<48x32xf32>
    %cst_16 = arith.constant 9.99999974E-6 : f32
    %37 = vector.broadcast %cst_16 : f32 to vector<48x1xf32>
    %38 = arith.addf %34, %37 : vector<48x1xf32>
    %39 = math.rsqrt %38 : vector<48x1xf32>
    %40 = vector.broadcast %39 : vector<48x1xf32> to vector<48x32xf32>
    %41 = arith.mulf %36, %40 : vector<48x32xf32>
    %42 = vector.broadcast %21 : vector<1x32xf32> to vector<48x32xf32>
    %43 = arith.mulf %41, %42 : vector<48x32xf32>
    %44 = vector.broadcast %23 : vector<1x32xf32> to vector<48x32xf32>
    %45 = arith.addf %43, %44 : vector<48x32xf32>
    %c0_17 = arith.constant 0 : index
    %c0_18 = arith.constant 0 : index
    %c0_19 = arith.constant 0 : index
    %46 = vector.load %arg5[%c0_17, %c0_18, %c0_19] : memref<2x32x96xf32, #tpu.memory_space<vmem>>, vector<1x32x96xf32>
    %47 = vector.shape_cast %46 : vector<1x32x96xf32> to vector<32x96xf32>
    %cst_20 = arith.constant dense<0.000000e+00> : vector<48x96xf32>
    %48 = tpu.matmul %45, %47, %cst_20 {dimension_numbers = #tpu.dot_dimension_numbers<[1], [0], [0], [1], [0, 0, 1, 1], [], []>} : vector<48x32xf32>, vector<32x96xf32>, vector<48x96xf32> -> vector<48x96xf32>
    %c0_21 = arith.constant 0 : index
    %c0_22 = arith.constant 0 : index
    %c0_23 = arith.constant 0 : index
    %49 = vector.load %arg6[%c0_21, %c0_22, %c0_23] : memref<2x1x96xf32, #tpu.memory_space<vmem>>, vector<1x1x96xf32>
    %50 = vector.shape_cast %49 : vector<1x1x96xf32> to vector<1x96xf32>
    %51 = vector.broadcast %50 : vector<1x96xf32> to vector<48x96xf32>
    %52 = arith.addf %48, %51 : vector<48x96xf32>
    %c0_24 = arith.constant 0 : index
    %c0_25 = arith.constant 0 : index
    %c0_26 = arith.constant 0 : index
    %53 = vector.load %arg7[%c0_24, %c0_25, %c0_26] : memref<2x32x32xf32, #tpu.memory_space<vmem>>, vector<1x32x32xf32>
    %54 = vector.shape_cast %53 : vector<1x32x32xf32> to vector<32x32xf32>
    %55 = vector.extract_strided_slice %52 {offsets = [0, 0], sizes = [48, 16], strides = [1, 1]} : vector<48x96xf32> to vector<48x16xf32>
    %56 = vector.extract_strided_slice %52 {offsets = [0, 32], sizes = [48, 16], strides = [1, 1]} : vector<48x96xf32> to vector<48x16xf32>
    %57 = vector.extract_strided_slice %52 {offsets = [0, 64], sizes = [48, 16], strides = [1, 1]} : vector<48x96xf32> to vector<48x16xf32>
    %cst_27 = arith.constant dense<0.000000e+00> : vector<48x48xf32>
    %58 = tpu.matmul %55, %56, %cst_27 {dimension_numbers = #tpu.dot_dimension_numbers<[1], [1], [0], [0], [0, 0, 1, 0], [], []>} : vector<48x16xf32>, vector<48x16xf32>, vector<48x48xf32> -> vector<48x48xf32>
    %cst_28 = arith.constant 2.500000e-01 : f32
    %59 = vector.broadcast %cst_28 : f32 to vector<48x48xf32>
    %60 = arith.mulf %58, %59 : vector<48x48xf32>
    %61 = arith.addf %60, %19 : vector<48x48xf32>
    %cst_29 = arith.constant dense<0xFF800000> : vector<48xf32>
    %62 = vector.multi_reduction <maximumf>, %61, %cst_29 [1] : vector<48x48xf32> to vector<48xf32>
    %63 = vector.shape_cast %62 : vector<48xf32> to vector<48x1xf32>
    %64 = vector.broadcast %63 : vector<48x1xf32> to vector<48x48xf32>
    %65 = arith.subf %61, %64 : vector<48x48xf32>
    %66 = math.exp %65 : vector<48x48xf32>
    %cst_30 = arith.constant dense<0.000000e+00> : vector<48xf32>
    %67 = vector.multi_reduction <add>, %66, %cst_30 [1] : vector<48x48xf32> to vector<48xf32>
    %68 = vector.shape_cast %67 : vector<48xf32> to vector<48x1xf32>
    %69 = tpu.reciprocal %68 {approx = true} : vector<48x1xf32> -> vector<48x1xf32>
    %70 = vector.broadcast %69 : vector<48x1xf32> to vector<48x48xf32>
    %71 = arith.mulf %66, %70 : vector<48x48xf32>
    %cst_31 = arith.constant dense<0.000000e+00> : vector<48x16xf32>
    %72 = tpu.matmul %71, %57, %cst_31 {dimension_numbers = #tpu.dot_dimension_numbers<[1], [0], [0], [1], [0, 0, 1, 1], [], []>} : vector<48x48xf32>, vector<48x16xf32>, vector<48x16xf32> -> vector<48x16xf32>
    %73 = vector.extract_strided_slice %54 {offsets = [0, 0], sizes = [16, 32], strides = [1, 1]} : vector<32x32xf32> to vector<16x32xf32>
    %cst_32 = arith.constant dense<0.000000e+00> : vector<48x32xf32>
    %74 = tpu.matmul %72, %73, %cst_32 {dimension_numbers = #tpu.dot_dimension_numbers<[1], [0], [0], [1], [0, 0, 1, 1], [], []>} : vector<48x16xf32>, vector<16x32xf32>, vector<48x32xf32> -> vector<48x32xf32>
    %75 = vector.extract_strided_slice %52 {offsets = [0, 16], sizes = [48, 16], strides = [1, 1]} : vector<48x96xf32> to vector<48x16xf32>
    %76 = vector.extract_strided_slice %52 {offsets = [0, 48], sizes = [48, 16], strides = [1, 1]} : vector<48x96xf32> to vector<48x16xf32>
    %77 = vector.extract_strided_slice %52 {offsets = [0, 80], sizes = [48, 16], strides = [1, 1]} : vector<48x96xf32> to vector<48x16xf32>
    %cst_33 = arith.constant dense<0.000000e+00> : vector<48x48xf32>
    %78 = tpu.matmul %75, %76, %cst_33 {dimension_numbers = #tpu.dot_dimension_numbers<[1], [1], [0], [0], [0, 0, 1, 0], [], []>} : vector<48x16xf32>, vector<48x16xf32>, vector<48x48xf32> -> vector<48x48xf32>
    %cst_34 = arith.constant 2.500000e-01 : f32
    %79 = vector.broadcast %cst_34 : f32 to vector<48x48xf32>
    %80 = arith.mulf %78, %79 : vector<48x48xf32>
    %81 = arith.addf %80, %19 : vector<48x48xf32>
    %cst_35 = arith.constant dense<0xFF800000> : vector<48xf32>
    %82 = vector.multi_reduction <maximumf>, %81, %cst_35 [1] : vector<48x48xf32> to vector<48xf32>
    %83 = vector.shape_cast %82 : vector<48xf32> to vector<48x1xf32>
    %84 = vector.broadcast %83 : vector<48x1xf32> to vector<48x48xf32>
    %85 = arith.subf %81, %84 : vector<48x48xf32>
    %86 = math.exp %85 : vector<48x48xf32>
    %cst_36 = arith.constant dense<0.000000e+00> : vector<48xf32>
    %87 = vector.multi_reduction <add>, %86, %cst_36 [1] : vector<48x48xf32> to vector<48xf32>
    %88 = vector.shape_cast %87 : vector<48xf32> to vector<48x1xf32>
    %89 = tpu.reciprocal %88 {approx = true} : vector<48x1xf32> -> vector<48x1xf32>
    %90 = vector.broadcast %89 : vector<48x1xf32> to vector<48x48xf32>
    %91 = arith.mulf %86, %90 : vector<48x48xf32>
    %cst_37 = arith.constant dense<0.000000e+00> : vector<48x16xf32>
    %92 = tpu.matmul %91, %77, %cst_37 {dimension_numbers = #tpu.dot_dimension_numbers<[1], [0], [0], [1], [0, 0, 1, 1], [], []>} : vector<48x48xf32>, vector<48x16xf32>, vector<48x16xf32> -> vector<48x16xf32>
    %93 = vector.extract_strided_slice %54 {offsets = [16, 0], sizes = [16, 32], strides = [1, 1]} : vector<32x32xf32> to vector<16x32xf32>
    %cst_38 = arith.constant dense<0.000000e+00> : vector<48x32xf32>
    %94 = tpu.matmul %92, %93, %cst_38 {dimension_numbers = #tpu.dot_dimension_numbers<[1], [0], [0], [1], [0, 0, 1, 1], [], []>} : vector<48x16xf32>, vector<16x32xf32>, vector<48x32xf32> -> vector<48x32xf32>
    %95 = arith.addf %74, %94 : vector<48x32xf32>
    %96 = arith.addf %0, %95 : vector<48x32xf32>
    %c0_39 = arith.constant 0 : index
    %c0_40 = arith.constant 0 : index
    %c0_41 = arith.constant 0 : index
    %97 = vector.load %arg8[%c0_39, %c0_40, %c0_41] : memref<2x1x32xf32, #tpu.memory_space<vmem>>, vector<1x1x32xf32>
    %98 = vector.shape_cast %97 : vector<1x1x32xf32> to vector<1x32xf32>
    %99 = vector.broadcast %98 : vector<1x32xf32> to vector<48x32xf32>
    %100 = arith.addf %96, %99 : vector<48x32xf32>
    %c0_42 = arith.constant 0 : index
    %c0_43 = arith.constant 0 : index
    %c0_44 = arith.constant 0 : index
    %101 = vector.load %arg9[%c0_42, %c0_43, %c0_44] : memref<2x1x32xf32, #tpu.memory_space<vmem>>, vector<1x1x32xf32>
    %102 = vector.shape_cast %101 : vector<1x1x32xf32> to vector<1x32xf32>
    %c0_45 = arith.constant 0 : index
    %c0_46 = arith.constant 0 : index
    %c0_47 = arith.constant 0 : index
    %103 = vector.load %arg10[%c0_45, %c0_46, %c0_47] : memref<2x1x32xf32, #tpu.memory_space<vmem>>, vector<1x1x32xf32>
    %104 = vector.shape_cast %103 : vector<1x1x32xf32> to vector<1x32xf32>
    %cst_48 = arith.constant dense<0.000000e+00> : vector<48xf32>
    %105 = vector.multi_reduction <add>, %100, %cst_48 [1] : vector<48x32xf32> to vector<48xf32>
    %106 = vector.shape_cast %105 : vector<48xf32> to vector<48x1xf32>
    %cst_49 = arith.constant 3.200000e+01 : f32
    %107 = vector.broadcast %cst_49 : f32 to vector<48x1xf32>
    %108 = arith.divf %106, %107 : vector<48x1xf32>
    %109 = vector.broadcast %108 : vector<48x1xf32> to vector<48x32xf32>
    %110 = arith.subf %100, %109 : vector<48x32xf32>
    %111 = arith.mulf %110, %110 : vector<48x32xf32>
    %cst_50 = arith.constant dense<0.000000e+00> : vector<48xf32>
    %112 = vector.multi_reduction <add>, %111, %cst_50 [1] : vector<48x32xf32> to vector<48xf32>
    %113 = vector.shape_cast %112 : vector<48xf32> to vector<48x1xf32>
    %cst_51 = arith.constant 3.200000e+01 : f32
    %114 = vector.broadcast %cst_51 : f32 to vector<48x1xf32>
    %115 = arith.divf %113, %114 : vector<48x1xf32>
    %116 = vector.broadcast %108 : vector<48x1xf32> to vector<48x32xf32>
    %117 = arith.subf %100, %116 : vector<48x32xf32>
    %cst_52 = arith.constant 9.99999974E-6 : f32
    %118 = vector.broadcast %cst_52 : f32 to vector<48x1xf32>
    %119 = arith.addf %115, %118 : vector<48x1xf32>
    %120 = math.rsqrt %119 : vector<48x1xf32>
    %121 = vector.broadcast %120 : vector<48x1xf32> to vector<48x32xf32>
    %122 = arith.mulf %117, %121 : vector<48x32xf32>
    %123 = vector.broadcast %102 : vector<1x32xf32> to vector<48x32xf32>
    %124 = arith.mulf %122, %123 : vector<48x32xf32>
    %125 = vector.broadcast %104 : vector<1x32xf32> to vector<48x32xf32>
    %126 = arith.addf %124, %125 : vector<48x32xf32>
    %c0_53 = arith.constant 0 : index
    %c0_54 = arith.constant 0 : index
    %c0_55 = arith.constant 0 : index
    %127 = vector.load %arg11[%c0_53, %c0_54, %c0_55] : memref<2x32x128xf32, #tpu.memory_space<vmem>>, vector<1x32x128xf32>
    %128 = vector.shape_cast %127 : vector<1x32x128xf32> to vector<32x128xf32>
    %cst_56 = arith.constant dense<0.000000e+00> : vector<48x128xf32>
    %129 = tpu.matmul %126, %128, %cst_56 {dimension_numbers = #tpu.dot_dimension_numbers<[1], [0], [0], [1], [0, 0, 1, 1], [], []>} : vector<48x32xf32>, vector<32x128xf32>, vector<48x128xf32> -> vector<48x128xf32>
    %c0_57 = arith.constant 0 : index
    %c0_58 = arith.constant 0 : index
    %c0_59 = arith.constant 0 : index
    %130 = vector.load %arg12[%c0_57, %c0_58, %c0_59] : memref<2x1x128xf32, #tpu.memory_space<vmem>>, vector<1x1x128xf32>
    %131 = vector.shape_cast %130 : vector<1x1x128xf32> to vector<1x128xf32>
    %132 = vector.broadcast %131 : vector<1x128xf32> to vector<48x128xf32>
    %133 = arith.addf %129, %132 : vector<48x128xf32>
    %cst_60 = arith.constant -1.702000e+00 : f32
    %134 = vector.broadcast %cst_60 : f32 to vector<48x128xf32>
    %135 = arith.mulf %134, %133 : vector<48x128xf32>
    %136 = math.exp %135 : vector<48x128xf32>
    %cst_61 = arith.constant 1.000000e+00 : f32
    %137 = vector.broadcast %cst_61 : f32 to vector<48x128xf32>
    %138 = arith.addf %137, %136 : vector<48x128xf32>
    %cst_62 = arith.constant 1.000000e+00 : f32
    %139 = vector.broadcast %cst_62 : f32 to vector<48x128xf32>
    %140 = arith.divf %139, %138 : vector<48x128xf32>
    %141 = arith.mulf %133, %140 : vector<48x128xf32>
    %c0_63 = arith.constant 0 : index
    %c0_64 = arith.constant 0 : index
    %c0_65 = arith.constant 0 : index
    %142 = vector.load %arg13[%c0_63, %c0_64, %c0_65] : memref<2x128x32xf32, #tpu.memory_space<vmem>>, vector<1x128x32xf32>
    %143 = vector.shape_cast %142 : vector<1x128x32xf32> to vector<128x32xf32>
    %cst_66 = arith.constant dense<0.000000e+00> : vector<48x32xf32>
    %144 = tpu.matmul %141, %143, %cst_66 {dimension_numbers = #tpu.dot_dimension_numbers<[1], [0], [0], [1], [0, 0, 1, 1], [], []>} : vector<48x128xf32>, vector<128x32xf32>, vector<48x32xf32> -> vector<48x32xf32>
    %145 = arith.addf %100, %144 : vector<48x32xf32>
    %c0_67 = arith.constant 0 : index
    %c0_68 = arith.constant 0 : index
    %c0_69 = arith.constant 0 : index
    %146 = vector.load %arg14[%c0_67, %c0_68, %c0_69] : memref<2x1x32xf32, #tpu.memory_space<vmem>>, vector<1x1x32xf32>
    %147 = vector.shape_cast %146 : vector<1x1x32xf32> to vector<1x32xf32>
    %148 = vector.broadcast %147 : vector<1x32xf32> to vector<48x32xf32>
    %149 = arith.addf %145, %148 : vector<48x32xf32>
    %c1 = arith.constant 1 : index
    %c0_70 = arith.constant 0 : index
    %c0_71 = arith.constant 0 : index
    %150 = vector.load %arg3[%c1, %c0_70, %c0_71] : memref<2x1x32xf32, #tpu.memory_space<vmem>>, vector<1x1x32xf32>
    %151 = vector.shape_cast %150 : vector<1x1x32xf32> to vector<1x32xf32>
    %c1_72 = arith.constant 1 : index
    %c0_73 = arith.constant 0 : index
    %c0_74 = arith.constant 0 : index
    %152 = vector.load %arg4[%c1_72, %c0_73, %c0_74] : memref<2x1x32xf32, #tpu.memory_space<vmem>>, vector<1x1x32xf32>
    %153 = vector.shape_cast %152 : vector<1x1x32xf32> to vector<1x32xf32>
    %cst_75 = arith.constant dense<0.000000e+00> : vector<48xf32>
    %154 = vector.multi_reduction <add>, %149, %cst_75 [1] : vector<48x32xf32> to vector<48xf32>
    %155 = vector.shape_cast %154 : vector<48xf32> to vector<48x1xf32>
    %cst_76 = arith.constant 3.200000e+01 : f32
    %156 = vector.broadcast %cst_76 : f32 to vector<48x1xf32>
    %157 = arith.divf %155, %156 : vector<48x1xf32>
    %158 = vector.broadcast %157 : vector<48x1xf32> to vector<48x32xf32>
    %159 = arith.subf %149, %158 : vector<48x32xf32>
    %160 = arith.mulf %159, %159 : vector<48x32xf32>
    %cst_77 = arith.constant dense<0.000000e+00> : vector<48xf32>
    %161 = vector.multi_reduction <add>, %160, %cst_77 [1] : vector<48x32xf32> to vector<48xf32>
    %162 = vector.shape_cast %161 : vector<48xf32> to vector<48x1xf32>
    %cst_78 = arith.constant 3.200000e+01 : f32
    %163 = vector.broadcast %cst_78 : f32 to vector<48x1xf32>
    %164 = arith.divf %162, %163 : vector<48x1xf32>
    %165 = vector.broadcast %157 : vector<48x1xf32> to vector<48x32xf32>
    %166 = arith.subf %149, %165 : vector<48x32xf32>
    %cst_79 = arith.constant 9.99999974E-6 : f32
    %167 = vector.broadcast %cst_79 : f32 to vector<48x1xf32>
    %168 = arith.addf %164, %167 : vector<48x1xf32>
    %169 = math.rsqrt %168 : vector<48x1xf32>
    %170 = vector.broadcast %169 : vector<48x1xf32> to vector<48x32xf32>
    %171 = arith.mulf %166, %170 : vector<48x32xf32>
    %172 = vector.broadcast %151 : vector<1x32xf32> to vector<48x32xf32>
    %173 = arith.mulf %171, %172 : vector<48x32xf32>
    %174 = vector.broadcast %153 : vector<1x32xf32> to vector<48x32xf32>
    %175 = arith.addf %173, %174 : vector<48x32xf32>
    %c1_80 = arith.constant 1 : index
    %c0_81 = arith.constant 0 : index
    %c0_82 = arith.constant 0 : index
    %176 = vector.load %arg5[%c1_80, %c0_81, %c0_82] : memref<2x32x96xf32, #tpu.memory_space<vmem>>, vector<1x32x96xf32>
    %177 = vector.shape_cast %176 : vector<1x32x96xf32> to vector<32x96xf32>
    %cst_83 = arith.constant dense<0.000000e+00> : vector<48x96xf32>
    %178 = tpu.matmul %175, %177, %cst_83 {dimension_numbers = #tpu.dot_dimension_numbers<[1], [0], [0], [1], [0, 0, 1, 1], [], []>} : vector<48x32xf32>, vector<32x96xf32>, vector<48x96xf32> -> vector<48x96xf32>
    %c1_84 = arith.constant 1 : index
    %c0_85 = arith.constant 0 : index
    %c0_86 = arith.constant 0 : index
    %179 = vector.load %arg6[%c1_84, %c0_85, %c0_86] : memref<2x1x96xf32, #tpu.memory_space<vmem>>, vector<1x1x96xf32>
    %180 = vector.shape_cast %179 : vector<1x1x96xf32> to vector<1x96xf32>
    %181 = vector.broadcast %180 : vector<1x96xf32> to vector<48x96xf32>
    %182 = arith.addf %178, %181 : vector<48x96xf32>
    %c1_87 = arith.constant 1 : index
    %c0_88 = arith.constant 0 : index
    %c0_89 = arith.constant 0 : index
    %183 = vector.load %arg7[%c1_87, %c0_88, %c0_89] : memref<2x32x32xf32, #tpu.memory_space<vmem>>, vector<1x32x32xf32>
    %184 = vector.shape_cast %183 : vector<1x32x32xf32> to vector<32x32xf32>
    %185 = vector.extract_strided_slice %182 {offsets = [0, 0], sizes = [48, 16], strides = [1, 1]} : vector<48x96xf32> to vector<48x16xf32>
    %186 = vector.extract_strided_slice %182 {offsets = [0, 32], sizes = [48, 16], strides = [1, 1]} : vector<48x96xf32> to vector<48x16xf32>
    %187 = vector.extract_strided_slice %182 {offsets = [0, 64], sizes = [48, 16], strides = [1, 1]} : vector<48x96xf32> to vector<48x16xf32>
    %cst_90 = arith.constant dense<0.000000e+00> : vector<48x48xf32>
    %188 = tpu.matmul %185, %186, %cst_90 {dimension_numbers = #tpu.dot_dimension_numbers<[1], [1], [0], [0], [0, 0, 1, 0], [], []>} : vector<48x16xf32>, vector<48x16xf32>, vector<48x48xf32> -> vector<48x48xf32>
    %cst_91 = arith.constant 2.500000e-01 : f32
    %189 = vector.broadcast %cst_91 : f32 to vector<48x48xf32>
    %190 = arith.mulf %188, %189 : vector<48x48xf32>
    %191 = arith.addf %190, %19 : vector<48x48xf32>
    %cst_92 = arith.constant dense<0xFF800000> : vector<48xf32>
    %192 = vector.multi_reduction <maximumf>, %191, %cst_92 [1] : vector<48x48xf32> to vector<48xf32>
    %193 = vector.shape_cast %192 : vector<48xf32> to vector<48x1xf32>
    %194 = vector.broadcast %193 : vector<48x1xf32> to vector<48x48xf32>
    %195 = arith.subf %191, %194 : vector<48x48xf32>
    %196 = math.exp %195 : vector<48x48xf32>
    %cst_93 = arith.constant dense<0.000000e+00> : vector<48xf32>
    %197 = vector.multi_reduction <add>, %196, %cst_93 [1] : vector<48x48xf32> to vector<48xf32>
    %198 = vector.shape_cast %197 : vector<48xf32> to vector<48x1xf32>
    %199 = tpu.reciprocal %198 {approx = true} : vector<48x1xf32> -> vector<48x1xf32>
    %200 = vector.broadcast %199 : vector<48x1xf32> to vector<48x48xf32>
    %201 = arith.mulf %196, %200 : vector<48x48xf32>
    %cst_94 = arith.constant dense<0.000000e+00> : vector<48x16xf32>
    %202 = tpu.matmul %201, %187, %cst_94 {dimension_numbers = #tpu.dot_dimension_numbers<[1], [0], [0], [1], [0, 0, 1, 1], [], []>} : vector<48x48xf32>, vector<48x16xf32>, vector<48x16xf32> -> vector<48x16xf32>
    %203 = vector.extract_strided_slice %184 {offsets = [0, 0], sizes = [16, 32], strides = [1, 1]} : vector<32x32xf32> to vector<16x32xf32>
    %cst_95 = arith.constant dense<0.000000e+00> : vector<48x32xf32>
    %204 = tpu.matmul %202, %203, %cst_95 {dimension_numbers = #tpu.dot_dimension_numbers<[1], [0], [0], [1], [0, 0, 1, 1], [], []>} : vector<48x16xf32>, vector<16x32xf32>, vector<48x32xf32> -> vector<48x32xf32>
    %205 = vector.extract_strided_slice %182 {offsets = [0, 16], sizes = [48, 16], strides = [1, 1]} : vector<48x96xf32> to vector<48x16xf32>
    %206 = vector.extract_strided_slice %182 {offsets = [0, 48], sizes = [48, 16], strides = [1, 1]} : vector<48x96xf32> to vector<48x16xf32>
    %207 = vector.extract_strided_slice %182 {offsets = [0, 80], sizes = [48, 16], strides = [1, 1]} : vector<48x96xf32> to vector<48x16xf32>
    %cst_96 = arith.constant dense<0.000000e+00> : vector<48x48xf32>
    %208 = tpu.matmul %205, %206, %cst_96 {dimension_numbers = #tpu.dot_dimension_numbers<[1], [1], [0], [0], [0, 0, 1, 0], [], []>} : vector<48x16xf32>, vector<48x16xf32>, vector<48x48xf32> -> vector<48x48xf32>
    %cst_97 = arith.constant 2.500000e-01 : f32
    %209 = vector.broadcast %cst_97 : f32 to vector<48x48xf32>
    %210 = arith.mulf %208, %209 : vector<48x48xf32>
    %211 = arith.addf %210, %19 : vector<48x48xf32>
    %cst_98 = arith.constant dense<0xFF800000> : vector<48xf32>
    %212 = vector.multi_reduction <maximumf>, %211, %cst_98 [1] : vector<48x48xf32> to vector<48xf32>
    %213 = vector.shape_cast %212 : vector<48xf32> to vector<48x1xf32>
    %214 = vector.broadcast %213 : vector<48x1xf32> to vector<48x48xf32>
    %215 = arith.subf %211, %214 : vector<48x48xf32>
    %216 = math.exp %215 : vector<48x48xf32>
    %cst_99 = arith.constant dense<0.000000e+00> : vector<48xf32>
    %217 = vector.multi_reduction <add>, %216, %cst_99 [1] : vector<48x48xf32> to vector<48xf32>
    %218 = vector.shape_cast %217 : vector<48xf32> to vector<48x1xf32>
    %219 = tpu.reciprocal %218 {approx = true} : vector<48x1xf32> -> vector<48x1xf32>
    %220 = vector.broadcast %219 : vector<48x1xf32> to vector<48x48xf32>
    %221 = arith.mulf %216, %220 : vector<48x48xf32>
    %cst_100 = arith.constant dense<0.000000e+00> : vector<48x16xf32>
    %222 = tpu.matmul %221, %207, %cst_100 {dimension_numbers = #tpu.dot_dimension_numbers<[1], [0], [0], [1], [0, 0, 1, 1], [], []>} : vector<48x48xf32>, vector<48x16xf32>, vector<48x16xf32> -> vector<48x16xf32>
    %223 = vector.extract_strided_slice %184 {offsets = [16, 0], sizes = [16, 32], strides = [1, 1]} : vector<32x32xf32> to vector<16x32xf32>
    %cst_101 = arith.constant dense<0.000000e+00> : vector<48x32xf32>
    %224 = tpu.matmul %222, %223, %cst_101 {dimension_numbers = #tpu.dot_dimension_numbers<[1], [0], [0], [1], [0, 0, 1, 1], [], []>} : vector<48x16xf32>, vector<16x32xf32>, vector<48x32xf32> -> vector<48x32xf32>
    %225 = arith.addf %204, %224 : vector<48x32xf32>
    %226 = arith.addf %149, %225 : vector<48x32xf32>
    %c1_102 = arith.constant 1 : index
    %c0_103 = arith.constant 0 : index
    %c0_104 = arith.constant 0 : index
    %227 = vector.load %arg8[%c1_102, %c0_103, %c0_104] : memref<2x1x32xf32, #tpu.memory_space<vmem>>, vector<1x1x32xf32>
    %228 = vector.shape_cast %227 : vector<1x1x32xf32> to vector<1x32xf32>
    %229 = vector.broadcast %228 : vector<1x32xf32> to vector<48x32xf32>
    %230 = arith.addf %226, %229 : vector<48x32xf32>
    %c1_105 = arith.constant 1 : index
    %c0_106 = arith.constant 0 : index
    %c0_107 = arith.constant 0 : index
    %231 = vector.load %arg9[%c1_105, %c0_106, %c0_107] : memref<2x1x32xf32, #tpu.memory_space<vmem>>, vector<1x1x32xf32>
    %232 = vector.shape_cast %231 : vector<1x1x32xf32> to vector<1x32xf32>
    %c1_108 = arith.constant 1 : index
    %c0_109 = arith.constant 0 : index
    %c0_110 = arith.constant 0 : index
    %233 = vector.load %arg10[%c1_108, %c0_109, %c0_110] : memref<2x1x32xf32, #tpu.memory_space<vmem>>, vector<1x1x32xf32>
    %234 = vector.shape_cast %233 : vector<1x1x32xf32> to vector<1x32xf32>
    %cst_111 = arith.constant dense<0.000000e+00> : vector<48xf32>
    %235 = vector.multi_reduction <add>, %230, %cst_111 [1] : vector<48x32xf32> to vector<48xf32>
    %236 = vector.shape_cast %235 : vector<48xf32> to vector<48x1xf32>
    %cst_112 = arith.constant 3.200000e+01 : f32
    %237 = vector.broadcast %cst_112 : f32 to vector<48x1xf32>
    %238 = arith.divf %236, %237 : vector<48x1xf32>
    %239 = vector.broadcast %238 : vector<48x1xf32> to vector<48x32xf32>
    %240 = arith.subf %230, %239 : vector<48x32xf32>
    %241 = arith.mulf %240, %240 : vector<48x32xf32>
    %cst_113 = arith.constant dense<0.000000e+00> : vector<48xf32>
    %242 = vector.multi_reduction <add>, %241, %cst_113 [1] : vector<48x32xf32> to vector<48xf32>
    %243 = vector.shape_cast %242 : vector<48xf32> to vector<48x1xf32>
    %cst_114 = arith.constant 3.200000e+01 : f32
    %244 = vector.broadcast %cst_114 : f32 to vector<48x1xf32>
    %245 = arith.divf %243, %244 : vector<48x1xf32>
    %246 = vector.broadcast %238 : vector<48x1xf32> to vector<48x32xf32>
    %247 = arith.subf %230, %246 : vector<48x32xf32>
    %cst_115 = arith.constant 9.99999974E-6 : f32
    %248 = vector.broadcast %cst_115 : f32 to vector<48x1xf32>
    %249 = arith.addf %245, %248 : vector<48x1xf32>
    %250 = math.rsqrt %249 : vector<48x1xf32>
    %251 = vector.broadcast %250 : vector<48x1xf32> to vector<48x32xf32>
    %252 = arith.mulf %247, %251 : vector<48x32xf32>
    %253 = vector.broadcast %232 : vector<1x32xf32> to vector<48x32xf32>
    %254 = arith.mulf %252, %253 : vector<48x32xf32>
    %255 = vector.broadcast %234 : vector<1x32xf32> to vector<48x32xf32>
    %256 = arith.addf %254, %255 : vector<48x32xf32>
    %c1_116 = arith.constant 1 : index
    %c0_117 = arith.constant 0 : index
    %c0_118 = arith.constant 0 : index
    %257 = vector.load %arg11[%c1_116, %c0_117, %c0_118] : memref<2x32x128xf32, #tpu.memory_space<vmem>>, vector<1x32x128xf32>
    %258 = vector.shape_cast %257 : vector<1x32x128xf32> to vector<32x128xf32>
    %cst_119 = arith.constant dense<0.000000e+00> : vector<48x128xf32>
    %259 = tpu.matmul %256, %258, %cst_119 {dimension_numbers = #tpu.dot_dimension_numbers<[1], [0], [0], [1], [0, 0, 1, 1], [], []>} : vector<48x32xf32>, vector<32x128xf32>, vector<48x128xf32> -> vector<48x128xf32>
    %c1_120 = arith.constant 1 : index
    %c0_121 = arith.constant 0 : index
    %c0_122 = arith.constant 0 : index
    %260 = vector.load %arg12[%c1_120, %c0_121, %c0_122] : memref<2x1x128xf32, #tpu.memory_space<vmem>>, vector<1x1x128xf32>
    %261 = vector.shape_cast %260 : vector<1x1x128xf32> to vector<1x128xf32>
    %262 = vector.broadcast %261 : vector<1x128xf32> to vector<48x128xf32>
    %263 = arith.addf %259, %262 : vector<48x128xf32>
    %cst_123 = arith.constant -1.702000e+00 : f32
    %264 = vector.broadcast %cst_123 : f32 to vector<48x128xf32>
    %265 = arith.mulf %264, %263 : vector<48x128xf32>
    %266 = math.exp %265 : vector<48x128xf32>
    %cst_124 = arith.constant 1.000000e+00 : f32
    %267 = vector.broadcast %cst_124 : f32 to vector<48x128xf32>
    %268 = arith.addf %267, %266 : vector<48x128xf32>
    %cst_125 = arith.constant 1.000000e+00 : f32
    %269 = vector.broadcast %cst_125 : f32 to vector<48x128xf32>
    %270 = arith.divf %269, %268 : vector<48x128xf32>
    %271 = arith.mulf %263, %270 : vector<48x128xf32>
    %c1_126 = arith.constant 1 : index
    %c0_127 = arith.constant 0 : index
    %c0_128 = arith.constant 0 : index
    %272 = vector.load %arg13[%c1_126, %c0_127, %c0_128] : memref<2x128x32xf32, #tpu.memory_space<vmem>>, vector<1x128x32xf32>
    %273 = vector.shape_cast %272 : vector<1x128x32xf32> to vector<128x32xf32>
    %cst_129 = arith.constant dense<0.000000e+00> : vector<48x32xf32>
    %274 = tpu.matmul %271, %273, %cst_129 {dimension_numbers = #tpu.dot_dimension_numbers<[1], [0], [0], [1], [0, 0, 1, 1], [], []>} : vector<48x128xf32>, vector<128x32xf32>, vector<48x32xf32> -> vector<48x32xf32>
    %275 = arith.addf %230, %274 : vector<48x32xf32>
    %c1_130 = arith.constant 1 : index
    %c0_131 = arith.constant 0 : index
    %c0_132 = arith.constant 0 : index
    %276 = vector.load %arg14[%c1_130, %c0_131, %c0_132] : memref<2x1x32xf32, #tpu.memory_space<vmem>>, vector<1x1x32xf32>
    %277 = vector.shape_cast %276 : vector<1x1x32xf32> to vector<1x32xf32>
    %278 = vector.broadcast %277 : vector<1x32xf32> to vector<48x32xf32>
    %279 = arith.addf %275, %278 : vector<48x32xf32>
    %c0_133 = arith.constant 0 : index
    %c0_134 = arith.constant 0 : index
    %280 = vector.load %arg15[%c0_133, %c0_134] : memref<1x32xf32, #tpu.memory_space<vmem>>, vector<1x32xf32>
    %c0_135 = arith.constant 0 : index
    %c0_136 = arith.constant 0 : index
    %281 = vector.load %arg16[%c0_135, %c0_136] : memref<1x32xf32, #tpu.memory_space<vmem>>, vector<1x32xf32>
    %cst_137 = arith.constant dense<0.000000e+00> : vector<48xf32>
    %282 = vector.multi_reduction <add>, %279, %cst_137 [1] : vector<48x32xf32> to vector<48xf32>
    %283 = vector.shape_cast %282 : vector<48xf32> to vector<48x1xf32>
    %cst_138 = arith.constant 3.200000e+01 : f32
    %284 = vector.broadcast %cst_138 : f32 to vector<48x1xf32>
    %285 = arith.divf %283, %284 : vector<48x1xf32>
    %286 = vector.broadcast %285 : vector<48x1xf32> to vector<48x32xf32>
    %287 = arith.subf %279, %286 : vector<48x32xf32>
    %288 = arith.mulf %287, %287 : vector<48x32xf32>
    %cst_139 = arith.constant dense<0.000000e+00> : vector<48xf32>
    %289 = vector.multi_reduction <add>, %288, %cst_139 [1] : vector<48x32xf32> to vector<48xf32>
    %290 = vector.shape_cast %289 : vector<48xf32> to vector<48x1xf32>
    %cst_140 = arith.constant 3.200000e+01 : f32
    %291 = vector.broadcast %cst_140 : f32 to vector<48x1xf32>
    %292 = arith.divf %290, %291 : vector<48x1xf32>
    %293 = vector.broadcast %285 : vector<48x1xf32> to vector<48x32xf32>
    %294 = arith.subf %279, %293 : vector<48x32xf32>
    %cst_141 = arith.constant 9.99999974E-6 : f32
    %295 = vector.broadcast %cst_141 : f32 to vector<48x1xf32>
    %296 = arith.addf %292, %295 : vector<48x1xf32>
    %297 = math.rsqrt %296 : vector<48x1xf32>
    %298 = vector.broadcast %297 : vector<48x1xf32> to vector<48x32xf32>
    %299 = arith.mulf %294, %298 : vector<48x32xf32>
    %300 = vector.broadcast %280 : vector<1x32xf32> to vector<48x32xf32>
    %301 = arith.mulf %299, %300 : vector<48x32xf32>
    %302 = vector.broadcast %281 : vector<1x32xf32> to vector<48x32xf32>
    %303 = arith.addf %301, %302 : vector<48x32xf32>
    %c0_142 = arith.constant 0 : index
    %c0_143 = arith.constant 0 : index
    %304 = vector.load %arg2[%c0_142, %c0_143] : memref<3x48xf32, #tpu.memory_space<vmem>>, vector<3x48xf32>
    %cst_144 = arith.constant dense<0.000000e+00> : vector<3x32xf32>
    %305 = tpu.matmul %304, %303, %cst_144 {dimension_numbers = #tpu.dot_dimension_numbers<[1], [0], [0], [1], [0, 0, 1, 1], [], []>} : vector<3x48xf32>, vector<48x32xf32>, vector<3x32xf32> -> vector<3x32xf32>
    %c0_145 = arith.constant 0 : index
    %c0_146 = arith.constant 0 : index
    %306 = vector.load %arg17[%c0_145, %c0_146] : memref<32x32xf32, #tpu.memory_space<vmem>>, vector<32x32xf32>
    %cst_147 = arith.constant dense<0.000000e+00> : vector<3x32xf32>
    %307 = tpu.matmul %305, %306, %cst_147 {dimension_numbers = #tpu.dot_dimension_numbers<[1], [0], [0], [1], [0, 0, 1, 1], [], []>} : vector<3x32xf32>, vector<32x32xf32>, vector<3x32xf32> -> vector<3x32xf32>
    %c0_148 = arith.constant 0 : index
    %c0_149 = arith.constant 0 : index
    %308 = vector.load %arg18[%c0_148, %c0_149] : memref<3x32xf32, #tpu.memory_space<vmem>>, vector<3x32xf32>
    tpu.vector_store %arg18[%c0_148, %c0_149], %307 {strides = array<i32>} : memref<3x32xf32, #tpu.memory_space<vmem>>, vector<3x32xf32>,
    return
  }
  func.func @transform_0(%arg0: i32) -> (i32, i32) {
    %c0_i32 = arith.constant 0 : i32
    %c0_i32_0 = arith.constant 0 : i32
    %c0_i32_1 = arith.constant 0 : i32
    return %c0_i32, %c0_i32_0 : i32, i32
  }
  func.func @transform_1(%arg0: i32) -> (i32, i32) {
    %c0_i32 = arith.constant 0 : i32
    %c0_i32_0 = arith.constant 0 : i32
    %c0_i32_1 = arith.constant 0 : i32
    return %c0_i32, %c0_i32_0 : i32, i32
  }
  func.func @transform_2(%arg0: i32) -> (i32, i32, i32) {
    %c0_i32 = arith.constant 0 : i32
    %c0_i32_0 = arith.constant 0 : i32
    %c0_i32_1 = arith.constant 0 : i32
    %c0_i32_2 = arith.constant 0 : i32
    return %c0_i32, %c0_i32_0, %c0_i32_1 : i32, i32, i32
  }
  func.func @transform_3(%arg0: i32) -> (i32, i32, i32) {
    %c0_i32 = arith.constant 0 : i32
    %c0_i32_0 = arith.constant 0 : i32
    %c0_i32_1 = arith.constant 0 : i32
    %c0_i32_2 = arith.constant 0 : i32
    return %c0_i32, %c0_i32_0, %c0_i32_1 : i32, i32, i32
  }
  func.func @transform_4(%arg0: i32) -> (i32, i32, i32) {
    %c0_i32 = arith.constant 0 : i32
    %c0_i32_0 = arith.constant 0 : i32
    %c0_i32_1 = arith.constant 0 : i32
    %c0_i32_2 = arith.constant 0 : i32
    return %c0_i32, %c0_i32_0, %c0_i32_1 : i32, i32, i32
  }
  func.func @transform_5(%arg0: i32) -> (i32, i32, i32) {
    %c0_i32 = arith.constant 0 : i32
    %c0_i32_0 = arith.constant 0 : i32
    %c0_i32_1 = arith.constant 0 : i32
    %c0_i32_2 = arith.constant 0 : i32
    return %c0_i32, %c0_i32_0, %c0_i32_1 : i32, i32, i32
  }
  func.func @transform_6(%arg0: i32) -> (i32, i32, i32) {
    %c0_i32 = arith.constant 0 : i32
    %c0_i32_0 = arith.constant 0 : i32
    %c0_i32_1 = arith.constant 0 : i32
    %c0_i32_2 = arith.constant 0 : i32
    return %c0_i32, %c0_i32_0, %c0_i32_1 : i32, i32, i32
  }
  func.func @transform_7(%arg0: i32) -> (i32, i32, i32) {
    %c0_i32 = arith.constant 0 : i32
    %c0_i32_0 = arith.constant 0 : i32
    %c0_i32_1 = arith.constant 0 : i32
    %c0_i32_2 = arith.constant 0 : i32
    return %c0_i32, %c0_i32_0, %c0_i32_1 : i32, i32, i32
  }
  func.func @transform_8(%arg0: i32) -> (i32, i32, i32) {
    %c0_i32 = arith.constant 0 : i32
    %c0_i32_0 = arith.constant 0 : i32
    %c0_i32_1 = arith.constant 0 : i32
    %c0_i32_2 = arith.constant 0 : i32
    return %c0_i32, %c0_i32_0, %c0_i32_1 : i32, i32, i32
  }
  func.func @transform_9(%arg0: i32) -> (i32, i32, i32) {
    %c0_i32 = arith.constant 0 : i32
    %c0_i32_0 = arith.constant 0 : i32
    %c0_i32_1 = arith.constant 0 : i32
    %c0_i32_2 = arith.constant 0 : i32
    return %c0_i32, %c0_i32_0, %c0_i32_1 : i32, i32, i32
  }
  func.func @transform_10(%arg0: i32) -> (i32, i32, i32) {
    %c0_i32 = arith.constant 0 : i32
    %c0_i32_0 = arith.constant 0 : i32
    %c0_i32_1 = arith.constant 0 : i32
    %c0_i32_2 = arith.constant 0 : i32
    return %c0_i32, %c0_i32_0, %c0_i32_1 : i32, i32, i32
  }
  func.func @transform_11(%arg0: i32) -> (i32, i32, i32) {
    %c0_i32 = arith.constant 0 : i32
    %c0_i32_0 = arith.constant 0 : i32
    %c0_i32_1 = arith.constant 0 : i32
    %c0_i32_2 = arith.constant 0 : i32
    return %c0_i32, %c0_i32_0, %c0_i32_1 : i32, i32, i32
  }
  func.func @transform_12(%arg0: i32) -> (i32, i32, i32) {
    %c0_i32 = arith.constant 0 : i32
    %c0_i32_0 = arith.constant 0 : i32
    %c0_i32_1 = arith.constant 0 : i32
    %c0_i32_2 = arith.constant 0 : i32
    return %c0_i32, %c0_i32_0, %c0_i32_1 : i32, i32, i32
  }
  func.func @transform_13(%arg0: i32) -> (i32, i32, i32) {
    %c0_i32 = arith.constant 0 : i32
    %c0_i32_0 = arith.constant 0 : i32
    %c0_i32_1 = arith.constant 0 : i32
    %c0_i32_2 = arith.constant 0 : i32
    return %c0_i32, %c0_i32_0, %c0_i32_1 : i32, i32, i32
  }
  func.func @transform_14(%arg0: i32) -> (i32, i32) {
    %c0_i32 = arith.constant 0 : i32
    %c0_i32_0 = arith.constant 0 : i32
    %c0_i32_1 = arith.constant 0 : i32
    return %c0_i32, %c0_i32_0 : i32, i32
  }
  func.func @transform_15(%arg0: i32) -> (i32, i32) {
    %c0_i32 = arith.constant 0 : i32
    %c0_i32_0 = arith.constant 0 : i32
    %c0_i32_1 = arith.constant 0 : i32
    return %c0_i32, %c0_i32_0 : i32, i32
  }
  func.func @transform_16(%arg0: i32) -> (i32, i32) {
    %c0_i32 = arith.constant 0 : i32
    %c0_i32_0 = arith.constant 0 : i32
    %c0_i32_1 = arith.constant 0 : i32
    return %c0_i32, %c0_i32_0 : i32, i32
  }
  func.func @transform_17(%arg0: i32) -> (i32, i32) {
    %c0_i32 = arith.constant 0 : i32
    %c0_i32_0 = arith.constant 0 : i32
    %c0_i32_1 = arith.constant 0 : i32
    return %c0_i32, %c0_i32_0 : i32, i32
  }
}

module attributes {stable_mosaic.version = 11 : i64} {
  func.func @_vit_kernel(%arg0: i32, %arg1: memref<10x192xf32, #tpu.memory_space<vmem>>, %arg2: memref<192x32xf32, #tpu.memory_space<vmem>>, %arg3: memref<10x32xf32, #tpu.memory_space<vmem>>, %arg4: memref<1x32xf32, #tpu.memory_space<vmem>>, %arg5: memref<1x32xf32, #tpu.memory_space<vmem>>, %arg6: memref<2x1x32xf32, #tpu.memory_space<vmem>>, %arg7: memref<2x1x32xf32, #tpu.memory_space<vmem>>, %arg8: memref<2x32x96xf32, #tpu.memory_space<vmem>>, %arg9: memref<2x1x96xf32, #tpu.memory_space<vmem>>, %arg10: memref<2x32x32xf32, #tpu.memory_space<vmem>>, %arg11: memref<2x1x32xf32, #tpu.memory_space<vmem>>, %arg12: memref<2x1x32xf32, #tpu.memory_space<vmem>>, %arg13: memref<2x1x32xf32, #tpu.memory_space<vmem>>, %arg14: memref<2x32x128xf32, #tpu.memory_space<vmem>>, %arg15: memref<2x1x128xf32, #tpu.memory_space<vmem>>, %arg16: memref<2x128x32xf32, #tpu.memory_space<vmem>>, %arg17: memref<2x1x32xf32, #tpu.memory_space<vmem>>, %arg18: memref<1x32xf32, #tpu.memory_space<vmem>>, %arg19: memref<1x32xf32, #tpu.memory_space<vmem>>, %arg20: memref<32x32xf32, #tpu.memory_space<vmem>>, %arg21: memref<2x32xf32, #tpu.memory_space<vmem>>) attributes {dimension_semantics = [#tpu.dimension_semantics<arbitrary>], iteration_bounds = array<i64: 1>, scalar_prefetch = 0 : i64, scratch_operands = 0 : i64, tpu.core_type = #tpu.core_type<tc>, window_params = [{pipeline_mode = #tpu.pipeline_mode<synchronous>, transform_indices = @transform_0, window_bounds = array<i64: 10, 192>}, {pipeline_mode = #tpu.pipeline_mode<synchronous>, transform_indices = @transform_1, window_bounds = array<i64: 192, 32>}, {pipeline_mode = #tpu.pipeline_mode<synchronous>, transform_indices = @transform_2, window_bounds = array<i64: 10, 32>}, {pipeline_mode = #tpu.pipeline_mode<synchronous>, transform_indices = @transform_3, window_bounds = array<i64: 1, 32>}, {pipeline_mode = #tpu.pipeline_mode<synchronous>, transform_indices = @transform_4, window_bounds = array<i64: 1, 32>}, {pipeline_mode = #tpu.pipeline_mode<synchronous>, transform_indices = @transform_5, window_bounds = array<i64: 2, 1, 32>}, {pipeline_mode = #tpu.pipeline_mode<synchronous>, transform_indices = @transform_6, window_bounds = array<i64: 2, 1, 32>}, {pipeline_mode = #tpu.pipeline_mode<synchronous>, transform_indices = @transform_7, window_bounds = array<i64: 2, 32, 96>}, {pipeline_mode = #tpu.pipeline_mode<synchronous>, transform_indices = @transform_8, window_bounds = array<i64: 2, 1, 96>}, {pipeline_mode = #tpu.pipeline_mode<synchronous>, transform_indices = @transform_9, window_bounds = array<i64: 2, 32, 32>}, {pipeline_mode = #tpu.pipeline_mode<synchronous>, transform_indices = @transform_10, window_bounds = array<i64: 2, 1, 32>}, {pipeline_mode = #tpu.pipeline_mode<synchronous>, transform_indices = @transform_11, window_bounds = array<i64: 2, 1, 32>}, {pipeline_mode = #tpu.pipeline_mode<synchronous>, transform_indices = @transform_12, window_bounds = array<i64: 2, 1, 32>}, {pipeline_mode = #tpu.pipeline_mode<synchronous>, transform_indices = @transform_13, window_bounds = array<i64: 2, 32, 128>}, {pipeline_mode = #tpu.pipeline_mode<synchronous>, transform_indices = @transform_14, window_bounds = array<i64: 2, 1, 128>}, {pipeline_mode = #tpu.pipeline_mode<synchronous>, transform_indices = @transform_15, window_bounds = array<i64: 2, 128, 32>}, {pipeline_mode = #tpu.pipeline_mode<synchronous>, transform_indices = @transform_16, window_bounds = array<i64: 2, 1, 32>}, {pipeline_mode = #tpu.pipeline_mode<synchronous>, transform_indices = @transform_17, window_bounds = array<i64: 1, 32>}, {pipeline_mode = #tpu.pipeline_mode<synchronous>, transform_indices = @transform_18, window_bounds = array<i64: 1, 32>}, {pipeline_mode = #tpu.pipeline_mode<synchronous>, transform_indices = @transform_19, window_bounds = array<i64: 32, 32>}, {pipeline_mode = #tpu.pipeline_mode<synchronous>, transform_indices = @transform_20, window_bounds = array<i64: 2, 32>}]} {
    %c0 = arith.constant 0 : index
    %c0_0 = arith.constant 0 : index
    %0 = vector.load %arg1[%c0, %c0_0] : memref<10x192xf32, #tpu.memory_space<vmem>>, vector<10x192xf32>
    %c0_1 = arith.constant 0 : index
    %c0_2 = arith.constant 0 : index
    %1 = vector.load %arg2[%c0_1, %c0_2] : memref<192x32xf32, #tpu.memory_space<vmem>>, vector<192x32xf32>
    %cst = arith.constant dense<0.000000e+00> : vector<10x32xf32>
    %2 = tpu.matmul %0, %1, %cst {dimension_numbers = #tpu.dot_dimension_numbers<[1], [0], [0], [1], [0, 0, 1, 1], [], []>} : vector<10x192xf32>, vector<192x32xf32>, vector<10x32xf32> -> vector<10x32xf32>
    %c0_3 = arith.constant 0 : index
    %c0_4 = arith.constant 0 : index
    %3 = vector.load %arg3[%c0_3, %c0_4] : memref<10x32xf32, #tpu.memory_space<vmem>>, vector<10x32xf32>
    %4 = arith.addf %2, %3 : vector<10x32xf32>
    %c0_5 = arith.constant 0 : index
    %c0_6 = arith.constant 0 : index
    %5 = vector.load %arg4[%c0_5, %c0_6] : memref<1x32xf32, #tpu.memory_space<vmem>>, vector<1x32xf32>
    %c0_7 = arith.constant 0 : index
    %c0_8 = arith.constant 0 : index
    %6 = vector.load %arg5[%c0_7, %c0_8] : memref<1x32xf32, #tpu.memory_space<vmem>>, vector<1x32xf32>
    %cst_9 = arith.constant dense<0.000000e+00> : vector<10xf32>
    %7 = vector.multi_reduction <add>, %4, %cst_9 [1] : vector<10x32xf32> to vector<10xf32>
    %8 = vector.shape_cast %7 : vector<10xf32> to vector<10x1xf32>
    %cst_10 = arith.constant 3.200000e+01 : f32
    %9 = vector.broadcast %cst_10 : f32 to vector<10x1xf32>
    %10 = arith.divf %8, %9 : vector<10x1xf32>
    %11 = vector.broadcast %10 : vector<10x1xf32> to vector<10x32xf32>
    %12 = arith.subf %4, %11 : vector<10x32xf32>
    %13 = arith.mulf %12, %12 : vector<10x32xf32>
    %cst_11 = arith.constant dense<0.000000e+00> : vector<10xf32>
    %14 = vector.multi_reduction <add>, %13, %cst_11 [1] : vector<10x32xf32> to vector<10xf32>
    %15 = vector.shape_cast %14 : vector<10xf32> to vector<10x1xf32>
    %cst_12 = arith.constant 3.200000e+01 : f32
    %16 = vector.broadcast %cst_12 : f32 to vector<10x1xf32>
    %17 = arith.divf %15, %16 : vector<10x1xf32>
    %18 = vector.broadcast %10 : vector<10x1xf32> to vector<10x32xf32>
    %19 = arith.subf %4, %18 : vector<10x32xf32>
    %cst_13 = arith.constant 9.99999974E-6 : f32
    %20 = vector.broadcast %cst_13 : f32 to vector<10x1xf32>
    %21 = arith.addf %17, %20 : vector<10x1xf32>
    %22 = math.rsqrt %21 : vector<10x1xf32>
    %23 = vector.broadcast %22 : vector<10x1xf32> to vector<10x32xf32>
    %24 = arith.mulf %19, %23 : vector<10x32xf32>
    %25 = vector.broadcast %5 : vector<1x32xf32> to vector<10x32xf32>
    %26 = arith.mulf %24, %25 : vector<10x32xf32>
    %27 = vector.broadcast %6 : vector<1x32xf32> to vector<10x32xf32>
    %28 = arith.addf %26, %27 : vector<10x32xf32>
    %29 = tpu.iota {dimensions = array<i32: 0>} : vector<10x10xi32>
    %30 = tpu.iota {dimensions = array<i32: 1>} : vector<10x10xi32>
    %31 = arith.sitofp %29 : vector<10x10xi32> to vector<10x10xf32>
    %cst_14 = arith.constant 2.000000e-01 : f32
    %32 = vector.broadcast %cst_14 : f32 to vector<10x10xf32>
    %33 = arith.mulf %31, %32 : vector<10x10xf32>
    %34 = math.floor %33 : vector<10x10xf32>
    %35 = arith.sitofp %30 : vector<10x10xi32> to vector<10x10xf32>
    %cst_15 = arith.constant 2.000000e-01 : f32
    %36 = vector.broadcast %cst_15 : f32 to vector<10x10xf32>
    %37 = arith.mulf %35, %36 : vector<10x10xf32>
    %38 = math.floor %37 : vector<10x10xf32>
    %39 = arith.cmpf oeq, %34, %38 : vector<10x10xf32>
    %cst_16 = arith.constant 0.000000e+00 : f32
    %cst_17 = arith.constant -1.000000e+09 : f32
    %40 = vector.broadcast %cst_16 : f32 to vector<10x10xf32>
    %41 = vector.broadcast %cst_17 : f32 to vector<10x10xf32>
    %42 = arith.select %39, %40, %41 : vector<10x10xi1>, vector<10x10xf32>
    %c0_18 = arith.constant 0 : index
    %c0_19 = arith.constant 0 : index
    %c0_20 = arith.constant 0 : index
    %43 = vector.load %arg6[%c0_18, %c0_19, %c0_20] : memref<2x1x32xf32, #tpu.memory_space<vmem>>, vector<1x1x32xf32>
    %44 = vector.shape_cast %43 : vector<1x1x32xf32> to vector<1x32xf32>
    %c0_21 = arith.constant 0 : index
    %c0_22 = arith.constant 0 : index
    %c0_23 = arith.constant 0 : index
    %45 = vector.load %arg7[%c0_21, %c0_22, %c0_23] : memref<2x1x32xf32, #tpu.memory_space<vmem>>, vector<1x1x32xf32>
    %46 = vector.shape_cast %45 : vector<1x1x32xf32> to vector<1x32xf32>
    %cst_24 = arith.constant dense<0.000000e+00> : vector<10xf32>
    %47 = vector.multi_reduction <add>, %28, %cst_24 [1] : vector<10x32xf32> to vector<10xf32>
    %48 = vector.shape_cast %47 : vector<10xf32> to vector<10x1xf32>
    %cst_25 = arith.constant 3.200000e+01 : f32
    %49 = vector.broadcast %cst_25 : f32 to vector<10x1xf32>
    %50 = arith.divf %48, %49 : vector<10x1xf32>
    %51 = vector.broadcast %50 : vector<10x1xf32> to vector<10x32xf32>
    %52 = arith.subf %28, %51 : vector<10x32xf32>
    %53 = arith.mulf %52, %52 : vector<10x32xf32>
    %cst_26 = arith.constant dense<0.000000e+00> : vector<10xf32>
    %54 = vector.multi_reduction <add>, %53, %cst_26 [1] : vector<10x32xf32> to vector<10xf32>
    %55 = vector.shape_cast %54 : vector<10xf32> to vector<10x1xf32>
    %cst_27 = arith.constant 3.200000e+01 : f32
    %56 = vector.broadcast %cst_27 : f32 to vector<10x1xf32>
    %57 = arith.divf %55, %56 : vector<10x1xf32>
    %58 = vector.broadcast %50 : vector<10x1xf32> to vector<10x32xf32>
    %59 = arith.subf %28, %58 : vector<10x32xf32>
    %cst_28 = arith.constant 9.99999974E-6 : f32
    %60 = vector.broadcast %cst_28 : f32 to vector<10x1xf32>
    %61 = arith.addf %57, %60 : vector<10x1xf32>
    %62 = math.rsqrt %61 : vector<10x1xf32>
    %63 = vector.broadcast %62 : vector<10x1xf32> to vector<10x32xf32>
    %64 = arith.mulf %59, %63 : vector<10x32xf32>
    %65 = vector.broadcast %44 : vector<1x32xf32> to vector<10x32xf32>
    %66 = arith.mulf %64, %65 : vector<10x32xf32>
    %67 = vector.broadcast %46 : vector<1x32xf32> to vector<10x32xf32>
    %68 = arith.addf %66, %67 : vector<10x32xf32>
    %c0_29 = arith.constant 0 : index
    %c0_30 = arith.constant 0 : index
    %c0_31 = arith.constant 0 : index
    %69 = vector.load %arg8[%c0_29, %c0_30, %c0_31] : memref<2x32x96xf32, #tpu.memory_space<vmem>>, vector<1x32x96xf32>
    %70 = vector.shape_cast %69 : vector<1x32x96xf32> to vector<32x96xf32>
    %cst_32 = arith.constant dense<0.000000e+00> : vector<10x96xf32>
    %71 = tpu.matmul %68, %70, %cst_32 {dimension_numbers = #tpu.dot_dimension_numbers<[1], [0], [0], [1], [0, 0, 1, 1], [], []>} : vector<10x32xf32>, vector<32x96xf32>, vector<10x96xf32> -> vector<10x96xf32>
    %c0_33 = arith.constant 0 : index
    %c0_34 = arith.constant 0 : index
    %c0_35 = arith.constant 0 : index
    %72 = vector.load %arg9[%c0_33, %c0_34, %c0_35] : memref<2x1x96xf32, #tpu.memory_space<vmem>>, vector<1x1x96xf32>
    %73 = vector.shape_cast %72 : vector<1x1x96xf32> to vector<1x96xf32>
    %74 = vector.broadcast %73 : vector<1x96xf32> to vector<10x96xf32>
    %75 = arith.addf %71, %74 : vector<10x96xf32>
    %c0_36 = arith.constant 0 : index
    %c0_37 = arith.constant 0 : index
    %c0_38 = arith.constant 0 : index
    %76 = vector.load %arg10[%c0_36, %c0_37, %c0_38] : memref<2x32x32xf32, #tpu.memory_space<vmem>>, vector<1x32x32xf32>
    %77 = vector.shape_cast %76 : vector<1x32x32xf32> to vector<32x32xf32>
    %78 = vector.extract_strided_slice %75 {offsets = [0, 0], sizes = [10, 16], strides = [1, 1]} : vector<10x96xf32> to vector<10x16xf32>
    %79 = vector.extract_strided_slice %75 {offsets = [0, 32], sizes = [10, 16], strides = [1, 1]} : vector<10x96xf32> to vector<10x16xf32>
    %80 = vector.extract_strided_slice %75 {offsets = [0, 64], sizes = [10, 16], strides = [1, 1]} : vector<10x96xf32> to vector<10x16xf32>
    %cst_39 = arith.constant dense<0.000000e+00> : vector<10x10xf32>
    %81 = tpu.matmul %78, %79, %cst_39 {dimension_numbers = #tpu.dot_dimension_numbers<[1], [1], [0], [0], [0, 0, 1, 0], [], []>} : vector<10x16xf32>, vector<10x16xf32>, vector<10x10xf32> -> vector<10x10xf32>
    %cst_40 = arith.constant 2.500000e-01 : f32
    %82 = vector.broadcast %cst_40 : f32 to vector<10x10xf32>
    %83 = arith.mulf %81, %82 : vector<10x10xf32>
    %84 = arith.addf %83, %42 : vector<10x10xf32>
    %cst_41 = arith.constant dense<0xFF800000> : vector<10xf32>
    %85 = vector.multi_reduction <maximumf>, %84, %cst_41 [1] : vector<10x10xf32> to vector<10xf32>
    %86 = vector.shape_cast %85 : vector<10xf32> to vector<10x1xf32>
    %87 = vector.broadcast %86 : vector<10x1xf32> to vector<10x10xf32>
    %88 = arith.subf %84, %87 : vector<10x10xf32>
    %89 = math.exp %88 : vector<10x10xf32>
    %cst_42 = arith.constant dense<0.000000e+00> : vector<10xf32>
    %90 = vector.multi_reduction <add>, %89, %cst_42 [1] : vector<10x10xf32> to vector<10xf32>
    %91 = vector.shape_cast %90 : vector<10xf32> to vector<10x1xf32>
    %92 = tpu.reciprocal %91 {approx = true} : vector<10x1xf32> -> vector<10x1xf32>
    %93 = vector.broadcast %92 : vector<10x1xf32> to vector<10x10xf32>
    %94 = arith.mulf %89, %93 : vector<10x10xf32>
    %cst_43 = arith.constant dense<0.000000e+00> : vector<10x16xf32>
    %95 = tpu.matmul %94, %80, %cst_43 {dimension_numbers = #tpu.dot_dimension_numbers<[1], [0], [0], [1], [0, 0, 1, 1], [], []>} : vector<10x10xf32>, vector<10x16xf32>, vector<10x16xf32> -> vector<10x16xf32>
    %96 = vector.extract_strided_slice %77 {offsets = [0, 0], sizes = [16, 32], strides = [1, 1]} : vector<32x32xf32> to vector<16x32xf32>
    %cst_44 = arith.constant dense<0.000000e+00> : vector<10x32xf32>
    %97 = tpu.matmul %95, %96, %cst_44 {dimension_numbers = #tpu.dot_dimension_numbers<[1], [0], [0], [1], [0, 0, 1, 1], [], []>} : vector<10x16xf32>, vector<16x32xf32>, vector<10x32xf32> -> vector<10x32xf32>
    %98 = vector.extract_strided_slice %75 {offsets = [0, 16], sizes = [10, 16], strides = [1, 1]} : vector<10x96xf32> to vector<10x16xf32>
    %99 = vector.extract_strided_slice %75 {offsets = [0, 48], sizes = [10, 16], strides = [1, 1]} : vector<10x96xf32> to vector<10x16xf32>
    %100 = vector.extract_strided_slice %75 {offsets = [0, 80], sizes = [10, 16], strides = [1, 1]} : vector<10x96xf32> to vector<10x16xf32>
    %cst_45 = arith.constant dense<0.000000e+00> : vector<10x10xf32>
    %101 = tpu.matmul %98, %99, %cst_45 {dimension_numbers = #tpu.dot_dimension_numbers<[1], [1], [0], [0], [0, 0, 1, 0], [], []>} : vector<10x16xf32>, vector<10x16xf32>, vector<10x10xf32> -> vector<10x10xf32>
    %cst_46 = arith.constant 2.500000e-01 : f32
    %102 = vector.broadcast %cst_46 : f32 to vector<10x10xf32>
    %103 = arith.mulf %101, %102 : vector<10x10xf32>
    %104 = arith.addf %103, %42 : vector<10x10xf32>
    %cst_47 = arith.constant dense<0xFF800000> : vector<10xf32>
    %105 = vector.multi_reduction <maximumf>, %104, %cst_47 [1] : vector<10x10xf32> to vector<10xf32>
    %106 = vector.shape_cast %105 : vector<10xf32> to vector<10x1xf32>
    %107 = vector.broadcast %106 : vector<10x1xf32> to vector<10x10xf32>
    %108 = arith.subf %104, %107 : vector<10x10xf32>
    %109 = math.exp %108 : vector<10x10xf32>
    %cst_48 = arith.constant dense<0.000000e+00> : vector<10xf32>
    %110 = vector.multi_reduction <add>, %109, %cst_48 [1] : vector<10x10xf32> to vector<10xf32>
    %111 = vector.shape_cast %110 : vector<10xf32> to vector<10x1xf32>
    %112 = tpu.reciprocal %111 {approx = true} : vector<10x1xf32> -> vector<10x1xf32>
    %113 = vector.broadcast %112 : vector<10x1xf32> to vector<10x10xf32>
    %114 = arith.mulf %109, %113 : vector<10x10xf32>
    %cst_49 = arith.constant dense<0.000000e+00> : vector<10x16xf32>
    %115 = tpu.matmul %114, %100, %cst_49 {dimension_numbers = #tpu.dot_dimension_numbers<[1], [0], [0], [1], [0, 0, 1, 1], [], []>} : vector<10x10xf32>, vector<10x16xf32>, vector<10x16xf32> -> vector<10x16xf32>
    %116 = vector.extract_strided_slice %77 {offsets = [16, 0], sizes = [16, 32], strides = [1, 1]} : vector<32x32xf32> to vector<16x32xf32>
    %cst_50 = arith.constant dense<0.000000e+00> : vector<10x32xf32>
    %117 = tpu.matmul %115, %116, %cst_50 {dimension_numbers = #tpu.dot_dimension_numbers<[1], [0], [0], [1], [0, 0, 1, 1], [], []>} : vector<10x16xf32>, vector<16x32xf32>, vector<10x32xf32> -> vector<10x32xf32>
    %118 = arith.addf %97, %117 : vector<10x32xf32>
    %119 = arith.addf %28, %118 : vector<10x32xf32>
    %c0_51 = arith.constant 0 : index
    %c0_52 = arith.constant 0 : index
    %c0_53 = arith.constant 0 : index
    %120 = vector.load %arg11[%c0_51, %c0_52, %c0_53] : memref<2x1x32xf32, #tpu.memory_space<vmem>>, vector<1x1x32xf32>
    %121 = vector.shape_cast %120 : vector<1x1x32xf32> to vector<1x32xf32>
    %122 = vector.broadcast %121 : vector<1x32xf32> to vector<10x32xf32>
    %123 = arith.addf %119, %122 : vector<10x32xf32>
    %c0_54 = arith.constant 0 : index
    %c0_55 = arith.constant 0 : index
    %c0_56 = arith.constant 0 : index
    %124 = vector.load %arg12[%c0_54, %c0_55, %c0_56] : memref<2x1x32xf32, #tpu.memory_space<vmem>>, vector<1x1x32xf32>
    %125 = vector.shape_cast %124 : vector<1x1x32xf32> to vector<1x32xf32>
    %c0_57 = arith.constant 0 : index
    %c0_58 = arith.constant 0 : index
    %c0_59 = arith.constant 0 : index
    %126 = vector.load %arg13[%c0_57, %c0_58, %c0_59] : memref<2x1x32xf32, #tpu.memory_space<vmem>>, vector<1x1x32xf32>
    %127 = vector.shape_cast %126 : vector<1x1x32xf32> to vector<1x32xf32>
    %cst_60 = arith.constant dense<0.000000e+00> : vector<10xf32>
    %128 = vector.multi_reduction <add>, %123, %cst_60 [1] : vector<10x32xf32> to vector<10xf32>
    %129 = vector.shape_cast %128 : vector<10xf32> to vector<10x1xf32>
    %cst_61 = arith.constant 3.200000e+01 : f32
    %130 = vector.broadcast %cst_61 : f32 to vector<10x1xf32>
    %131 = arith.divf %129, %130 : vector<10x1xf32>
    %132 = vector.broadcast %131 : vector<10x1xf32> to vector<10x32xf32>
    %133 = arith.subf %123, %132 : vector<10x32xf32>
    %134 = arith.mulf %133, %133 : vector<10x32xf32>
    %cst_62 = arith.constant dense<0.000000e+00> : vector<10xf32>
    %135 = vector.multi_reduction <add>, %134, %cst_62 [1] : vector<10x32xf32> to vector<10xf32>
    %136 = vector.shape_cast %135 : vector<10xf32> to vector<10x1xf32>
    %cst_63 = arith.constant 3.200000e+01 : f32
    %137 = vector.broadcast %cst_63 : f32 to vector<10x1xf32>
    %138 = arith.divf %136, %137 : vector<10x1xf32>
    %139 = vector.broadcast %131 : vector<10x1xf32> to vector<10x32xf32>
    %140 = arith.subf %123, %139 : vector<10x32xf32>
    %cst_64 = arith.constant 9.99999974E-6 : f32
    %141 = vector.broadcast %cst_64 : f32 to vector<10x1xf32>
    %142 = arith.addf %138, %141 : vector<10x1xf32>
    %143 = math.rsqrt %142 : vector<10x1xf32>
    %144 = vector.broadcast %143 : vector<10x1xf32> to vector<10x32xf32>
    %145 = arith.mulf %140, %144 : vector<10x32xf32>
    %146 = vector.broadcast %125 : vector<1x32xf32> to vector<10x32xf32>
    %147 = arith.mulf %145, %146 : vector<10x32xf32>
    %148 = vector.broadcast %127 : vector<1x32xf32> to vector<10x32xf32>
    %149 = arith.addf %147, %148 : vector<10x32xf32>
    %c0_65 = arith.constant 0 : index
    %c0_66 = arith.constant 0 : index
    %c0_67 = arith.constant 0 : index
    %150 = vector.load %arg14[%c0_65, %c0_66, %c0_67] : memref<2x32x128xf32, #tpu.memory_space<vmem>>, vector<1x32x128xf32>
    %151 = vector.shape_cast %150 : vector<1x32x128xf32> to vector<32x128xf32>
    %cst_68 = arith.constant dense<0.000000e+00> : vector<10x128xf32>
    %152 = tpu.matmul %149, %151, %cst_68 {dimension_numbers = #tpu.dot_dimension_numbers<[1], [0], [0], [1], [0, 0, 1, 1], [], []>} : vector<10x32xf32>, vector<32x128xf32>, vector<10x128xf32> -> vector<10x128xf32>
    %c0_69 = arith.constant 0 : index
    %c0_70 = arith.constant 0 : index
    %c0_71 = arith.constant 0 : index
    %153 = vector.load %arg15[%c0_69, %c0_70, %c0_71] : memref<2x1x128xf32, #tpu.memory_space<vmem>>, vector<1x1x128xf32>
    %154 = vector.shape_cast %153 : vector<1x1x128xf32> to vector<1x128xf32>
    %155 = vector.broadcast %154 : vector<1x128xf32> to vector<10x128xf32>
    %156 = arith.addf %152, %155 : vector<10x128xf32>
    %cst_72 = arith.constant -1.702000e+00 : f32
    %157 = vector.broadcast %cst_72 : f32 to vector<10x128xf32>
    %158 = arith.mulf %157, %156 : vector<10x128xf32>
    %159 = math.exp %158 : vector<10x128xf32>
    %cst_73 = arith.constant 1.000000e+00 : f32
    %160 = vector.broadcast %cst_73 : f32 to vector<10x128xf32>
    %161 = arith.addf %160, %159 : vector<10x128xf32>
    %cst_74 = arith.constant 1.000000e+00 : f32
    %162 = vector.broadcast %cst_74 : f32 to vector<10x128xf32>
    %163 = arith.divf %162, %161 : vector<10x128xf32>
    %164 = arith.mulf %156, %163 : vector<10x128xf32>
    %c0_75 = arith.constant 0 : index
    %c0_76 = arith.constant 0 : index
    %c0_77 = arith.constant 0 : index
    %165 = vector.load %arg16[%c0_75, %c0_76, %c0_77] : memref<2x128x32xf32, #tpu.memory_space<vmem>>, vector<1x128x32xf32>
    %166 = vector.shape_cast %165 : vector<1x128x32xf32> to vector<128x32xf32>
    %cst_78 = arith.constant dense<0.000000e+00> : vector<10x32xf32>
    %167 = tpu.matmul %164, %166, %cst_78 {dimension_numbers = #tpu.dot_dimension_numbers<[1], [0], [0], [1], [0, 0, 1, 1], [], []>} : vector<10x128xf32>, vector<128x32xf32>, vector<10x32xf32> -> vector<10x32xf32>
    %168 = arith.addf %123, %167 : vector<10x32xf32>
    %c0_79 = arith.constant 0 : index
    %c0_80 = arith.constant 0 : index
    %c0_81 = arith.constant 0 : index
    %169 = vector.load %arg17[%c0_79, %c0_80, %c0_81] : memref<2x1x32xf32, #tpu.memory_space<vmem>>, vector<1x1x32xf32>
    %170 = vector.shape_cast %169 : vector<1x1x32xf32> to vector<1x32xf32>
    %171 = vector.broadcast %170 : vector<1x32xf32> to vector<10x32xf32>
    %172 = arith.addf %168, %171 : vector<10x32xf32>
    %c1 = arith.constant 1 : index
    %c0_82 = arith.constant 0 : index
    %c0_83 = arith.constant 0 : index
    %173 = vector.load %arg6[%c1, %c0_82, %c0_83] : memref<2x1x32xf32, #tpu.memory_space<vmem>>, vector<1x1x32xf32>
    %174 = vector.shape_cast %173 : vector<1x1x32xf32> to vector<1x32xf32>
    %c1_84 = arith.constant 1 : index
    %c0_85 = arith.constant 0 : index
    %c0_86 = arith.constant 0 : index
    %175 = vector.load %arg7[%c1_84, %c0_85, %c0_86] : memref<2x1x32xf32, #tpu.memory_space<vmem>>, vector<1x1x32xf32>
    %176 = vector.shape_cast %175 : vector<1x1x32xf32> to vector<1x32xf32>
    %cst_87 = arith.constant dense<0.000000e+00> : vector<10xf32>
    %177 = vector.multi_reduction <add>, %172, %cst_87 [1] : vector<10x32xf32> to vector<10xf32>
    %178 = vector.shape_cast %177 : vector<10xf32> to vector<10x1xf32>
    %cst_88 = arith.constant 3.200000e+01 : f32
    %179 = vector.broadcast %cst_88 : f32 to vector<10x1xf32>
    %180 = arith.divf %178, %179 : vector<10x1xf32>
    %181 = vector.broadcast %180 : vector<10x1xf32> to vector<10x32xf32>
    %182 = arith.subf %172, %181 : vector<10x32xf32>
    %183 = arith.mulf %182, %182 : vector<10x32xf32>
    %cst_89 = arith.constant dense<0.000000e+00> : vector<10xf32>
    %184 = vector.multi_reduction <add>, %183, %cst_89 [1] : vector<10x32xf32> to vector<10xf32>
    %185 = vector.shape_cast %184 : vector<10xf32> to vector<10x1xf32>
    %cst_90 = arith.constant 3.200000e+01 : f32
    %186 = vector.broadcast %cst_90 : f32 to vector<10x1xf32>
    %187 = arith.divf %185, %186 : vector<10x1xf32>
    %188 = vector.broadcast %180 : vector<10x1xf32> to vector<10x32xf32>
    %189 = arith.subf %172, %188 : vector<10x32xf32>
    %cst_91 = arith.constant 9.99999974E-6 : f32
    %190 = vector.broadcast %cst_91 : f32 to vector<10x1xf32>
    %191 = arith.addf %187, %190 : vector<10x1xf32>
    %192 = math.rsqrt %191 : vector<10x1xf32>
    %193 = vector.broadcast %192 : vector<10x1xf32> to vector<10x32xf32>
    %194 = arith.mulf %189, %193 : vector<10x32xf32>
    %195 = vector.broadcast %174 : vector<1x32xf32> to vector<10x32xf32>
    %196 = arith.mulf %194, %195 : vector<10x32xf32>
    %197 = vector.broadcast %176 : vector<1x32xf32> to vector<10x32xf32>
    %198 = arith.addf %196, %197 : vector<10x32xf32>
    %c1_92 = arith.constant 1 : index
    %c0_93 = arith.constant 0 : index
    %c0_94 = arith.constant 0 : index
    %199 = vector.load %arg8[%c1_92, %c0_93, %c0_94] : memref<2x32x96xf32, #tpu.memory_space<vmem>>, vector<1x32x96xf32>
    %200 = vector.shape_cast %199 : vector<1x32x96xf32> to vector<32x96xf32>
    %cst_95 = arith.constant dense<0.000000e+00> : vector<10x96xf32>
    %201 = tpu.matmul %198, %200, %cst_95 {dimension_numbers = #tpu.dot_dimension_numbers<[1], [0], [0], [1], [0, 0, 1, 1], [], []>} : vector<10x32xf32>, vector<32x96xf32>, vector<10x96xf32> -> vector<10x96xf32>
    %c1_96 = arith.constant 1 : index
    %c0_97 = arith.constant 0 : index
    %c0_98 = arith.constant 0 : index
    %202 = vector.load %arg9[%c1_96, %c0_97, %c0_98] : memref<2x1x96xf32, #tpu.memory_space<vmem>>, vector<1x1x96xf32>
    %203 = vector.shape_cast %202 : vector<1x1x96xf32> to vector<1x96xf32>
    %204 = vector.broadcast %203 : vector<1x96xf32> to vector<10x96xf32>
    %205 = arith.addf %201, %204 : vector<10x96xf32>
    %c1_99 = arith.constant 1 : index
    %c0_100 = arith.constant 0 : index
    %c0_101 = arith.constant 0 : index
    %206 = vector.load %arg10[%c1_99, %c0_100, %c0_101] : memref<2x32x32xf32, #tpu.memory_space<vmem>>, vector<1x32x32xf32>
    %207 = vector.shape_cast %206 : vector<1x32x32xf32> to vector<32x32xf32>
    %208 = vector.extract_strided_slice %205 {offsets = [0, 0], sizes = [10, 16], strides = [1, 1]} : vector<10x96xf32> to vector<10x16xf32>
    %209 = vector.extract_strided_slice %205 {offsets = [0, 32], sizes = [10, 16], strides = [1, 1]} : vector<10x96xf32> to vector<10x16xf32>
    %210 = vector.extract_strided_slice %205 {offsets = [0, 64], sizes = [10, 16], strides = [1, 1]} : vector<10x96xf32> to vector<10x16xf32>
    %cst_102 = arith.constant dense<0.000000e+00> : vector<10x10xf32>
    %211 = tpu.matmul %208, %209, %cst_102 {dimension_numbers = #tpu.dot_dimension_numbers<[1], [1], [0], [0], [0, 0, 1, 0], [], []>} : vector<10x16xf32>, vector<10x16xf32>, vector<10x10xf32> -> vector<10x10xf32>
    %cst_103 = arith.constant 2.500000e-01 : f32
    %212 = vector.broadcast %cst_103 : f32 to vector<10x10xf32>
    %213 = arith.mulf %211, %212 : vector<10x10xf32>
    %214 = arith.addf %213, %42 : vector<10x10xf32>
    %cst_104 = arith.constant dense<0xFF800000> : vector<10xf32>
    %215 = vector.multi_reduction <maximumf>, %214, %cst_104 [1] : vector<10x10xf32> to vector<10xf32>
    %216 = vector.shape_cast %215 : vector<10xf32> to vector<10x1xf32>
    %217 = vector.broadcast %216 : vector<10x1xf32> to vector<10x10xf32>
    %218 = arith.subf %214, %217 : vector<10x10xf32>
    %219 = math.exp %218 : vector<10x10xf32>
    %cst_105 = arith.constant dense<0.000000e+00> : vector<10xf32>
    %220 = vector.multi_reduction <add>, %219, %cst_105 [1] : vector<10x10xf32> to vector<10xf32>
    %221 = vector.shape_cast %220 : vector<10xf32> to vector<10x1xf32>
    %222 = tpu.reciprocal %221 {approx = true} : vector<10x1xf32> -> vector<10x1xf32>
    %223 = vector.broadcast %222 : vector<10x1xf32> to vector<10x10xf32>
    %224 = arith.mulf %219, %223 : vector<10x10xf32>
    %cst_106 = arith.constant dense<0.000000e+00> : vector<10x16xf32>
    %225 = tpu.matmul %224, %210, %cst_106 {dimension_numbers = #tpu.dot_dimension_numbers<[1], [0], [0], [1], [0, 0, 1, 1], [], []>} : vector<10x10xf32>, vector<10x16xf32>, vector<10x16xf32> -> vector<10x16xf32>
    %226 = vector.extract_strided_slice %207 {offsets = [0, 0], sizes = [16, 32], strides = [1, 1]} : vector<32x32xf32> to vector<16x32xf32>
    %cst_107 = arith.constant dense<0.000000e+00> : vector<10x32xf32>
    %227 = tpu.matmul %225, %226, %cst_107 {dimension_numbers = #tpu.dot_dimension_numbers<[1], [0], [0], [1], [0, 0, 1, 1], [], []>} : vector<10x16xf32>, vector<16x32xf32>, vector<10x32xf32> -> vector<10x32xf32>
    %228 = vector.extract_strided_slice %205 {offsets = [0, 16], sizes = [10, 16], strides = [1, 1]} : vector<10x96xf32> to vector<10x16xf32>
    %229 = vector.extract_strided_slice %205 {offsets = [0, 48], sizes = [10, 16], strides = [1, 1]} : vector<10x96xf32> to vector<10x16xf32>
    %230 = vector.extract_strided_slice %205 {offsets = [0, 80], sizes = [10, 16], strides = [1, 1]} : vector<10x96xf32> to vector<10x16xf32>
    %cst_108 = arith.constant dense<0.000000e+00> : vector<10x10xf32>
    %231 = tpu.matmul %228, %229, %cst_108 {dimension_numbers = #tpu.dot_dimension_numbers<[1], [1], [0], [0], [0, 0, 1, 0], [], []>} : vector<10x16xf32>, vector<10x16xf32>, vector<10x10xf32> -> vector<10x10xf32>
    %cst_109 = arith.constant 2.500000e-01 : f32
    %232 = vector.broadcast %cst_109 : f32 to vector<10x10xf32>
    %233 = arith.mulf %231, %232 : vector<10x10xf32>
    %234 = arith.addf %233, %42 : vector<10x10xf32>
    %cst_110 = arith.constant dense<0xFF800000> : vector<10xf32>
    %235 = vector.multi_reduction <maximumf>, %234, %cst_110 [1] : vector<10x10xf32> to vector<10xf32>
    %236 = vector.shape_cast %235 : vector<10xf32> to vector<10x1xf32>
    %237 = vector.broadcast %236 : vector<10x1xf32> to vector<10x10xf32>
    %238 = arith.subf %234, %237 : vector<10x10xf32>
    %239 = math.exp %238 : vector<10x10xf32>
    %cst_111 = arith.constant dense<0.000000e+00> : vector<10xf32>
    %240 = vector.multi_reduction <add>, %239, %cst_111 [1] : vector<10x10xf32> to vector<10xf32>
    %241 = vector.shape_cast %240 : vector<10xf32> to vector<10x1xf32>
    %242 = tpu.reciprocal %241 {approx = true} : vector<10x1xf32> -> vector<10x1xf32>
    %243 = vector.broadcast %242 : vector<10x1xf32> to vector<10x10xf32>
    %244 = arith.mulf %239, %243 : vector<10x10xf32>
    %cst_112 = arith.constant dense<0.000000e+00> : vector<10x16xf32>
    %245 = tpu.matmul %244, %230, %cst_112 {dimension_numbers = #tpu.dot_dimension_numbers<[1], [0], [0], [1], [0, 0, 1, 1], [], []>} : vector<10x10xf32>, vector<10x16xf32>, vector<10x16xf32> -> vector<10x16xf32>
    %246 = vector.extract_strided_slice %207 {offsets = [16, 0], sizes = [16, 32], strides = [1, 1]} : vector<32x32xf32> to vector<16x32xf32>
    %cst_113 = arith.constant dense<0.000000e+00> : vector<10x32xf32>
    %247 = tpu.matmul %245, %246, %cst_113 {dimension_numbers = #tpu.dot_dimension_numbers<[1], [0], [0], [1], [0, 0, 1, 1], [], []>} : vector<10x16xf32>, vector<16x32xf32>, vector<10x32xf32> -> vector<10x32xf32>
    %248 = arith.addf %227, %247 : vector<10x32xf32>
    %249 = arith.addf %172, %248 : vector<10x32xf32>
    %c1_114 = arith.constant 1 : index
    %c0_115 = arith.constant 0 : index
    %c0_116 = arith.constant 0 : index
    %250 = vector.load %arg11[%c1_114, %c0_115, %c0_116] : memref<2x1x32xf32, #tpu.memory_space<vmem>>, vector<1x1x32xf32>
    %251 = vector.shape_cast %250 : vector<1x1x32xf32> to vector<1x32xf32>
    %252 = vector.broadcast %251 : vector<1x32xf32> to vector<10x32xf32>
    %253 = arith.addf %249, %252 : vector<10x32xf32>
    %c1_117 = arith.constant 1 : index
    %c0_118 = arith.constant 0 : index
    %c0_119 = arith.constant 0 : index
    %254 = vector.load %arg12[%c1_117, %c0_118, %c0_119] : memref<2x1x32xf32, #tpu.memory_space<vmem>>, vector<1x1x32xf32>
    %255 = vector.shape_cast %254 : vector<1x1x32xf32> to vector<1x32xf32>
    %c1_120 = arith.constant 1 : index
    %c0_121 = arith.constant 0 : index
    %c0_122 = arith.constant 0 : index
    %256 = vector.load %arg13[%c1_120, %c0_121, %c0_122] : memref<2x1x32xf32, #tpu.memory_space<vmem>>, vector<1x1x32xf32>
    %257 = vector.shape_cast %256 : vector<1x1x32xf32> to vector<1x32xf32>
    %cst_123 = arith.constant dense<0.000000e+00> : vector<10xf32>
    %258 = vector.multi_reduction <add>, %253, %cst_123 [1] : vector<10x32xf32> to vector<10xf32>
    %259 = vector.shape_cast %258 : vector<10xf32> to vector<10x1xf32>
    %cst_124 = arith.constant 3.200000e+01 : f32
    %260 = vector.broadcast %cst_124 : f32 to vector<10x1xf32>
    %261 = arith.divf %259, %260 : vector<10x1xf32>
    %262 = vector.broadcast %261 : vector<10x1xf32> to vector<10x32xf32>
    %263 = arith.subf %253, %262 : vector<10x32xf32>
    %264 = arith.mulf %263, %263 : vector<10x32xf32>
    %cst_125 = arith.constant dense<0.000000e+00> : vector<10xf32>
    %265 = vector.multi_reduction <add>, %264, %cst_125 [1] : vector<10x32xf32> to vector<10xf32>
    %266 = vector.shape_cast %265 : vector<10xf32> to vector<10x1xf32>
    %cst_126 = arith.constant 3.200000e+01 : f32
    %267 = vector.broadcast %cst_126 : f32 to vector<10x1xf32>
    %268 = arith.divf %266, %267 : vector<10x1xf32>
    %269 = vector.broadcast %261 : vector<10x1xf32> to vector<10x32xf32>
    %270 = arith.subf %253, %269 : vector<10x32xf32>
    %cst_127 = arith.constant 9.99999974E-6 : f32
    %271 = vector.broadcast %cst_127 : f32 to vector<10x1xf32>
    %272 = arith.addf %268, %271 : vector<10x1xf32>
    %273 = math.rsqrt %272 : vector<10x1xf32>
    %274 = vector.broadcast %273 : vector<10x1xf32> to vector<10x32xf32>
    %275 = arith.mulf %270, %274 : vector<10x32xf32>
    %276 = vector.broadcast %255 : vector<1x32xf32> to vector<10x32xf32>
    %277 = arith.mulf %275, %276 : vector<10x32xf32>
    %278 = vector.broadcast %257 : vector<1x32xf32> to vector<10x32xf32>
    %279 = arith.addf %277, %278 : vector<10x32xf32>
    %c1_128 = arith.constant 1 : index
    %c0_129 = arith.constant 0 : index
    %c0_130 = arith.constant 0 : index
    %280 = vector.load %arg14[%c1_128, %c0_129, %c0_130] : memref<2x32x128xf32, #tpu.memory_space<vmem>>, vector<1x32x128xf32>
    %281 = vector.shape_cast %280 : vector<1x32x128xf32> to vector<32x128xf32>
    %cst_131 = arith.constant dense<0.000000e+00> : vector<10x128xf32>
    %282 = tpu.matmul %279, %281, %cst_131 {dimension_numbers = #tpu.dot_dimension_numbers<[1], [0], [0], [1], [0, 0, 1, 1], [], []>} : vector<10x32xf32>, vector<32x128xf32>, vector<10x128xf32> -> vector<10x128xf32>
    %c1_132 = arith.constant 1 : index
    %c0_133 = arith.constant 0 : index
    %c0_134 = arith.constant 0 : index
    %283 = vector.load %arg15[%c1_132, %c0_133, %c0_134] : memref<2x1x128xf32, #tpu.memory_space<vmem>>, vector<1x1x128xf32>
    %284 = vector.shape_cast %283 : vector<1x1x128xf32> to vector<1x128xf32>
    %285 = vector.broadcast %284 : vector<1x128xf32> to vector<10x128xf32>
    %286 = arith.addf %282, %285 : vector<10x128xf32>
    %cst_135 = arith.constant -1.702000e+00 : f32
    %287 = vector.broadcast %cst_135 : f32 to vector<10x128xf32>
    %288 = arith.mulf %287, %286 : vector<10x128xf32>
    %289 = math.exp %288 : vector<10x128xf32>
    %cst_136 = arith.constant 1.000000e+00 : f32
    %290 = vector.broadcast %cst_136 : f32 to vector<10x128xf32>
    %291 = arith.addf %290, %289 : vector<10x128xf32>
    %cst_137 = arith.constant 1.000000e+00 : f32
    %292 = vector.broadcast %cst_137 : f32 to vector<10x128xf32>
    %293 = arith.divf %292, %291 : vector<10x128xf32>
    %294 = arith.mulf %286, %293 : vector<10x128xf32>
    %c1_138 = arith.constant 1 : index
    %c0_139 = arith.constant 0 : index
    %c0_140 = arith.constant 0 : index
    %295 = vector.load %arg16[%c1_138, %c0_139, %c0_140] : memref<2x128x32xf32, #tpu.memory_space<vmem>>, vector<1x128x32xf32>
    %296 = vector.shape_cast %295 : vector<1x128x32xf32> to vector<128x32xf32>
    %cst_141 = arith.constant dense<0.000000e+00> : vector<10x32xf32>
    %297 = tpu.matmul %294, %296, %cst_141 {dimension_numbers = #tpu.dot_dimension_numbers<[1], [0], [0], [1], [0, 0, 1, 1], [], []>} : vector<10x128xf32>, vector<128x32xf32>, vector<10x32xf32> -> vector<10x32xf32>
    %298 = arith.addf %253, %297 : vector<10x32xf32>
    %c1_142 = arith.constant 1 : index
    %c0_143 = arith.constant 0 : index
    %c0_144 = arith.constant 0 : index
    %299 = vector.load %arg17[%c1_142, %c0_143, %c0_144] : memref<2x1x32xf32, #tpu.memory_space<vmem>>, vector<1x1x32xf32>
    %300 = vector.shape_cast %299 : vector<1x1x32xf32> to vector<1x32xf32>
    %301 = vector.broadcast %300 : vector<1x32xf32> to vector<10x32xf32>
    %302 = arith.addf %298, %301 : vector<10x32xf32>
    %303 = tpu.iota {dimensions = array<i32: 0>} : vector<2x10xi32>
    %304 = tpu.iota {dimensions = array<i32: 1>} : vector<2x10xi32>
    %c5_i32 = arith.constant 5 : i32
    %305 = vector.broadcast %c5_i32 : i32 to vector<2x10xi32>
    %306 = arith.muli %303, %305 : vector<2x10xi32>
    %307 = arith.cmpi eq, %304, %306 : vector<2x10xi32>
    %cst_145 = arith.constant 1.000000e+00 : f32
    %cst_146 = arith.constant 0.000000e+00 : f32
    %308 = vector.broadcast %cst_145 : f32 to vector<2x10xf32>
    %309 = vector.broadcast %cst_146 : f32 to vector<2x10xf32>
    %310 = arith.select %307, %308, %309 : vector<2x10xi1>, vector<2x10xf32>
    %cst_147 = arith.constant dense<0.000000e+00> : vector<2x32xf32>
    %311 = tpu.matmul %310, %302, %cst_147 {dimension_numbers = #tpu.dot_dimension_numbers<[1], [0], [0], [1], [0, 0, 1, 1], [], []>} : vector<2x10xf32>, vector<10x32xf32>, vector<2x32xf32> -> vector<2x32xf32>
    %c0_148 = arith.constant 0 : index
    %c0_149 = arith.constant 0 : index
    %312 = vector.load %arg18[%c0_148, %c0_149] : memref<1x32xf32, #tpu.memory_space<vmem>>, vector<1x32xf32>
    %c0_150 = arith.constant 0 : index
    %c0_151 = arith.constant 0 : index
    %313 = vector.load %arg19[%c0_150, %c0_151] : memref<1x32xf32, #tpu.memory_space<vmem>>, vector<1x32xf32>
    %cst_152 = arith.constant dense<0.000000e+00> : vector<2xf32>
    %314 = vector.multi_reduction <add>, %311, %cst_152 [1] : vector<2x32xf32> to vector<2xf32>
    %315 = vector.shape_cast %314 : vector<2xf32> to vector<2x1xf32>
    %cst_153 = arith.constant 3.200000e+01 : f32
    %316 = vector.broadcast %cst_153 : f32 to vector<2x1xf32>
    %317 = arith.divf %315, %316 : vector<2x1xf32>
    %318 = vector.broadcast %317 : vector<2x1xf32> to vector<2x32xf32>
    %319 = arith.subf %311, %318 : vector<2x32xf32>
    %320 = arith.mulf %319, %319 : vector<2x32xf32>
    %cst_154 = arith.constant dense<0.000000e+00> : vector<2xf32>
    %321 = vector.multi_reduction <add>, %320, %cst_154 [1] : vector<2x32xf32> to vector<2xf32>
    %322 = vector.shape_cast %321 : vector<2xf32> to vector<2x1xf32>
    %cst_155 = arith.constant 3.200000e+01 : f32
    %323 = vector.broadcast %cst_155 : f32 to vector<2x1xf32>
    %324 = arith.divf %322, %323 : vector<2x1xf32>
    %325 = vector.broadcast %317 : vector<2x1xf32> to vector<2x32xf32>
    %326 = arith.subf %311, %325 : vector<2x32xf32>
    %cst_156 = arith.constant 9.99999974E-6 : f32
    %327 = vector.broadcast %cst_156 : f32 to vector<2x1xf32>
    %328 = arith.addf %324, %327 : vector<2x1xf32>
    %329 = math.rsqrt %328 : vector<2x1xf32>
    %330 = vector.broadcast %329 : vector<2x1xf32> to vector<2x32xf32>
    %331 = arith.mulf %326, %330 : vector<2x32xf32>
    %332 = vector.broadcast %312 : vector<1x32xf32> to vector<2x32xf32>
    %333 = arith.mulf %331, %332 : vector<2x32xf32>
    %334 = vector.broadcast %313 : vector<1x32xf32> to vector<2x32xf32>
    %335 = arith.addf %333, %334 : vector<2x32xf32>
    %c0_157 = arith.constant 0 : index
    %c0_158 = arith.constant 0 : index
    %336 = vector.load %arg20[%c0_157, %c0_158] : memref<32x32xf32, #tpu.memory_space<vmem>>, vector<32x32xf32>
    %cst_159 = arith.constant dense<0.000000e+00> : vector<2x32xf32>
    %337 = tpu.matmul %335, %336, %cst_159 {dimension_numbers = #tpu.dot_dimension_numbers<[1], [0], [0], [1], [0, 0, 1, 1], [], []>} : vector<2x32xf32>, vector<32x32xf32>, vector<2x32xf32> -> vector<2x32xf32>
    %c0_160 = arith.constant 0 : index
    %c0_161 = arith.constant 0 : index
    %338 = vector.load %arg21[%c0_160, %c0_161] : memref<2x32xf32, #tpu.memory_space<vmem>>, vector<2x32xf32>
    tpu.vector_store %arg21[%c0_160, %c0_161], %337 {strides = array<i32>} : memref<2x32xf32, #tpu.memory_space<vmem>>, vector<2x32xf32>,
    return
  }
  func.func @transform_0(%arg0: i32) -> (i32, i32) {
    %c0_i32 = arith.constant 0 : i32
    %c0_i32_0 = arith.constant 0 : i32
    %c0_i32_1 = arith.constant 0 : i32
    return %c0_i32, %c0_i32_0 : i32, i32
  }
  func.func @transform_1(%arg0: i32) -> (i32, i32) {
    %c0_i32 = arith.constant 0 : i32
    %c0_i32_0 = arith.constant 0 : i32
    %c0_i32_1 = arith.constant 0 : i32
    return %c0_i32, %c0_i32_0 : i32, i32
  }
  func.func @transform_2(%arg0: i32) -> (i32, i32) {
    %c0_i32 = arith.constant 0 : i32
    %c0_i32_0 = arith.constant 0 : i32
    %c0_i32_1 = arith.constant 0 : i32
    return %c0_i32, %c0_i32_0 : i32, i32
  }
  func.func @transform_3(%arg0: i32) -> (i32, i32) {
    %c0_i32 = arith.constant 0 : i32
    %c0_i32_0 = arith.constant 0 : i32
    %c0_i32_1 = arith.constant 0 : i32
    return %c0_i32, %c0_i32_0 : i32, i32
  }
  func.func @transform_4(%arg0: i32) -> (i32, i32) {
    %c0_i32 = arith.constant 0 : i32
    %c0_i32_0 = arith.constant 0 : i32
    %c0_i32_1 = arith.constant 0 : i32
    return %c0_i32, %c0_i32_0 : i32, i32
  }
  func.func @transform_5(%arg0: i32) -> (i32, i32, i32) {
    %c0_i32 = arith.constant 0 : i32
    %c0_i32_0 = arith.constant 0 : i32
    %c0_i32_1 = arith.constant 0 : i32
    %c0_i32_2 = arith.constant 0 : i32
    return %c0_i32, %c0_i32_0, %c0_i32_1 : i32, i32, i32
  }
  func.func @transform_6(%arg0: i32) -> (i32, i32, i32) {
    %c0_i32 = arith.constant 0 : i32
    %c0_i32_0 = arith.constant 0 : i32
    %c0_i32_1 = arith.constant 0 : i32
    %c0_i32_2 = arith.constant 0 : i32
    return %c0_i32, %c0_i32_0, %c0_i32_1 : i32, i32, i32
  }
  func.func @transform_7(%arg0: i32) -> (i32, i32, i32) {
    %c0_i32 = arith.constant 0 : i32
    %c0_i32_0 = arith.constant 0 : i32
    %c0_i32_1 = arith.constant 0 : i32
    %c0_i32_2 = arith.constant 0 : i32
    return %c0_i32, %c0_i32_0, %c0_i32_1 : i32, i32, i32
  }
  func.func @transform_8(%arg0: i32) -> (i32, i32, i32) {
    %c0_i32 = arith.constant 0 : i32
    %c0_i32_0 = arith.constant 0 : i32
    %c0_i32_1 = arith.constant 0 : i32
    %c0_i32_2 = arith.constant 0 : i32
    return %c0_i32, %c0_i32_0, %c0_i32_1 : i32, i32, i32
  }
  func.func @transform_9(%arg0: i32) -> (i32, i32, i32) {
    %c0_i32 = arith.constant 0 : i32
    %c0_i32_0 = arith.constant 0 : i32
    %c0_i32_1 = arith.constant 0 : i32
    %c0_i32_2 = arith.constant 0 : i32
    return %c0_i32, %c0_i32_0, %c0_i32_1 : i32, i32, i32
  }
  func.func @transform_10(%arg0: i32) -> (i32, i32, i32) {
    %c0_i32 = arith.constant 0 : i32
    %c0_i32_0 = arith.constant 0 : i32
    %c0_i32_1 = arith.constant 0 : i32
    %c0_i32_2 = arith.constant 0 : i32
    return %c0_i32, %c0_i32_0, %c0_i32_1 : i32, i32, i32
  }
  func.func @transform_11(%arg0: i32) -> (i32, i32, i32) {
    %c0_i32 = arith.constant 0 : i32
    %c0_i32_0 = arith.constant 0 : i32
    %c0_i32_1 = arith.constant 0 : i32
    %c0_i32_2 = arith.constant 0 : i32
    return %c0_i32, %c0_i32_0, %c0_i32_1 : i32, i32, i32
  }
  func.func @transform_12(%arg0: i32) -> (i32, i32, i32) {
    %c0_i32 = arith.constant 0 : i32
    %c0_i32_0 = arith.constant 0 : i32
    %c0_i32_1 = arith.constant 0 : i32
    %c0_i32_2 = arith.constant 0 : i32
    return %c0_i32, %c0_i32_0, %c0_i32_1 : i32, i32, i32
  }
  func.func @transform_13(%arg0: i32) -> (i32, i32, i32) {
    %c0_i32 = arith.constant 0 : i32
    %c0_i32_0 = arith.constant 0 : i32
    %c0_i32_1 = arith.constant 0 : i32
    %c0_i32_2 = arith.constant 0 : i32
    return %c0_i32, %c0_i32_0, %c0_i32_1 : i32, i32, i32
  }
  func.func @transform_14(%arg0: i32) -> (i32, i32, i32) {
    %c0_i32 = arith.constant 0 : i32
    %c0_i32_0 = arith.constant 0 : i32
    %c0_i32_1 = arith.constant 0 : i32
    %c0_i32_2 = arith.constant 0 : i32
    return %c0_i32, %c0_i32_0, %c0_i32_1 : i32, i32, i32
  }
  func.func @transform_15(%arg0: i32) -> (i32, i32, i32) {
    %c0_i32 = arith.constant 0 : i32
    %c0_i32_0 = arith.constant 0 : i32
    %c0_i32_1 = arith.constant 0 : i32
    %c0_i32_2 = arith.constant 0 : i32
    return %c0_i32, %c0_i32_0, %c0_i32_1 : i32, i32, i32
  }
  func.func @transform_16(%arg0: i32) -> (i32, i32, i32) {
    %c0_i32 = arith.constant 0 : i32
    %c0_i32_0 = arith.constant 0 : i32
    %c0_i32_1 = arith.constant 0 : i32
    %c0_i32_2 = arith.constant 0 : i32
    return %c0_i32, %c0_i32_0, %c0_i32_1 : i32, i32, i32
  }
  func.func @transform_17(%arg0: i32) -> (i32, i32) {
    %c0_i32 = arith.constant 0 : i32
    %c0_i32_0 = arith.constant 0 : i32
    %c0_i32_1 = arith.constant 0 : i32
    return %c0_i32, %c0_i32_0 : i32, i32
  }
  func.func @transform_18(%arg0: i32) -> (i32, i32) {
    %c0_i32 = arith.constant 0 : i32
    %c0_i32_0 = arith.constant 0 : i32
    %c0_i32_1 = arith.constant 0 : i32
    return %c0_i32, %c0_i32_0 : i32, i32
  }
  func.func @transform_19(%arg0: i32) -> (i32, i32) {
    %c0_i32 = arith.constant 0 : i32
    %c0_i32_0 = arith.constant 0 : i32
    %c0_i32_1 = arith.constant 0 : i32
    return %c0_i32, %c0_i32_0 : i32, i32
  }
  func.func @transform_20(%arg0: i32) -> (i32, i32) {
    %c0_i32 = arith.constant 0 : i32
    %c0_i32_0 = arith.constant 0 : i32
    %c0_i32_1 = arith.constant 0 : i32
    return %c0_i32, %c0_i32_0 : i32, i32
  }
}

module attributes {stable_mosaic.version = 11 : i64} {
  func.func @_logits_kernel(%arg0: i32, %arg1: memref<2x32xf32, #tpu.memory_space<vmem>>, %arg2: memref<3x32xf32, #tpu.memory_space<vmem>>, %arg3: memref<1x1xf32, #tpu.memory_space<smem>>, %arg4: memref<2x3xf32, #tpu.memory_space<vmem>>) attributes {dimension_semantics = [#tpu.dimension_semantics<arbitrary>], iteration_bounds = array<i64: 1>, scalar_prefetch = 0 : i64, scratch_operands = 0 : i64, tpu.core_type = #tpu.core_type<tc>, window_params = [{pipeline_mode = #tpu.pipeline_mode<synchronous>, transform_indices = @transform_0, window_bounds = array<i64: 2, 32>}, {pipeline_mode = #tpu.pipeline_mode<synchronous>, transform_indices = @transform_1, window_bounds = array<i64: 3, 32>}, {transform_indices = @transform_2, window_bounds = array<i64: 1, 1>}, {pipeline_mode = #tpu.pipeline_mode<synchronous>, transform_indices = @transform_3, window_bounds = array<i64: 2, 3>}]} {
    %c0 = arith.constant 0 : index
    %c0_0 = arith.constant 0 : index
    %0 = vector.load %arg1[%c0, %c0_0] : memref<2x32xf32, #tpu.memory_space<vmem>>, vector<2x32xf32>
    %c0_1 = arith.constant 0 : index
    %c0_2 = arith.constant 0 : index
    %1 = vector.load %arg2[%c0_1, %c0_2] : memref<3x32xf32, #tpu.memory_space<vmem>>, vector<3x32xf32>
    %2 = arith.mulf %0, %0 : vector<2x32xf32>
    %cst = arith.constant dense<0.000000e+00> : vector<2xf32>
    %3 = vector.multi_reduction <add>, %2, %cst [1] : vector<2x32xf32> to vector<2xf32>
    %4 = vector.shape_cast %3 : vector<2xf32> to vector<2x1xf32>
    %5 = math.rsqrt %4 : vector<2x1xf32>
    %6 = vector.broadcast %5 : vector<2x1xf32> to vector<2x32xf32>
    %7 = arith.mulf %0, %6 : vector<2x32xf32>
    %8 = arith.mulf %1, %1 : vector<3x32xf32>
    %cst_3 = arith.constant dense<0.000000e+00> : vector<3xf32>
    %9 = vector.multi_reduction <add>, %8, %cst_3 [1] : vector<3x32xf32> to vector<3xf32>
    %10 = vector.shape_cast %9 : vector<3xf32> to vector<3x1xf32>
    %11 = math.rsqrt %10 : vector<3x1xf32>
    %12 = vector.broadcast %11 : vector<3x1xf32> to vector<3x32xf32>
    %13 = arith.mulf %1, %12 : vector<3x32xf32>
    %c0_4 = arith.constant 0 : index
    %c0_5 = arith.constant 0 : index
    %14 = memref.load %arg3[%c0_4, %c0_5] : memref<1x1xf32, #tpu.memory_space<smem>>
    %15 = math.exp %14 : f32
    %cst_6 = arith.constant dense<0.000000e+00> : vector<2x3xf32>
    %16 = tpu.matmul %7, %13, %cst_6 {dimension_numbers = #tpu.dot_dimension_numbers<[1], [1], [0], [0], [0, 0, 1, 0], [], []>} : vector<2x32xf32>, vector<3x32xf32>, vector<2x3xf32> -> vector<2x3xf32>
    %17 = vector.broadcast %15 : f32 to vector<2x3xf32>
    %18 = arith.mulf %17, %16 : vector<2x3xf32>
    %c0_7 = arith.constant 0 : index
    %c0_8 = arith.constant 0 : index
    %19 = vector.load %arg4[%c0_7, %c0_8] : memref<2x3xf32, #tpu.memory_space<vmem>>, vector<2x3xf32>
    tpu.vector_store %arg4[%c0_7, %c0_8], %18 {strides = array<i32>} : memref<2x3xf32, #tpu.memory_space<vmem>>, vector<2x3xf32>,
    return
  }
  func.func @transform_0(%arg0: i32) -> (i32, i32) {
    %c0_i32 = arith.constant 0 : i32
    %c0_i32_0 = arith.constant 0 : i32
    %c0_i32_1 = arith.constant 0 : i32
    return %c0_i32, %c0_i32_0 : i32, i32
  }
  func.func @transform_1(%arg0: i32) -> (i32, i32) {
    %c0_i32 = arith.constant 0 : i32
    %c0_i32_0 = arith.constant 0 : i32
    %c0_i32_1 = arith.constant 0 : i32
    return %c0_i32, %c0_i32_0 : i32, i32
  }
  func.func @transform_2(%arg0: i32) -> (i32, i32) {
    %c0_i32 = arith.constant 0 : i32
    %c0_i32_0 = arith.constant 0 : i32
    %c0_i32_1 = arith.constant 0 : i32
    return %c0_i32, %c0_i32_0 : i32, i32
  }
  func.func @transform_3(%arg0: i32) -> (i32, i32) {
    %c0_i32 = arith.constant 0 : i32
    %c0_i32_0 = arith.constant 0 : i32
    %c0_i32_1 = arith.constant 0 : i32
    return %c0_i32, %c0_i32_0 : i32, i32
  }
}

</mosaic_0001>

<bundles_post_ra>
// kernel: tile.9
= control target key start
LH: loop header
LB: loop body
LE: loop exit
PB: predicated region body
PF: predicated region fallthrough
CT: control target
= control target key end

     0   :  { %vm3_vm0 = vcmask 261120   ;;  %s34_s0 = inlined_call_operand.vmem [shape: f32[2,5,32], index: 0, kind: input, shape index: {}]   ;;  %s35_s1 = inlined_call_operand.vmem [shape: f32[10,32], index: 1, kind: output, shape index: {}]  }
   0x1   :  { %v2_v0 = vld [vmem:[%s34_s0] sm:$0x1f]   ;;  %v10_v1 = vld [vmem:[%s34_s0 + $0x8] sm:$0x1f]  }
   0x2   :  { %4 = vst.msk [vmem:[%s35_s1] sm:$0x1f] %vm3_vm0, %v2_v0   ;;  %11 = vst.msk [vmem:[%s35_s1 + $0x5] sm:$0x1f] %vm3_vm0, %v10_v1  }

// kernel: custom_clip_forward.5
= control target key start
LH: loop header
LB: loop body
LE: loop exit
PB: predicated region body
PF: predicated region fallthrough
CT: control target
= control target key end

     0   :  { %vm26_vm0 = vcmask 256000   ;;  %s209_s0 = inlined_call_operand.vmem [shape: f32[2,32], index: 0, kind: input, shape index: {}]   ;;  %s210_s1 = inlined_call_operand.vmem [shape: f32[3,32], index: 1, kind: input, shape index: {}]   ;;  %s211_s2 = inlined_call_operand.<no memory space> [shape: f32[1,1], index: 2, kind: input, shape index: {}]   ;;  %s212_s3 = inlined_call_operand.hbm [shape: f32[2,3], index: 3, kind: output, shape index: {}]  }
   0x1   :  { %v17_v0 = vld [vmem:[%s210_s1] sm:$0x7] }
   0x2   :  { %v16_v1 = vld [vmem:[%s209_s0] sm:$0x3]  ;;  %v25_v2 = vmul.f32 %v17_v0, %v17_v0 }
   0x3   :  { %v18_v3 = vmul.f32 %v16_v1, %v16_v1 }
   0x4   :  { %9 = vsyncpa [#allocation4], 0  ;;  %vm19_vm1 = vcmask 254976   ;;  %v27_v4 = vsel %vm26_vm0, %v25_v2, 0.0  ;;  %v174_v6 = vmov 0.0   ;;  %vm175_vm2 = vmmov 0  }
   0x5   :  { %28 = vadd.xlane.f32.xlu0 %v27_v4  ;;  %v20_v5 = vsel %vm19_vm1, %v18_v3, 0.0  ;;  %136 = vmatprep.subr.mxu0 %v174_v6  ;;  %v33_v7 = vstv %s211_s2  ;;  %vm37_vm3 = vcmask 261120   ;;  %s176_s1 = smov [#allocation3]   ;;  %vm116_vm4 = vcmask 17408  }
   0x6   :  { %138 = vmatprep.mubr.msk.f32.mxu0 %vm175_vm2, %v174_v6  ;;  %v34_v8 = vmul.f32 1.442695, %v33_v7  ;;  %s124_s18 = sshll.u32 %s176_s1, 4  ;;  %s125_s18 = int_to_ptr.vmem [resolvable:$true] %s124_s18 }
   0x7   :  { %s152_s2 = scalar_lea.vmem %s125_s18, 32  ;;  %p157_p1 = scmp.lt.s32.totalorder %s125_s18, %s125_s18 }
   0x8   :  { %146 = vpow2.f32 %v34_v8  ;;  %p153_p0 = scmp.ne.s32.totalorder %s125_s18, %s152_s2  ;;  %p158_p2 = scmp.lt.s32.totalorder %s152_s2, %s152_s2 }
   0x9   :  { %21 = vadd.xlane.f32.xlu0 %v20_v5 }
   0xa   :  { %p159_p3 = por %p158_p2, %p157_p1 }
   0xc   :  { %p160_p4 = pnand %p159_p3, %p153_p0 }
  0x15   :  { %v147_v9 = vpop.eup %146 }
  0x16   :  { %141 = vpush %v147_v9 }
  0x47   :  { %s142_s0 = spop %141 }
  0x48   :  { %v114_v16 = vstv %s142_s0 }
  0x8e   :  { %v29_v10 = vpop.xlane.xlu0 %28 }
  0x8f   :  { %148 = vrsqrt.f32 %v29_v10 }
  0x92   :  { %v22_v11 = vpop.xlane.xlu0 %21 }
  0x93   :  { %150 = vrsqrt.f32 %v22_v11 }
  0x9c   :  { %v149_v12 = vpop.eup %148 }
  0x9d   :  { %v31_v13 = vmul.f32 %v149_v12, %v17_v0 }
  0x9f   :  { %137 = vmatpush3.xpose.msk.msra.mxu0 %vm37_vm3, %v31_v13 }
  0xa0   :  { %v151_v14 = vpop.eup %150 }
  0xa1   :  { %v24_v15 = vmul.f32 %v151_v14, %v16_v1 }
  0xa3   :  { %139 = vmatmul.mubr.msk.f32.vlgmr.msra.gmra.mxu0 %vm37_vm3, %v24_v15 }
 0x163   :  { %v110_v17 = vpop.f32.mrf.mxu0 }
 0x164   :  { %v115_v18 = vmul.f32 %v114_v16, %v110_v17 }
 0x165   :  { %v140_v19 = vpop.f32.mrf.mxu0 }
 0x166   :  { %117 = vst.msk [vmem:[#allocation3] sm:$0x3] %vm116_vm4, %v115_v18 }
 0x167   :  { %163 = shalt.err (!%p160_p4)
}
 0x168   :  { %127 = dma.vmem_to_hbm [thread:$0]  %s125_s18, 32, %s212_s3, [#allocation4]  }
 0x169   :  { %172 = dma.done.wait [#allocation4], 32  }
 0x16a   :  { %173 = vsyncadd [#allocation4], 4294967264 }
 0x16b   :  { %131 = vsyncpa [#allocation4], 1 }

// kernel: custom_clip_forward.3
= control target key start
LH: loop header
LB: loop body
LE: loop exit
PB: predicated region body
PF: predicated region fallthrough
CT: control target
= control target key end

     0   :  { %v2909_v0 = vmov 0.0   ;;  %vm95_vm0 = vcmask 523264   ;;  %vm179_vm1 = vcmask 261120   ;;  %vm183_vm2 = vcmask 254976   ;;  %s2912_s21 = smov 64   ;;  %s2913_s22 = smov 80   ;;  %s3606_s1 = inlined_call_operand.vmem [shape: f32[192,32], index: 1, kind: input, shape index: {}]   ;;  %s3607_s0 = inlined_call_operand.vmem [shape: f32[10,192], index: 0, kind: input, shape index: {}]   ;;  %s3608_s2 = inlined_call_operand.vmem [shape: f32[10,32], index: 2, kind: input, shape index: {}]   ;;  %s3609_s3 = inlined_call_operand.vmem [shape: f32[1,32], index: 3, kind: input, shape index: {}]   ;;  %s3610_s4 = inlined_call_operand.vmem [shape: f32[1,32], index: 4, kind: input, shape index: {}]   ;;  %s3611_s7 = inlined_call_operand.vmem [shape: f32[2,32,96], index: 7, kind: input, shape index: {}]   ;;  %s3612_s5 = inlined_call_operand.vmem [shape: f32[2,1,32], index: 5, kind: input, shape index: {}]   ;;  %s3613_s6 = inlined_call_operand.vmem [shape: f32[2,1,32], index: 6, kind: input, shape index: {}]   ;;  %s3614_s8 = inlined_call_operand.vmem [shape: f32[2,1,96], index: 8, kind: input, shape index: {}]   ;;  %s3615_s9 = inlined_call_operand.vmem [shape: f32[2,32,32], index: 9, kind: input, shape index: {}]   ;;  %s3616_s10 = inlined_call_operand.vmem [shape: f32[2,1,32], index: 10, kind: input, shape index: {}]   ;;  %s3617_s13 = inlined_call_operand.vmem [shape: f32[2,32,128], index: 13, kind: input, shape index: {}]   ;;  %s3618_s11 = inlined_call_operand.vmem [shape: f32[2,1,32], index: 11, kind: input, shape index: {}]   ;;  %s3619_s12 = inlined_call_operand.vmem [shape: f32[2,1,32], index: 12, kind: input, shape index: {}]   ;;  %s3620_s15 = inlined_call_operand.vmem [shape: f32[2,128,32], index: 15, kind: input, shape index: {}]   ;;  %s3621_s14 = inlined_call_operand.vmem [shape: f32[2,1,128], index: 14, kind: input, shape index: {}]   ;;  %s3622_s16 = inlined_call_operand.vmem [shape: f32[2,1,32], index: 16, kind: input, shape index: {}]   ;;  %s3623_s19 = inlined_call_operand.vmem [shape: f32[32,32], index: 19, kind: input, shape index: {}]   ;;  %s3624_s17 = inlined_call_operand.vmem [shape: f32[1,32], index: 17, kind: input, shape index: {}]   ;;  %s3625_s18 = inlined_call_operand.vmem [shape: f32[1,32], index: 18, kind: input, shape index: {}]   ;;  %s3626_s20 = inlined_call_operand.vmem [shape: f32[2,32], index: 20, kind: output, shape index: {}]  }
   0x1   :  { %3630 = sst [smem:[#allocation2_spill]] %s3606_s1  ;;  %102 = vmatprep.subr.mxu0 %v2909_v0  ;;  %vm388_vm3 = vcmask 130048   ;;  %vm480_vm6 = vcmask 74752   ;;  %vm476_vm7 = vcmask 80896   ;;  %s2914_s24 = smov 112   ;;  %vm511_vm8 = vcmask 1041408  }
   0x2   :  { %3631 = sst [smem:[#allocation3_spill]] %s3607_s0  ;;  %vm2916_vm9 = vmmov 0  }
   0x3   :  { %3632 = sst [smem:[#allocation4_spill]] %s3608_s2  ;;  %s2915_s2 = smov 48  }
   0x4   :  { %3633 = sst [smem:[#allocation5_spill]] %s3609_s3 }
   0x5   :  { %3634 = sst [smem:[#allocation6_spill]] %s3610_s4 }
   0x6   :  { %s3635_s23 = sld [smem:[#allocation2_spill]] }
   0x7   :  { %s3636_s0 = sld [smem:[#allocation3_spill]] }
   0x8   :  { %s3637_s3 = sld [smem:[#allocation4_spill]] }
   0x9   :  { %s3638_s4 = sld [smem:[#allocation5_spill]] }
   0xa   :  { %s3639_s1 = sld [smem:[#allocation6_spill]] }
   0xc   :  { %v84_v1 = vld [vmem:[%s3635_s23 + $0x78] sm:$0xff]  ;;  %v83_v2 = vld [vmem:[%s3635_s23 + $0x70] sm:$0xff]  ;;  %v82_v3 = vld [vmem:[%s3635_s23 + $0x68] sm:$0xff] }
   0xd   :  { %103 = vmatpush1.msra.mxu0 %v84_v1  ;;  %v81_v4 = vld [vmem:[%s3635_s23 + $0x60] sm:$0xff]  ;;  %v80_v5 = vld [vmem:[%s3635_s23 + $0x58] sm:$0xff]  ;;  %v79_v6 = vld [vmem:[%s3635_s23 + $0x50] sm:$0xff] }
   0xe   :  { %104 = vmatprep.subr.mxu0 %v2909_v0  ;;  %v66_v7 = vld [vmem:[%s3636_s0 + $0x8] sm:$0xff]  ;;  %v77_v9 = vld [vmem:[%s3635_s23 + $0x40] sm:$0xff]  ;;  %v76_v10 = vld [vmem:[%s3635_s23 + $0x38] sm:$0xff] }
   0xf   :  { %105 = vmatpush1.msra.mxu0 %v83_v2  ;;  %2394 = vmatprep.mubr.msk.f32.mxu0 %vm95_vm0, %v66_v7  ;;  %v78_v8 = vld [vmem:[%s3635_s23 + $0x48] sm:$0xff]  ;;  %v75_v11 = vld [vmem:[%s3635_s23 + $0x30] sm:$0xff]  ;;  %v73_v13 = vld [vmem:[%s3635_s23 + $0x20] sm:$0xff] }
  0x10   :  { %106 = vmatprep.subr.mxu0 %v2909_v0  ;;  %v74_v12 = vld [vmem:[%s3635_s23 + $0x28] sm:$0xff]  ;;  %v72_v14 = vld [vmem:[%s3635_s23 + $0x18] sm:$0xff]  ;;  %v71_v15 = vld [vmem:[%s3635_s23 + $0x10] sm:$0xff] }
  0x11   :  { %107 = vmatpush1.msra.mxu0 %v82_v3  ;;  %v70_v16 = vld [vmem:[%s3635_s23 + $0x8] sm:$0xff]  ;;  %v69_v17 = vld [vmem:[%s3635_s23] sm:$0xff]  ;;  %v92_v18 = vld [vmem:[%s3635_s23 + $0xb8] sm:$0xff] }
  0x12   :  { %108 = vmatprep.subr.mxu0 %v2909_v0  ;;  %v91_v19 = vld [vmem:[%s3635_s23 + $0xb0] sm:$0xff]  ;;  %v90_v20 = vld [vmem:[%s3635_s23 + $0xa8] sm:$0xff]  ;;  %v89_v21 = vld [vmem:[%s3635_s23 + $0xa0] sm:$0xff] }
  0x13   :  { %109 = vmatpush1.msra.mxu0 %v81_v4  ;;  %v88_v22 = vld [vmem:[%s3635_s23 + $0x98] sm:$0xff]  ;;  %v87_v23 = vld [vmem:[%s3635_s23 + $0x90] sm:$0xff]  ;;  %v86_v24 = vld [vmem:[%s3635_s23 + $0x88] sm:$0xff] }
  0x14   :  { %110 = vmatprep.subr.mxu0 %v2909_v0  ;;  %v85_v25 = vld [vmem:[%s3635_s23 + $0x80] sm:$0xff]  ;;  %v68_v27 = vld [vmem:[%s3636_s0 + $0x18] sm:$0x3]  ;;  %v67_v28 = vld [vmem:[%s3636_s0 + $0x10] sm:$0x3] }
  0x15   :  { %111 = vmatpush1.msra.mxu0 %v80_v5  ;;  %v65_v26 = vld [vmem:[%s3636_s0] sm:$0xff]  ;;  %v94_v33 = vld [vmem:[%s3637_s3 + $0x8] sm:$0x3] }
  0x16   :  { %112 = vmatprep.subr.mxu0 %v2909_v0  ;;  %v93_v29 = vld [vmem:[%s3637_s3] sm:$0xff] }
  0x17   :  { %113 = vmatpush1.msra.mxu0 %v79_v6  ;;  %v2396_v56 = vld [vmem:[%s3638_s4] ss:$0 sm:$0xff] }
  0x18   :  { %114 = vmatprep.subr.mxu0 %v2909_v0  ;;  %v2397_v58 = vld [vmem:[%s3639_s1] ss:$0 sm:$0xff]  ;;  %s2910_s1 = smov 96  }
  0x19   :  { %115 = vmatpush1.msra.mxu0 %v78_v8 }
  0x1a   :  { %116 = vmatprep.subr.mxu0 %v2909_v0 }
  0x1b   :  { %117 = vmatpush1.msra.mxu0 %v77_v9 }
  0x1c   :  { %118 = vmatprep.subr.mxu0 %v2909_v0 }
  0x1d   :  { %119 = vmatpush1.msra.mxu0 %v76_v10 }
  0x1e   :  { %120 = vmatprep.subr.mxu0 %v2909_v0 }
  0x1f   :  { %121 = vmatpush1.msra.mxu0 %v75_v11 }
  0x20   :  { %122 = vmatprep.subr.mxu0 %v2909_v0 }
  0x21   :  { %123 = vmatpush1.msra.mxu0 %v74_v12 }
  0x22   :  { %124 = vmatprep.subr.mxu0 %v2909_v0 }
  0x23   :  { %125 = vmatpush1.msra.mxu0 %v73_v13 }
  0x24   :  { %126 = vmatprep.subr.mxu0 %v2909_v0 }
  0x25   :  { %127 = vmatpush1.msra.mxu0 %v72_v14  ;;  %v289_v14 = vld [vmem:[%s3611_s7 + $0x18] sm:$0xff] }
  0x26   :  { %128 = vmatprep.subr.mxu0 %v2909_v0 }
  0x27   :  { %129 = vmatpush1.msra.mxu0 %v71_v15  ;;  %v288_v15 = vld [vmem:[%s3611_s7 + $0x10] sm:$0xff] }
  0x28   :  { %130 = vmatprep.subr.mxu0 %v2909_v0 }
  0x29   :  { %131 = vmatpush1.msra.mxu0 %v70_v16  ;;  %v287_v16 = vld [vmem:[%s3611_s7 + $0x8] sm:$0xff] }
  0x2a   :  { %132 = vmatprep.subr.mxu0 %v2909_v0 }
  0x2b   :  { %133 = vmatpush1.msra.mxu0 %v69_v17  ;;  %v286_v17 = vld [vmem:[%s3611_s7] sm:$0xff] }
  0x2c   :  { %150 = vmatprep.subr.mxu0 %v2909_v0 }
  0x2d   :  { %151 = vmatpush2.msra.mxu0 %v92_v18 }
  0x2e   :  { %152 = vmatprep.subr.mxu0 %v2909_v0 }
  0x2f   :  { %153 = vmatpush2.msra.mxu0 %v91_v19 }
  0x30   :  { %154 = vmatprep.subr.mxu0 %v2909_v0 }
  0x31   :  { %155 = vmatpush2.msra.mxu0 %v90_v20 }
  0x32   :  { %156 = vmatprep.subr.mxu0 %v2909_v0 }
  0x33   :  { %157 = vmatpush2.msra.mxu0 %v89_v21 }
  0x34   :  { %158 = vmatprep.subr.mxu0 %v2909_v0 }
  0x35   :  { %159 = vmatpush2.msra.mxu0 %v88_v22 }
  0x36   :  { %160 = vmatprep.subr.mxu0 %v2909_v0 }
  0x37   :  { %161 = vmatpush2.msra.mxu0 %v87_v23 }
  0x38   :  { %162 = vmatprep.subr.mxu0 %v2909_v0 }
  0x39   :  { %163 = vmatpush2.msra.mxu0 %v86_v24 }
  0x3a   :  { %164 = vmatprep.subr.mxu0 %v2909_v0 }
  0x3b   :  { %165 = vmatpush2.msra.mxu0 %v85_v25  ;;  %v2398_v25 = vld [vmem:[%s3612_s5] ss:$0 sm:$0xff] }
  0x3c   :  { %167 = vmatmul.mubr.f32.vlgmr.msra.gmra.mxu0 %v65_v26  ;;  %2615 = vmatprep.subr.mxu0 %v289_v14 }
  0x3d   :  { %2395 = vmatprep.mubr.msk.f32.mxu0 %vm95_vm0, %v68_v27  ;;  %2616 = vmatpush3.msra.mxu0 %v289_v14  ;;  %v2399_v27 = vld [vmem:[%s3613_s6] ss:$0 sm:$0xff] }
  0x3e   :  { %2617 = vmatprep.subr.mxu0 %v288_v15 }
  0x3f   :  { %2618 = vmatpush3.msra.mxu0 %v288_v15 }
  0x40   :  { %172 = vmatmul.mubr.f32.gmra.mxu0 %v67_v28  ;;  %2619 = vmatprep.subr.mxu0 %v287_v16 }
  0x41   :  { %2620 = vmatpush3.msra.mxu0 %v287_v16 }
  0x42   :  { %2621 = vmatprep.subr.mxu0 %v286_v17 }
  0x43   :  { %2622 = vmatpush3.msra.mxu0 %v286_v17 }
  0xfc   :  { %v168_v30 = vpop.f32.mrf.mxu0 }
  0xfd   :  { %v169_v31 = vadd.f32 %v168_v30, %v93_v29 }
  0xfe   :  { %v170_v32 = vpop.f32.mrf.mxu0 }
  0xff   :  { %v180_v34 = vsel %vm179_vm1, %v169_v31, 0.0 }
 0x100   :  { %v173_v35 = vpop.f32.mrf.mxu0  ;;  %181 = vadd.xlane.f32.xlu0 %v180_v34  ;;  %v2400_v34 = vld [vmem:[%s3614_s8] ss:$0 sm:$0xff] }
 0x101   :  { %v174_v36 = vadd.f32 %v173_v35, %v94_v33 }
 0x102   :  { %v175_v37 = vpop.f32.mrf.mxu0 }
 0x103   :  { %v184_v38 = vsel %vm183_vm2, %v174_v36, 0.0 }
 0x104   :  { %185 = vadd.xlane.f32.xlu0 %v184_v38 }
 0x189   :  { %v182_v39 = vpop.xlane.xlu0 %181 }
 0x18a   :  { %v188_v40 = vmul.f32 0.03125, %v182_v39 }
 0x18c   :  { %v190_v41 = vsub.f32 %v169_v31, %v188_v40 }
 0x18d   :  { %v186_v42 = vpop.xlane.xlu0 %185 }
 0x18e   :  { %v189_v43 = vmul.f32 0.03125, %v186_v42  ;;  %v192_v44 = vmul.f32 %v190_v41, %v190_v41 }
 0x190   :  { %v191_v45 = vsub.f32 %v174_v36, %v189_v43  ;;  %v194_v46 = vsel %vm179_vm1, %v192_v44, 0.0 }
 0x191   :  { %195 = vadd.xlane.f32.xlu1 %v194_v46 }
 0x192   :  { %v193_v47 = vmul.f32 %v191_v45, %v191_v45 }
 0x194   :  { %v197_v48 = vsel %vm183_vm2, %v193_v47, 0.0 }
 0x195   :  { %198 = vadd.xlane.f32.xlu1 %v197_v48 }
 0x21a   :  { %v196_v49 = vpop.xlane.xlu1 %195 }
 0x21b   :  { %v200_v50 = vmul.f32 0.03125, %v196_v49 }
 0x21d   :  { %v202_v51 = vadd.f32 1e-05, %v200_v50 }
 0x21e   :  { %v199_v52 = vpop.xlane.xlu1 %198 }
 0x21f   :  { %2839 = vrsqrt.f32 %v202_v51  ;;  %v201_v53 = vmul.f32 0.03125, %v199_v52 }
 0x221   :  { %v203_v54 = vadd.f32 1e-05, %v201_v53 }
 0x223   :  { %2841 = vrsqrt.f32 %v203_v54 }
 0x22c   :  { %v2840_v55 = vpop.eup %2839 }
 0x22d   :  { %v206_v57 = vmul.f32 %v2840_v55, %v190_v41  ;;  %v224_v41 = vlaneseq  ;;  %v2911_v55 = vmov -1e+09  }
 0x22f   :  { %v214_v59 = vmul.f32 %v2396_v56, %v206_v57  ;;  %v3199_v42 = vshrl.u32 %v224_v41, 7  ;;  %v3202_v44 = vand.u32 127, %v224_v41 }
 0x230   :  { %v2842_v60 = vpop.eup %2841 }
 0x231   :  { %v3148_v61 = vadd.f32 %v2397_v58, %v214_v59  ;;  %v207_v62 = vmul.f32 %v2842_v60, %v191_v45  ;;  %v226_v43 = vadd.s32 8, %v3199_v42  ;;  %v235_v46 = vcvt.s32.f32 %v3202_v44 }
 0x232   :  { %v229_v47 = vcvt.s32.f32 %v3199_v42 }
 0x233   :  { %v244_v63 = vsel %vm179_vm1, %v3148_v61, 0.0  ;;  %v215_v1 = vmul.f32 %v2396_v56, %v207_v62  ;;  %v230_v45 = vcvt.s32.f32 %v226_v43  ;;  %v236_v49 = vmul.f32 0.2, %v235_v46 }
 0x234   :  { %245 = vadd.xlane.f32.xlu0 %v244_v63  ;;  %v231_v50 = vmul.f32 0.2, %v229_v47 }
 0x235   :  { %v3152_v2 = vadd.f32 %v2397_v58, %v215_v1  ;;  %v232_v48 = vmul.f32 0.2, %v230_v45  ;;  %v237_v52 = vfloor.f32 %v236_v49 }
 0x236   :  { %v233_v53 = vfloor.f32 %v231_v50 }
 0x237   :  { %v247_v3 = vsel %vm183_vm2, %v3152_v2, 0.0  ;;  %v234_v51 = vfloor.f32 %v232_v48 }
 0x238   :  { %248 = vadd.xlane.f32.xlu1 %v247_v3  ;;  %vm238_vm5 = vcmp.eq.f32.partialorder %v233_v53, %v237_v52 }
 0x239   :  { %vm239_vm4 = vcmp.eq.f32.partialorder %v234_v51, %v237_v52  ;;  %v3208_v59 = vsel %vm238_vm5, 0.0, %v2911_v55 }
 0x23a   :  { %v3206_v56 = vsel %vm239_vm4, 0.0, %v2911_v55 }
 0x2bd   :  { %v246_v4 = vpop.xlane.xlu0 %245 }
 0x2be   :  { %v250_v5 = vmul.f32 0.03125, %v246_v4 }
 0x2c0   :  { %v252_v6 = vsub.f32 %v3148_v61, %v250_v5 }
 0x2c1   :  { %v249_v7 = vpop.xlane.xlu1 %248 }
 0x2c2   :  { %v251_v8 = vmul.f32 0.03125, %v249_v7  ;;  %v254_v9 = vmul.f32 %v252_v6, %v252_v6 }
 0x2c4   :  { %v253_v10 = vsub.f32 %v3152_v2, %v251_v8  ;;  %v256_v11 = vsel %vm179_vm1, %v254_v9, 0.0 }
 0x2c5   :  { %257 = vadd.xlane.f32.xlu0 %v256_v11 }
 0x2c6   :  { %v255_v12 = vmul.f32 %v253_v10, %v253_v10 }
 0x2c8   :  { %v259_v13 = vsel %vm183_vm2, %v255_v12, 0.0 }
 0x2c9   :  { %260 = vadd.xlane.f32.xlu1 %v259_v13 }
 0x34e   :  { %v258_v18 = vpop.xlane.xlu0 %257 }
 0x34f   :  { %v262_v19 = vmul.f32 0.03125, %v258_v18 }
 0x351   :  { %v264_v20 = vadd.f32 1e-05, %v262_v19 }
 0x352   :  { %v261_v21 = vpop.xlane.xlu1 %260 }
 0x353   :  { %2843 = vrsqrt.f32 %v264_v20  ;;  %v263_v22 = vmul.f32 0.03125, %v261_v21 }
 0x355   :  { %v265_v23 = vadd.f32 1e-05, %v263_v22 }
 0x357   :  { %2845 = vrsqrt.f32 %v265_v23 }
 0x360   :  { %v2844_v24 = vpop.eup %2843 }
 0x361   :  { %v268_v26 = vmul.f32 %v2844_v24, %v252_v6 }
 0x363   :  { %v276_v28 = vmul.f32 %v2398_v25, %v268_v26 }
 0x364   :  { %v2846_v29 = vpop.eup %2845 }
 0x365   :  { %v269_v30 = vmul.f32 %v2846_v29, %v253_v10  ;;  %v284_v31 = vadd.f32 %v2399_v27, %v276_v28 }
 0x367   :  { %v277_v32 = vmul.f32 %v2398_v25, %v269_v30  ;;  %2623 = vmatprep.mubr.msk.f32.mxu0 %vm179_vm1, %v284_v31 }
 0x369   :  { %v285_v33 = vadd.f32 %v2399_v27, %v277_v32 }
 0x36b   :  { %2624 = vmatmul.mubr.msk.f32.vlgmr.msra.gmra.mxu0 %vm179_vm1, %v285_v33 }
 0x42b   :  { %v2625_v35 = vpop.f32.mrf.mxu0 }
 0x42c   :  { %v3183_v36 = vadd.f32 %v2625_v35, %v2400_v34 }
 0x42d   :  { %v369_v37 = vpop.f32.mrf.mxu0 }
 0x42e   :  { %v3185_v38 = vadd.f32 %v2400_v34, %v369_v37  ;;  %386 = vrot.lane.b32.xlu0 %v3183_v36, %s2910_s1 }
 0x430   :  { %384 = vrot.lane.b32.xlu1 %v3185_v38, %s2910_s1  ;;  %2630 = vmatprep.mubr.msk.f32.mxu1 %vm388_vm3, %v3185_v38 }
 0x4a0   :  { %v387_v39 = vpop.permute.xlu0 %386 }
 0x4a1   :  { %2626 = vmatprep.subr.msk.mxu1 %vm388_vm3, %v387_v39 }
 0x4a2   :  { %2627 = vmatpush3.xpose.msk.msra.mxu1 %vm388_vm3, %v387_v39  ;;  %v385_v40 = vpop.permute.xlu1 %384 }
 0x4a3   :  { %2628 = vmatprep.subr.msk.mxu1 %vm388_vm3, %v385_v40 }
 0x4a6   :  { %2629 = vmatpush3.xpose.msk.msra.mxu1 %vm388_vm3, %v385_v40 }
 0x4a9   :  { %2631 = vmatmul.mubr.msk.f32.vlgmr.msra.gmra.mxu1 %vm388_vm3, %v3183_v36 }
 0x569   :  { %v2632_v54 = vpop.f32.mrf.mxu1 }
 0x56a   :  { %v473_v57 = vmul.f32 0.25, %v2632_v54 }
 0x56b   :  { %v463_v58 = vpop.f32.mrf.mxu1 }
 0x56c   :  { %v472_v60 = vmul.f32 0.25, %v463_v58  ;;  %v475_v62 = vadd.f32 %v473_v57, %v3206_v56  ;;  %v380_v58 = vld [vmem:[%s3615_s9 + $0x10] sm:$0xff] }
 0x56e   :  { %v481_v63 = vsel %vm480_vm6, %v475_v62, -inf  ;;  %v474_v1 = vadd.f32 %v472_v60, %v3208_v59  ;;  %v379_v60 = vld [vmem:[%s3615_s9 + $0x8] sm:$0xff] }
 0x56f   :  { %482 = vmax.xlane.f32.xlu0 %v481_v63 }
 0x570   :  { %v477_v3 = vsel %vm476_vm7, %v474_v1, -inf }
 0x571   :  { %478 = vmax.xlane.f32.xlu1 %v477_v3 }
 0x5f8   :  { %v483_v4 = vpop.xlane.xlu0 %482 }
 0x5f9   :  { %v485_v5 = vsub.f32 %v475_v62, %v483_v4 }
 0x5fa   :  { %v479_v6 = vpop.xlane.xlu1 %478 }
 0x5fb   :  { %v488_v7 = vmul.f32 1.442695, %v485_v5  ;;  %v484_v8 = vsub.f32 %v474_v1, %v479_v6  ;;  %v378_v1 = vld [vmem:[%s3615_s9] sm:$0xff] }
 0x5fd   :  { %2847 = vpow2.f32 %v488_v7  ;;  %v486_v9 = vmul.f32 1.442695, %v484_v8  ;;  %v2421_v7 = vld [vmem:[%s3616_s10] ss:$0 sm:$0xff] }
 0x5ff   :  { %2849 = vpow2.f32 %v486_v9 }
 0x60a   :  { %v2848_v10 = vpop.eup %2847 }
 0x60b   :  { %v493_v11 = vsel %vm480_vm6, %v2848_v10, 0.0 }
 0x60c   :  { %v2850_v12 = vpop.eup %2849  ;;  %494 = vadd.xlane.f32.xlu1 %v493_v11 }
 0x60d   :  { %v490_v13 = vsel %vm476_vm7, %v2850_v12, 0.0 }
 0x60e   :  { %491 = vadd.xlane.f32.xlu0 %v490_v13 }
 0x61d   :  { %500 = vrot.lane.b32.xlu1 %v3185_v38, %s2912_s21 }
 0x621   :  { %595 = vrot.lane.b32.xlu1 %v3183_v36, %s2913_s22 }
 0x624   :  { %502 = vrot.lane.b32.xlu0 %v3183_v36, %s2912_s21 }
 0x625   :  { %593 = vrot.lane.b32.xlu1 %v3185_v38, %s2913_s22 }
 0x628   :  { %589 = vrot.lane.b32.xlu0 %v3185_v38, %s2914_s24 }
 0x629   :  { %591 = vrot.lane.b32.xlu1 %v3183_v36, %s2914_s24 }
 0x695   :  { %v495_v14 = vpop.xlane.xlu1 %494 }
 0x696   :  { %2851 = vrcp.f32 %v495_v14 }
 0x697   :  { %v492_v15 = vpop.xlane.xlu0 %491 }
 0x698   :  { %2853 = vrcp.f32 %v492_v15 }
 0x699   :  { %v501_v16 = vpop.permute.xlu1 %500 }
 0x69b   :  { %v503_v17 = vpop.permute.xlu0 %502 }
 0x69c   :  { %2633 = vmatprep.subr.msk.mxu1 %vm511_vm8, %v503_v17 }
 0x69d   :  { %2634 = vmatpush3.msk.msra.mxu1 %vm511_vm8, %v503_v17  ;;  %v596_v18 = vpop.permute.xlu1 %595 }
 0x69e   :  { %2635 = vmatprep.subr.mxu1 %v501_v16 }
 0x69f   :  { %2636 = vmatpush3.msra.mxu1 %v501_v16  ;;  %v590_v23 = vpop.permute.xlu0 %589 }
 0x6a0   :  { %2640 = vmatprep.subr.msk.mxu1 %vm388_vm3, %v596_v18 }
 0x6a1   :  { %v594_v24 = vpop.permute.xlu1 %593 }
 0x6a3   :  { %v2852_v19 = vpop.eup %2851 }
 0x6a4   :  { %v499_v22 = vmul.f32 %v2852_v19, %v2848_v10 }
 0x6a5   :  { %v2854_v20 = vpop.eup %2853  ;;  %v592_v25 = vpop.permute.xlu1 %591 }
 0x6a6   :  { %v498_v21 = vmul.f32 %v2854_v20, %v2850_v12 }
 0x6a8   :  { %2637 = vmatprep.mubr.msk.f32.mxu1 %vm476_vm7, %v498_v21 }
 0x6a9   :  { %2638 = vmatmul.mubr.msk.f32.vlgmr.msra.gmra.mxu1 %vm476_vm7, %v499_v22 }
 0x6aa   :  { %2641 = vmatpush3.xpose.msk.msra.mxu1 %vm388_vm3, %v596_v18  ;;  %2644 = vmatprep.mubr.msk.f32.mxu1 %vm388_vm3, %v590_v23 }
 0x6ab   :  { %2642 = vmatprep.subr.msk.mxu1 %vm388_vm3, %v594_v24 }
 0x6ae   :  { %2643 = vmatpush3.xpose.msk.msra.mxu1 %vm388_vm3, %v594_v24  ;;  %v1014_v24 = vld [vmem:[%s3617_s13 + $0x18] sm:$0xff] }
 0x6b1   :  { %2645 = vmatmul.mubr.msk.f32.vlgmr.msra.gmra.mxu1 %vm388_vm3, %v592_v25  ;;  %v1013_v25 = vld [vmem:[%s3617_s13 + $0x10] sm:$0xff] }
 0x769   :  { %v3238_v26 = vpop.f32.mrf.mxu1 }
 0x76b   :  { %v580_v27 = vpop.f32.mrf.mxu1 }
 0x771   :  { %v2646_v28 = vpop.f32.mrf.mxu1 }
 0x772   :  { %v681_v29 = vmul.f32 0.25, %v2646_v28 }
 0x773   :  { %v671_v30 = vpop.f32.mrf.mxu1 }
 0x774   :  { %v680_v31 = vmul.f32 0.25, %v671_v30  ;;  %v683_v32 = vadd.f32 %v681_v29, %v3206_v56 }
 0x776   :  { %v687_v33 = vsel %vm480_vm6, %v683_v32, -inf  ;;  %v682_v34 = vadd.f32 %v680_v31, %v3208_v59 }
 0x777   :  { %688 = vmax.xlane.f32.xlu1 %v687_v33 }
 0x778   :  { %v684_v35 = vsel %vm476_vm7, %v682_v34, -inf }
 0x779   :  { %685 = vmax.xlane.f32.xlu0 %v684_v35  ;;  %v2422_v35 = vld [vmem:[%s3618_s11] ss:$0 sm:$0xff] }
 0x788   :  { %706 = vrot.lane.b32.xlu1 %v3185_v38, %s2915_s2 }
 0x800   :  { %v689_v37 = vpop.xlane.xlu1 %688 }
 0x801   :  { %v691_v39 = vsub.f32 %v683_v32, %v689_v37 }
 0x802   :  { %v686_v40 = vpop.xlane.xlu0 %685 }
 0x803   :  { %v694_v41 = vmul.f32 1.442695, %v691_v39  ;;  %v690_v43 = vsub.f32 %v682_v34, %v686_v40 }
 0x804   :  { %v707_v52 = vpop.permute.xlu1 %706 }
 0x805   :  { %2855 = vpow2.f32 %v694_v41  ;;  %v692_v45 = vmul.f32 1.442695, %v690_v43  ;;  %v2423_v43 = vld [vmem:[%s3619_s12] ss:$0 sm:$0xff] }
 0x807   :  { %2857 = vpow2.f32 %v692_v45 }
 0x812   :  { %v2856_v46 = vpop.eup %2855 }
 0x813   :  { %v699_v47 = vsel %vm480_vm6, %v2856_v46, 0.0 }
 0x814   :  { %v2858_v48 = vpop.eup %2857  ;;  %700 = vadd.xlane.f32.xlu0 %v699_v47 }
 0x815   :  { %v696_v49 = vsel %vm476_vm7, %v2858_v48, 0.0 }
 0x818   :  { %697 = vadd.xlane.f32.xlu0 %v696_v49  ;;  %v1131_v49 = vld [vmem:[%s3620_s15 + $0x70] sm:$0xff] }
 0x82e   :  { %708 = vrot.lane.b32.xlu0 %v3183_v36, %s2915_s2  ;;  %v381_v36 = vld [vmem:[%s3615_s9 + $0x18] sm:$0xff] }
 0x89d   :  { %v701_v38 = vpop.xlane.xlu0 %700 }
 0x89e   :  { %2859 = vrcp.f32 %v701_v38  ;;  %v1130_v38 = vld [vmem:[%s3620_s15 + $0x68] sm:$0xff] }
 0x8a1   :  { %v698_v50 = vpop.xlane.xlu0 %697 }
 0x8a2   :  { %2861 = vrcp.f32 %v698_v50  ;;  %v1129_v50 = vld [vmem:[%s3620_s15 + $0x60] sm:$0xff] }
 0x8a5   :  { %v709_v51 = vpop.permute.xlu0 %708 }
 0x8a6   :  { %2647 = vmatprep.subr.msk.mxu1 %vm511_vm8, %v709_v51 }
 0x8a7   :  { %2648 = vmatpush3.msk.msra.mxu1 %vm511_vm8, %v709_v51  ;;  %v1128_v51 = vld [vmem:[%s3620_s15 + $0x58] sm:$0xff] }
 0x8a8   :  { %2649 = vmatprep.subr.mxu1 %v707_v52 }
 0x8a9   :  { %2650 = vmatpush3.msra.mxu1 %v707_v52  ;;  %v1127_v52 = vld [vmem:[%s3620_s15 + $0x50] sm:$0xff] }
 0x8aa   :  { %2654 = vmatprep.subr.mxu1 %v381_v36 }
 0x8ab   :  { %v2860_v53 = vpop.eup %2859 }
 0x8ac   :  { %v705_v57 = vmul.f32 %v2860_v53, %v2856_v46  ;;  %v1126_v53 = vld [vmem:[%s3620_s15 + $0x48] sm:$0xff] }
 0x8af   :  { %v2862_v54 = vpop.eup %2861 }
 0x8b0   :  { %v704_v55 = vmul.f32 %v2862_v54, %v2858_v48  ;;  %v1132_v48 = vld [vmem:[%s3620_s15 + $0x78] sm:$0xff]  ;;  %v1125_v54 = vld [vmem:[%s3620_s15 + $0x40] sm:$0xff] }
 0x8b1   :  { %2679 = vmatprep.subr.mxu0 %v1132_v48 }
 0x8b2   :  { %2651 = vmatprep.mubr.msk.f32.mxu1 %vm476_vm7, %v704_v55  ;;  %2680 = vmatpush3.msra.mxu0 %v1132_v48  ;;  %v1124_v55 = vld [vmem:[%s3620_s15 + $0x38] sm:$0xff] }
 0x8b3   :  { %2652 = vmatmul.mubr.msk.f32.vlgmr.msra.gmra.mxu1 %vm476_vm7, %v705_v57  ;;  %2681 = vmatprep.subr.mxu0 %v1131_v49  ;;  %v1123_v57 = vld [vmem:[%s3620_s15 + $0x30] sm:$0xff] }
 0x8b4   :  { %2655 = vmatpush3.msra.mxu1 %v381_v36  ;;  %2682 = vmatpush3.msra.mxu0 %v1131_v49  ;;  %v1122_v36 = vld [vmem:[%s3620_s15 + $0x28] sm:$0xff] }
 0x8b5   :  { %2656 = vmatprep.subr.mxu1 %v380_v58  ;;  %2683 = vmatprep.subr.mxu0 %v1130_v38 }
 0x8b6   :  { %2657 = vmatpush3.msra.mxu1 %v380_v58  ;;  %2684 = vmatpush3.msra.mxu0 %v1130_v38  ;;  %v1121_v58 = vld [vmem:[%s3620_s15 + $0x20] sm:$0xff] }
 0x8b7   :  { %2661 = vmatprep.subr.mxu1 %v379_v60  ;;  %2685 = vmatprep.subr.mxu0 %v1129_v50 }
 0x8b8   :  { %2686 = vmatpush3.msra.mxu0 %v1129_v50 }
 0x8b9   :  { %2687 = vmatprep.subr.mxu0 %v1128_v51 }
 0x8ba   :  { %2688 = vmatpush3.msra.mxu0 %v1128_v51  ;;  %v2430_v51 = vld [vmem:[%s3612_s5 + $0x1] ss:$0 sm:$0xff] }
 0x8bb   :  { %2689 = vmatprep.subr.mxu0 %v1127_v52 }
 0x8bc   :  { %2690 = vmatpush3.msra.mxu0 %v1127_v52 }
 0x8bd   :  { %2691 = vmatprep.subr.mxu0 %v1126_v53 }
 0x8be   :  { %2692 = vmatpush3.msra.mxu0 %v1126_v53 }
 0x8bf   :  { %2693 = vmatprep.subr.mxu0 %v1125_v54 }
 0x8c0   :  { %2694 = vmatpush3.msra.mxu0 %v1125_v54 }
 0x8c1   :  { %2695 = vmatprep.subr.mxu0 %v1124_v55 }
 0x8c2   :  { %2696 = vmatpush3.msra.mxu0 %v1124_v55 }
 0x8c3   :  { %2697 = vmatprep.subr.mxu0 %v1123_v57 }
 0x8c4   :  { %2698 = vmatpush3.msra.mxu0 %v1123_v57  ;;  %v2431_v57 = vld [vmem:[%s3613_s6 + $0x1] ss:$0 sm:$0xff] }
 0x8c5   :  { %2699 = vmatprep.subr.mxu0 %v1122_v36 }
 0x8c6   :  { %2700 = vmatpush3.msra.mxu0 %v1122_v36 }
 0x8c7   :  { %2701 = vmatprep.subr.mxu0 %v1121_v58 }
 0x8c8   :  { %2702 = vmatpush3.msra.mxu0 %v1121_v58 }
 0x973   :  { %v2653_v62 = vpop.f32.mrf.mxu1 }
 0x975   :  { %v785_v63 = vpop.f32.mrf.mxu1 }
 0x976   :  { %2658 = vmatprep.mubr.msk.f32.mxu1 %vm388_vm3, %v785_v63  ;;  %v1118_v63 = vld [vmem:[%s3620_s15 + $0x8] sm:$0xff] }
 0x977   :  { %2659 = vmatmul.mubr.msk.f32.vlgmr.msra.gmra.mxu1 %vm388_vm3, %v2653_v62  ;;  %v1119_v62 = vld [vmem:[%s3620_s15 + $0x10] sm:$0xff] }
 0x978   :  { %2662 = vmatpush3.msra.mxu1 %v379_v60  ;;  %2665 = vmatprep.mubr.msk.f32.mxu1 %vm388_vm3, %v580_v27  ;;  %v1011_v27 = vld [vmem:[%s3617_s13] sm:$0xff]  ;;  %v1120_v60 = vld [vmem:[%s3620_s15 + $0x18] sm:$0xff] }
 0x979   :  { %2663 = vmatprep.subr.mxu1 %v378_v1  ;;  %2703 = vmatprep.subr.mxu0 %v1120_v60 }
 0x97a   :  { %2664 = vmatpush3.msra.mxu1 %v378_v1  ;;  %2704 = vmatpush3.msra.mxu0 %v1120_v60  ;;  %v1117_v1 = vld [vmem:[%s3620_s15] sm:$0xff] }
 0x97b   :  { %2666 = vmatmul.mubr.msk.f32.vlgmr.msra.gmra.mxu1 %vm388_vm3, %v3238_v26  ;;  %2668 = vmatprep.subr.mxu1 %v1014_v24  ;;  %v1012_v26 = vld [vmem:[%s3617_s13 + $0x8] sm:$0xff] }
 0x97c   :  { %2669 = vmatpush3.msra.mxu1 %v1014_v24  ;;  %2705 = vmatprep.subr.mxu0 %v1119_v62 }
 0x97d   :  { %2670 = vmatprep.subr.mxu1 %v1013_v25  ;;  %2706 = vmatpush3.msra.mxu0 %v1119_v62  ;;  %v2437_v62 = vld [vmem:[%s3614_s8 + $0x1] ss:$0 sm:$0xff] }
 0x97e   :  { %2671 = vmatpush3.msra.mxu1 %v1013_v25  ;;  %2707 = vmatprep.subr.mxu0 %v1118_v63 }
 0x97f   :  { %2672 = vmatprep.subr.mxu1 %v1012_v26  ;;  %2708 = vmatpush3.msra.mxu0 %v1118_v63 }
 0x980   :  { %2673 = vmatpush3.msra.mxu1 %v1012_v26  ;;  %2709 = vmatprep.subr.mxu0 %v1117_v1 }
 0x981   :  { %2674 = vmatprep.subr.mxu1 %v1011_v27  ;;  %2710 = vmatpush3.msra.mxu0 %v1117_v1 }
 0x982   :  { %2675 = vmatpush3.msra.mxu1 %v1011_v27 }
 0xa37   :  { %v2660_v3 = vpop.f32.mrf.mxu1 }
 0xa39   :  { %v866_v4 = vpop.f32.mrf.mxu1 }
 0xa3b   :  { %v2667_v5 = vpop.f32.mrf.mxu1 }
 0xa3c   :  { %v953_v6 = vadd.f32 %v2667_v5, %v2660_v3  ;;  %v2424_v3 = vld [vmem:[%s3621_s14] ss:$0 sm:$0xff] }
 0xa3d   :  { %v947_v8 = vpop.f32.mrf.mxu1 }
 0xa3e   :  { %v957_v9 = vadd.f32 %v953_v6, %v3152_v2  ;;  %v948_v10 = vadd.f32 %v947_v8, %v866_v4 }
 0xa40   :  { %v3275_v11 = vadd.f32 %v2421_v7, %v957_v9  ;;  %v956_v12 = vadd.f32 %v948_v10, %v3148_v61 }
 0xa42   :  { %v3278_v13 = vadd.f32 %v2421_v7, %v956_v12  ;;  %v972_v14 = vsel %vm183_vm2, %v3275_v11, 0.0 }
 0xa43   :  { %973 = vadd.xlane.f32.xlu0 %v972_v14 }
 0xa44   :  { %v969_v15 = vsel %vm179_vm1, %v3278_v13, 0.0 }
 0xa45   :  { %970 = vadd.xlane.f32.xlu1 %v969_v15 }
 0xacc   :  { %v974_v16 = vpop.xlane.xlu0 %973 }
 0xacd   :  { %v976_v17 = vmul.f32 0.03125, %v974_v16 }
 0xace   :  { %v971_v18 = vpop.xlane.xlu1 %970 }
 0xacf   :  { %v978_v2 = vsub.f32 %v3275_v11, %v976_v17  ;;  %v975_v19 = vmul.f32 0.03125, %v971_v18 }
 0xad1   :  { %v977_v20 = vsub.f32 %v3278_v13, %v975_v19  ;;  %v980_v21 = vmul.f32 %v978_v2, %v978_v2 }
 0xad3   :  { %v984_v61 = vsel %vm183_vm2, %v980_v21, 0.0  ;;  %v979_v22 = vmul.f32 %v977_v20, %v977_v20 }
 0xad4   :  { %985 = vadd.xlane.f32.xlu1 %v984_v61  ;;  %v2427_v61 = vld [vmem:[%s3622_s16] ss:$0 sm:$0xff] }
 0xad5   :  { %v981_v23 = vsel %vm179_vm1, %v979_v22, 0.0 }
 0xad6   :  { %982 = vadd.xlane.f32.xlu0 %v981_v23 }
 0xb5d   :  { %v986_v28 = vpop.xlane.xlu1 %985 }
 0xb5e   :  { %v988_v29 = vmul.f32 0.03125, %v986_v28 }
 0xb5f   :  { %v983_v30 = vpop.xlane.xlu0 %982 }
 0xb60   :  { %v990_v31 = vadd.f32 1e-05, %v988_v29  ;;  %v987_v32 = vmul.f32 0.03125, %v983_v30 }
 0xb62   :  { %2863 = vrsqrt.f32 %v990_v31  ;;  %v989_v33 = vadd.f32 1e-05, %v987_v32 }
 0xb64   :  { %2865 = vrsqrt.f32 %v989_v33 }
 0xb6f   :  { %v2864_v34 = vpop.eup %2863 }
 0xb70   :  { %v994_v37 = vmul.f32 %v2864_v34, %v978_v2 }
 0xb71   :  { %v2866_v39 = vpop.eup %2865 }
 0xb72   :  { %v993_v40 = vmul.f32 %v2866_v39, %v977_v20  ;;  %v1002_v41 = vmul.f32 %v2422_v35, %v994_v37  ;;  %v2435_v39 = vld [vmem:[%s3611_s7 + $0x38] sm:$0xff] }
 0xb73   :  { %2714 = vmatprep.subr.mxu1 %v2435_v39 }
 0xb74   :  { %v1001_v45 = vmul.f32 %v2422_v35, %v993_v40  ;;  %v1010_v47 = vadd.f32 %v2423_v43, %v1002_v41  ;;  %v2434_v40 = vld [vmem:[%s3611_s7 + $0x30] sm:$0xff]  ;;  %v2433_v41 = vld [vmem:[%s3611_s7 + $0x28] sm:$0xff] }
 0xb76   :  { %v1009_v46 = vadd.f32 %v2423_v43, %v1001_v45  ;;  %v2432_v43 = vld [vmem:[%s3611_s7 + $0x20] sm:$0xff] }
 0xb78   :  { %2676 = vmatprep.mubr.msk.f32.mxu1 %vm179_vm1, %v1009_v46 }
 0xb79   :  { %2677 = vmatmul.mubr.msk.f32.vlgmr.msra.gmra.mxu1 %vm179_vm1, %v1010_v47 }
 0xb7a   :  { %2715 = vmatpush3.msra.mxu1 %v2435_v39 }
 0xb7b   :  { %2716 = vmatprep.subr.mxu1 %v2434_v40 }
 0xb7c   :  { %2717 = vmatpush3.msra.mxu1 %v2434_v40 }
 0xb7d   :  { %2718 = vmatprep.subr.mxu1 %v2433_v41 }
 0xb7e   :  { %2719 = vmatpush3.msra.mxu1 %v2433_v41 }
 0xb7f   :  { %2720 = vmatprep.subr.mxu1 %v2432_v43 }
 0xb80   :  { %2721 = vmatpush3.msra.mxu1 %v2432_v43 }
 0xc39   :  { %v2678_v4 = vpop.f32.mrf.mxu1 }
 0xc3a   :  { %v1100_v5 = vadd.f32 %v2678_v4, %v2424_v3 }
 0xc3b   :  { %v1094_v6 = vpop.f32.mrf.mxu1 }
 0xc3c   :  { %v1104_v7 = vmul.f32 -1.702, %v1100_v5  ;;  %v1095_v8 = vadd.f32 %v2424_v3, %v1094_v6 }
 0xc3e   :  { %v1107_v9 = vmul.f32 1.442695, %v1104_v7  ;;  %v1103_v10 = vmul.f32 -1.702, %v1095_v8 }
 0xc40   :  { %2867 = vpow2.f32 %v1107_v9  ;;  %v1105_v12 = vmul.f32 1.442695, %v1103_v10 }
 0xc42   :  { %2869 = vpow2.f32 %v1105_v12 }
 0xc4d   :  { %v2868_v14 = vpop.eup %2867 }
 0xc4e   :  { %v1110_v15 = vadd.f32 1.0, %v2868_v14 }
 0xc4f   :  { %v2870_v16 = vpop.eup %2869 }
 0xc50   :  { %v1109_v17 = vadd.f32 1.0, %v2870_v16  ;;  %2871 = vrcp.f32 %v1110_v15 }
 0xc52   :  { %2873 = vrcp.f32 %v1109_v17 }
 0xc5d   :  { %v2872_v18 = vpop.eup %2871 }
 0xc5e   :  { %v1116_v20 = vmul.f32 %v2872_v18, %v1100_v5 }
 0xc5f   :  { %v2874_v2 = vpop.eup %2873 }
 0xc60   :  { %v1115_v19 = vmul.f32 %v2874_v2, %v1095_v8 }
 0xc62   :  { %2711 = vmatprep.mubr.f32.mxu0 %v1115_v19 }
 0xc63   :  { %2712 = vmatmul.mubr.f32.vlgmr.msra.gmra.mxu0 %v1116_v20 }
 0xd23   :  { %v2713_v21 = vpop.f32.mrf.mxu0 }
 0xd24   :  { %v1209_v22 = vadd.f32 %v2713_v21, %v3275_v11 }
 0xd25   :  { %v1199_v23 = vpop.f32.mrf.mxu0 }
 0xd26   :  { %v3363_v24 = vadd.f32 %v2427_v61, %v1209_v22  ;;  %v1208_v25 = vadd.f32 %v1199_v23, %v3278_v13 }
 0xd28   :  { %v3366_v26 = vadd.f32 %v2427_v61, %v1208_v25  ;;  %v1226_v27 = vsel %vm183_vm2, %v3363_v24, 0.0 }
 0xd29   :  { %1227 = vadd.xlane.f32.xlu1 %v1226_v27 }
 0xd2a   :  { %v1223_v28 = vsel %vm179_vm1, %v3366_v26, 0.0 }
 0xd2b   :  { %1224 = vadd.xlane.f32.xlu0 %v1223_v28 }
 0xdb2   :  { %v1228_v29 = vpop.xlane.xlu1 %1227 }
 0xdb3   :  { %v1230_v30 = vmul.f32 0.03125, %v1228_v29 }
 0xdb4   :  { %v1225_v31 = vpop.xlane.xlu0 %1224 }
 0xdb5   :  { %v1232_v11 = vsub.f32 %v3363_v24, %v1230_v30  ;;  %v1229_v32 = vmul.f32 0.03125, %v1225_v31 }
 0xdb7   :  { %v1231_v33 = vsub.f32 %v3366_v26, %v1229_v32  ;;  %v1234_v34 = vmul.f32 %v1232_v11, %v1232_v11 }
 0xdb9   :  { %v1238_v13 = vsel %vm183_vm2, %v1234_v34, 0.0  ;;  %v1233_v35 = vmul.f32 %v1231_v33, %v1231_v33 }
 0xdba   :  { %1239 = vadd.xlane.f32.xlu1 %v1238_v13 }
 0xdbb   :  { %v1235_v37 = vsel %vm179_vm1, %v1233_v35, 0.0 }
 0xdbc   :  { %1236 = vadd.xlane.f32.xlu0 %v1235_v37 }
 0xe43   :  { %v1240_v45 = vpop.xlane.xlu1 %1239 }
 0xe44   :  { %v1242_v46 = vmul.f32 0.03125, %v1240_v45 }
 0xe45   :  { %v1237_v47 = vpop.xlane.xlu0 %1236 }
 0xe46   :  { %v1244_v48 = vadd.f32 1e-05, %v1242_v46  ;;  %v1241_v49 = vmul.f32 0.03125, %v1237_v47 }
 0xe48   :  { %2875 = vrsqrt.f32 %v1244_v48  ;;  %v1243_v38 = vadd.f32 1e-05, %v1241_v49 }
 0xe4a   :  { %2877 = vrsqrt.f32 %v1243_v38 }
 0xe55   :  { %v2876_v50 = vpop.eup %2875 }
 0xe56   :  { %v1248_v52 = vmul.f32 %v2876_v50, %v1232_v11 }
 0xe57   :  { %v2878_v53 = vpop.eup %2877 }
 0xe58   :  { %v1247_v54 = vmul.f32 %v2878_v53, %v1231_v33  ;;  %v1256_v55 = vmul.f32 %v2430_v51, %v1248_v52 }
 0xe5a   :  { %v1255_v36 = vmul.f32 %v2430_v51, %v1247_v54  ;;  %v1264_v60 = vadd.f32 %v2431_v57, %v1256_v55 }
 0xe5c   :  { %v1263_v58 = vadd.f32 %v2431_v57, %v1255_v36 }
 0xe5e   :  { %2722 = vmatprep.mubr.msk.f32.mxu1 %vm179_vm1, %v1263_v58 }
 0xe5f   :  { %2723 = vmatmul.mubr.msk.f32.vlgmr.msra.gmra.mxu1 %vm179_vm1, %v1264_v60 }
 0xf1f   :  { %v2724_v63 = vpop.f32.mrf.mxu1 }
 0xf20   :  { %v3399_v1 = vadd.f32 %v2724_v63, %v2437_v62 }
 0xf21   :  { %v1350_v3 = vpop.f32.mrf.mxu1 }
 0xf22   :  { %v3401_v4 = vadd.f32 %v2437_v62, %v1350_v3  ;;  %1368 = vrot.lane.b32.xlu0 %v3399_v1, %s2910_s1  ;;  %v2441_v3 = vld [vmem:[%s3615_s9 + $0x28] sm:$0xff] }
 0xf24   :  { %1366 = vrot.lane.b32.xlu1 %v3401_v4, %s2910_s1  ;;  %2729 = vmatprep.mubr.msk.f32.mxu1 %vm388_vm3, %v3401_v4 }
 0xf94   :  { %v1369_v5 = vpop.permute.xlu0 %1368 }
 0xf95   :  { %2725 = vmatprep.subr.msk.mxu1 %vm388_vm3, %v1369_v5 }
 0xf96   :  { %2726 = vmatpush3.xpose.msk.msra.mxu1 %vm388_vm3, %v1369_v5  ;;  %v1367_v6 = vpop.permute.xlu1 %1366 }
 0xf97   :  { %2727 = vmatprep.subr.msk.mxu1 %vm388_vm3, %v1367_v6 }
 0xf9a   :  { %2728 = vmatpush3.xpose.msk.msra.mxu1 %vm388_vm3, %v1367_v6 }
 0xf9d   :  { %2730 = vmatmul.mubr.msk.f32.vlgmr.msra.gmra.mxu1 %vm388_vm3, %v3399_v1 }
0x105d   :  { %v2731_v7 = vpop.f32.mrf.mxu1 }
0x105e   :  { %v1454_v8 = vmul.f32 0.25, %v2731_v7  ;;  %v2440_v7 = vld [vmem:[%s3615_s9 + $0x20] sm:$0xff] }
0x105f   :  { %v1444_v9 = vpop.f32.mrf.mxu1 }
0x1060   :  { %v1453_v10 = vmul.f32 0.25, %v1444_v9  ;;  %v1456_v12 = vadd.f32 %v1454_v8, %v3206_v56  ;;  %v2443_v8 = vld [vmem:[%s3615_s9 + $0x38] sm:$0xff]  ;;  %v2442_v9 = vld [vmem:[%s3615_s9 + $0x30] sm:$0xff] }
0x1061   :  { %2753 = vmatprep.subr.mxu0 %v2443_v8 }
0x1062   :  { %v1460_v14 = vsel %vm480_vm6, %v1456_v12, -inf  ;;  %v1455_v15 = vadd.f32 %v1453_v10, %v3208_v59  ;;  %2754 = vmatpush3.msra.mxu0 %v2443_v8  ;;  %v2477_v8 = vld [vmem:[%s3620_s15 + $0x88] sm:$0xff] }
0x1063   :  { %1461 = vmax.xlane.f32.xlu0 %v1460_v14  ;;  %2755 = vmatprep.subr.mxu0 %v2442_v9 }
0x1064   :  { %v1457_v16 = vsel %vm476_vm7, %v1455_v15, -inf  ;;  %2756 = vmatpush3.msra.mxu0 %v2442_v9  ;;  %v2476_v9 = vld [vmem:[%s3620_s15 + $0x80] sm:$0xff] }
0x1065   :  { %1458 = vmax.xlane.f32.xlu1 %v1457_v16 }
0x10ec   :  { %v1462_v17 = vpop.xlane.xlu0 %1461 }
0x10ed   :  { %v1464_v18 = vsub.f32 %v1456_v12, %v1462_v17 }
0x10ee   :  { %v1459_v2 = vpop.xlane.xlu1 %1458 }
0x10ef   :  { %v1467_v19 = vmul.f32 1.442695, %v1464_v18  ;;  %v1463_v20 = vsub.f32 %v1455_v15, %v1459_v2  ;;  %v2463_v18 = vld [vmem:[%s3616_s10 + $0x1] ss:$0 sm:$0xff] }
0x10f1   :  { %2879 = vpow2.f32 %v1467_v19  ;;  %v1465_v21 = vmul.f32 1.442695, %v1463_v20 }
0x10f3   :  { %2881 = vpow2.f32 %v1465_v21 }
0x10fe   :  { %v2880_v61 = vpop.eup %2879 }
0x10ff   :  { %v1472_v22 = vsel %vm480_vm6, %v2880_v61, 0.0 }
0x1100   :  { %v2882_v23 = vpop.eup %2881  ;;  %1473 = vadd.xlane.f32.xlu1 %v1472_v22 }
0x1101   :  { %v1469_v25 = vsel %vm476_vm7, %v2882_v23, 0.0 }
0x1102   :  { %1470 = vadd.xlane.f32.xlu0 %v1469_v25 }
0x1111   :  { %1479 = vrot.lane.b32.xlu1 %v3401_v4, %s2912_s21 }
0x1115   :  { %1573 = vrot.lane.b32.xlu1 %v3399_v1, %s2913_s22 }
0x1118   :  { %1481 = vrot.lane.b32.xlu0 %v3399_v1, %s2912_s21 }
0x1119   :  { %1571 = vrot.lane.b32.xlu1 %v3401_v4, %s2913_s22 }
0x111c   :  { %1567 = vrot.lane.b32.xlu0 %v3401_v4, %s2914_s24 }
0x111d   :  { %1569 = vrot.lane.b32.xlu1 %v3399_v1, %s2914_s24 }
0x1189   :  { %v1474_v27 = vpop.xlane.xlu1 %1473 }
0x118a   :  { %2883 = vrcp.f32 %v1474_v27 }
0x118b   :  { %v1471_v28 = vpop.xlane.xlu0 %1470 }
0x118c   :  { %2885 = vrcp.f32 %v1471_v28 }
0x118d   :  { %v1480_v29 = vpop.permute.xlu1 %1479 }
0x118f   :  { %v1482_v30 = vpop.permute.xlu0 %1481 }
0x1190   :  { %2732 = vmatprep.subr.msk.mxu1 %vm511_vm8, %v1482_v30 }
0x1191   :  { %2733 = vmatpush3.msk.msra.mxu1 %vm511_vm8, %v1482_v30  ;;  %v1574_v31 = vpop.permute.xlu1 %1573 }
0x1192   :  { %2734 = vmatprep.subr.mxu1 %v1480_v29 }
0x1193   :  { %2735 = vmatpush3.msra.mxu1 %v1480_v29  ;;  %v1568_v13 = vpop.permute.xlu0 %1567 }
0x1194   :  { %2739 = vmatprep.subr.msk.mxu1 %vm388_vm3, %v1574_v31 }
0x1195   :  { %v1572_v35 = vpop.permute.xlu1 %1571 }
0x1197   :  { %v2884_v11 = vpop.eup %2883 }
0x1198   :  { %v1478_v34 = vmul.f32 %v2884_v11, %v2880_v61 }
0x1199   :  { %v2886_v32 = vpop.eup %2885  ;;  %v1570_v37 = vpop.permute.xlu1 %1569 }
0x119a   :  { %v1477_v33 = vmul.f32 %v2886_v32, %v2882_v23 }
0x119c   :  { %2736 = vmatprep.mubr.msk.f32.mxu1 %vm476_vm7, %v1477_v33 }
0x119d   :  { %2737 = vmatmul.mubr.msk.f32.vlgmr.msra.gmra.mxu1 %vm476_vm7, %v1478_v34  ;;  %v2471_v34 = vld [vmem:[%s3617_s13 + $0x38] sm:$0xff] }
0x119e   :  { %2740 = vmatpush3.xpose.msk.msra.mxu1 %vm388_vm3, %v1574_v31  ;;  %2743 = vmatprep.mubr.msk.f32.mxu1 %vm388_vm3, %v1568_v13  ;;  %v2470_v13 = vld [vmem:[%s3617_s13 + $0x30] sm:$0xff] }
0x119f   :  { %2741 = vmatprep.subr.msk.mxu1 %vm388_vm3, %v1572_v35  ;;  %2767 = vmatprep.subr.mxu0 %v2471_v34 }
0x11a2   :  { %2742 = vmatpush3.xpose.msk.msra.mxu1 %vm388_vm3, %v1572_v35  ;;  %v2469_v35 = vld [vmem:[%s3617_s13 + $0x28] sm:$0xff] }
0x11a5   :  { %2744 = vmatmul.mubr.msk.f32.vlgmr.msra.gmra.mxu1 %vm388_vm3, %v1570_v37  ;;  %v2468_v37 = vld [vmem:[%s3617_s13 + $0x20] sm:$0xff] }
0x125d   :  { %v2738_v39 = vpop.f32.mrf.mxu1 }
0x125f   :  { %v1558_v40 = vpop.f32.mrf.mxu1 }
0x1265   :  { %v2745_v41 = vpop.f32.mrf.mxu1 }
0x1266   :  { %v1659_v43 = vmul.f32 0.25, %v2745_v41 }
0x1267   :  { %v1649_v45 = vpop.f32.mrf.mxu1 }
0x1268   :  { %v1658_v46 = vmul.f32 0.25, %v1649_v45  ;;  %v1661_v47 = vadd.f32 %v1659_v43, %v3206_v56 }
0x126a   :  { %v1665_v48 = vsel %vm480_vm6, %v1661_v47, -inf  ;;  %v1660_v49 = vadd.f32 %v1658_v46, %v3208_v59 }
0x126b   :  { %1666 = vmax.xlane.f32.xlu1 %v1665_v48  ;;  %v2466_v48 = vld [vmem:[%s3618_s11 + $0x1] ss:$0 sm:$0xff] }
0x126c   :  { %v1662_v38 = vsel %vm476_vm7, %v1660_v49, -inf }
0x126d   :  { %1663 = vmax.xlane.f32.xlu0 %v1662_v38 }
0x127c   :  { %1684 = vrot.lane.b32.xlu1 %v3401_v4, %s2915_s2 }
0x12f4   :  { %v1667_v50 = vpop.xlane.xlu1 %1666 }
0x12f5   :  { %v1669_v51 = vsub.f32 %v1661_v47, %v1667_v50 }
0x12f6   :  { %v1664_v52 = vpop.xlane.xlu0 %1663 }
0x12f7   :  { %v1672_v53 = vmul.f32 1.442695, %v1669_v51  ;;  %v1668_v54 = vsub.f32 %v1660_v49, %v1664_v52  ;;  %v2467_v52 = vld [vmem:[%s3619_s12 + $0x1] ss:$0 sm:$0xff] }
0x12f8   :  { %v1685_v63 = vpop.permute.xlu1 %1684 }
0x12f9   :  { %2887 = vpow2.f32 %v1672_v53  ;;  %v1670_v55 = vmul.f32 1.442695, %v1668_v54 }
0x12fb   :  { %2889 = vpow2.f32 %v1670_v55 }
0x1306   :  { %v2888_v56 = vpop.eup %2887 }
0x1307   :  { %v1677_v57 = vsel %vm480_vm6, %v2888_v56, 0.0 }
0x1308   :  { %v2890_v36 = vpop.eup %2889  ;;  %1678 = vadd.xlane.f32.xlu0 %v1677_v57  ;;  %v2490_v57 = vld [vmem:[%s3620_s15 + $0xf0] sm:$0xff] }
0x1309   :  { %v1674_v59 = vsel %vm476_vm7, %v2890_v36, 0.0 }
0x130c   :  { %1675 = vadd.xlane.f32.xlu0 %v1674_v59  ;;  %v2488_v59 = vld [vmem:[%s3620_s15 + $0xe0] sm:$0xff] }
0x1322   :  { %1686 = vrot.lane.b32.xlu0 %v3399_v1, %s2915_s2 }
0x1391   :  { %v1679_v58 = vpop.xlane.xlu0 %1678 }
0x1392   :  { %2891 = vrcp.f32 %v1679_v58  ;;  %v2487_v58 = vld [vmem:[%s3620_s15 + $0xd8] sm:$0xff] }
0x1395   :  { %v1676_v60 = vpop.xlane.xlu0 %1675 }
0x1396   :  { %2893 = vrcp.f32 %v1676_v60  ;;  %v2486_v60 = vld [vmem:[%s3620_s15 + $0xd0] sm:$0xff] }
0x1399   :  { %v1687_v62 = vpop.permute.xlu0 %1686 }
0x139a   :  { %2746 = vmatprep.subr.msk.mxu1 %vm511_vm8, %v1687_v62 }
0x139b   :  { %2747 = vmatpush3.msk.msra.mxu1 %vm511_vm8, %v1687_v62  ;;  %v2485_v62 = vld [vmem:[%s3620_s15 + $0xc8] sm:$0xff] }
0x139c   :  { %2748 = vmatprep.subr.mxu1 %v1685_v63 }
0x139d   :  { %2749 = vmatpush3.msra.mxu1 %v1685_v63  ;;  %v2484_v63 = vld [vmem:[%s3620_s15 + $0xc0] sm:$0xff] }
0x139e   :  { %2760 = vmatprep.subr.mxu1 %v2441_v3 }
0x139f   :  { %v2892_v4 = vpop.eup %2891 }
0x13a0   :  { %v1683_v6 = vmul.f32 %v2892_v4, %v2888_v56  ;;  %v2491_v56 = vld [vmem:[%s3620_s15 + $0xf8] sm:$0xff]  ;;  %v2482_v4 = vld [vmem:[%s3620_s15 + $0xb0] sm:$0xff] }
0x13a3   :  { %v2894_v5 = vpop.eup %2893 }
0x13a4   :  { %v1682_v1 = vmul.f32 %v2894_v5, %v2890_v36  ;;  %v2489_v36 = vld [vmem:[%s3620_s15 + $0xe8] sm:$0xff] }
0x13a5   :  { %v2481_v5 = vld [vmem:[%s3620_s15 + $0xa8] sm:$0xff] }
0x13a6   :  { %2750 = vmatprep.mubr.msk.f32.mxu1 %vm476_vm7, %v1682_v1  ;;  %v2480_v1 = vld [vmem:[%s3620_s15 + $0xa0] sm:$0xff] }
0x13a7   :  { %2751 = vmatmul.mubr.msk.f32.vlgmr.msra.gmra.mxu1 %vm476_vm7, %v1683_v6  ;;  %v2479_v6 = vld [vmem:[%s3620_s15 + $0x98] sm:$0xff] }
0x13a8   :  { %2761 = vmatpush3.msra.mxu1 %v2441_v3  ;;  %2764 = vmatprep.mubr.msk.f32.mxu1 %vm388_vm3, %v1558_v40  ;;  %v2483_v3 = vld [vmem:[%s3620_s15 + $0xb8] sm:$0xff] }
0x13a9   :  { %2762 = vmatprep.subr.mxu1 %v2440_v7 }
0x13aa   :  { %2763 = vmatpush3.msra.mxu1 %v2440_v7  ;;  %v2478_v7 = vld [vmem:[%s3620_s15 + $0x90] sm:$0xff] }
0x13ab   :  { %2765 = vmatmul.mubr.msk.f32.vlgmr.msra.gmra.mxu1 %vm388_vm3, %v2738_v39  ;;  %2778 = vmatprep.subr.mxu1 %v2491_v56 }
0x13ac   :  { %2779 = vmatpush3.msra.mxu1 %v2491_v56 }
0x13ad   :  { %2780 = vmatprep.subr.mxu1 %v2490_v57 }
0x13ae   :  { %2781 = vmatpush3.msra.mxu1 %v2490_v57 }
0x13af   :  { %2782 = vmatprep.subr.mxu1 %v2489_v36 }
0x13b0   :  { %2783 = vmatpush3.msra.mxu1 %v2489_v36 }
0x13b1   :  { %2784 = vmatprep.subr.mxu1 %v2488_v59 }
0x13b2   :  { %2785 = vmatpush3.msra.mxu1 %v2488_v59 }
0x13b3   :  { %2786 = vmatprep.subr.mxu1 %v2487_v58 }
0x13b4   :  { %2787 = vmatpush3.msra.mxu1 %v2487_v58 }
0x13b5   :  { %2788 = vmatprep.subr.mxu1 %v2486_v60 }
0x13b6   :  { %2789 = vmatpush3.msra.mxu1 %v2486_v60 }
0x13b7   :  { %2790 = vmatprep.subr.mxu1 %v2485_v62 }
0x13b8   :  { %2791 = vmatpush3.msra.mxu1 %v2485_v62 }
0x13b9   :  { %2792 = vmatprep.subr.mxu1 %v2484_v63 }
0x13ba   :  { %2793 = vmatpush3.msra.mxu1 %v2484_v63 }
0x13bb   :  { %2794 = vmatprep.subr.mxu1 %v2483_v3 }
0x13bc   :  { %2795 = vmatpush3.msra.mxu1 %v2483_v3 }
0x13bd   :  { %2796 = vmatprep.subr.mxu1 %v2482_v4 }
0x13be   :  { %2797 = vmatpush3.msra.mxu1 %v2482_v4 }
0x13bf   :  { %2798 = vmatprep.subr.mxu1 %v2481_v5 }
0x13c0   :  { %2799 = vmatpush3.msra.mxu1 %v2481_v5 }
0x13c1   :  { %2800 = vmatprep.subr.mxu1 %v2480_v1 }
0x13c2   :  { %2801 = vmatpush3.msra.mxu1 %v2480_v1 }
0x13c3   :  { %2802 = vmatprep.subr.mxu1 %v2479_v6 }
0x13c4   :  { %2803 = vmatpush3.msra.mxu1 %v2479_v6 }
0x13c5   :  { %2804 = vmatprep.subr.mxu1 %v2478_v7 }
0x13c6   :  { %2805 = vmatpush3.msra.mxu1 %v2478_v7 }
0x13c7   :  { %2806 = vmatprep.subr.mxu1 %v2477_v8 }
0x13c8   :  { %2807 = vmatpush3.msra.mxu1 %v2477_v8 }
0x13c9   :  { %2808 = vmatprep.subr.mxu1 %v2476_v9 }
0x13ca   :  { %2809 = vmatpush3.msra.mxu1 %v2476_v9 }
0x1467   :  { %v2752_v10 = vpop.f32.mrf.mxu1 }
0x1469   :  { %v1763_v12 = vpop.f32.mrf.mxu1 }
0x146a   :  { %2757 = vmatprep.mubr.msk.f32.mxu0 %vm388_vm3, %v1763_v12 }
0x146b   :  { %2758 = vmatmul.mubr.msk.f32.vlgmr.msra.gmra.mxu0 %vm388_vm3, %v2752_v10  ;;  %v2766_v14 = vpop.f32.mrf.mxu1  ;;  %v2473_v10 = vld [vmem:[%s3621_s14 + $0x1] ss:$0 sm:$0xff] }
0x146c   :  { %2768 = vmatpush3.msra.mxu0 %v2471_v34 }
0x146d   :  { %v1925_v17 = vpop.f32.mrf.mxu1  ;;  %2769 = vmatprep.subr.mxu0 %v2470_v13 }
0x146e   :  { %2770 = vmatpush3.msra.mxu0 %v2470_v13 }
0x146f   :  { %2771 = vmatprep.subr.mxu0 %v2469_v35 }
0x1470   :  { %2772 = vmatpush3.msra.mxu0 %v2469_v35 }
0x1471   :  { %2773 = vmatprep.subr.mxu0 %v2468_v37 }
0x1472   :  { %2774 = vmatpush3.msra.mxu0 %v2468_v37 }
0x1473   :  { %2813 = vmatprep.subr.mxu0 %v2909_v0 }
0x152b   :  { %v2759_v15 = vpop.f32.mrf.mxu0 }
0x152c   :  { %v1931_v16 = vadd.f32 %v2766_v14, %v2759_v15 }
0x152d   :  { %v1844_v2 = vpop.f32.mrf.mxu0 }
0x152e   :  { %v1935_v19 = vadd.f32 %v1931_v16, %v3363_v24  ;;  %v1926_v20 = vadd.f32 %v1925_v17, %v1844_v2 }
0x1530   :  { %v3477_v21 = vadd.f32 %v2463_v18, %v1935_v19  ;;  %v1934_v61 = vadd.f32 %v1926_v20, %v3366_v26 }
0x1532   :  { %v3480_v22 = vadd.f32 %v2463_v18, %v1934_v61  ;;  %v1953_v23 = vsel %vm183_vm2, %v3477_v21, 0.0 }
0x1533   :  { %1954 = vadd.xlane.f32.xlu0 %v1953_v23 }
0x1534   :  { %v1950_v25 = vsel %vm179_vm1, %v3480_v22, 0.0 }
0x1535   :  { %1951 = vadd.xlane.f32.xlu1 %v1950_v25 }
0x15bc   :  { %v1955_v27 = vpop.xlane.xlu0 %1954 }
0x15bd   :  { %v1957_v28 = vmul.f32 0.03125, %v1955_v27 }
0x15be   :  { %v1952_v29 = vpop.xlane.xlu1 %1951 }
0x15bf   :  { %v1959_v24 = vsub.f32 %v3477_v21, %v1957_v28  ;;  %v1956_v30 = vmul.f32 0.03125, %v1952_v29 }
0x15c1   :  { %v1958_v31 = vsub.f32 %v3480_v22, %v1956_v30  ;;  %v1961_v11 = vmul.f32 %v1959_v24, %v1959_v24  ;;  %v2204_v30 = vmul.u32 5, %v3199_v42 }
0x15c3   :  { %v1965_v26 = vsel %vm183_vm2, %v1961_v11, 0.0  ;;  %v1960_v32 = vmul.f32 %v1958_v31, %v1958_v31  ;;  %v2493_v11 = vld [vmem:[%s3622_s16 + $0x1] ss:$0 sm:$0xff]  ;;  %vm2205_vm10 = vcmp.eq.s32.totalorder %v3202_v44, %v2204_v30 }
0x15c4   :  { %1966 = vadd.xlane.f32.xlu1 %v1965_v26  ;;  %v2206_v35 = vsel %vm2205_vm10, 1.0, %v2909_v0 }
0x15c5   :  { %v1962_v33 = vsel %vm179_vm1, %v1960_v32, 0.0 }
0x15c6   :  { %1963 = vadd.xlane.f32.xlu0 %v1962_v33 }
0x164d   :  { %v1967_v39 = vpop.xlane.xlu1 %1966 }
0x164e   :  { %v1969_v40 = vmul.f32 0.03125, %v1967_v39 }
0x164f   :  { %v1964_v41 = vpop.xlane.xlu0 %1963 }
0x1650   :  { %v1971_v43 = vadd.f32 1e-05, %v1969_v40  ;;  %v1968_v45 = vmul.f32 0.03125, %v1964_v41 }
0x1652   :  { %2895 = vrsqrt.f32 %v1971_v43  ;;  %v1970_v46 = vadd.f32 1e-05, %v1968_v45  ;;  %v2315_v43 = vld [vmem:[%s3623_s19 + $0x18] sm:$0xff]  ;;  %v2314_v45 = vld [vmem:[%s3623_s19 + $0x10] sm:$0xff] }
0x1654   :  { %2897 = vrsqrt.f32 %v1970_v46  ;;  %v2313_v46 = vld [vmem:[%s3623_s19 + $0x8] sm:$0xff] }
0x165f   :  { %v2896_v47 = vpop.eup %2895 }
0x1660   :  { %v1975_v49 = vmul.f32 %v2896_v47, %v1959_v24  ;;  %v2312_v47 = vld [vmem:[%s3623_s19] sm:$0xff] }
0x1661   :  { %v2898_v38 = vpop.eup %2897 }
0x1662   :  { %v1974_v50 = vmul.f32 %v2898_v38, %v1958_v31  ;;  %v1983_v51 = vmul.f32 %v2466_v48, %v1975_v49 }
0x1664   :  { %v1982_v53 = vmul.f32 %v2466_v48, %v1974_v50  ;;  %v1991_v55 = vadd.f32 %v2467_v52, %v1983_v51  ;;  %v2496_v51 = vld [vmem:[%s3624_s17] ss:$0 sm:$0xff] }
0x1666   :  { %v1990_v54 = vadd.f32 %v2467_v52, %v1982_v53  ;;  %v2497_v53 = vld [vmem:[%s3625_s18] ss:$0 sm:$0xff] }
0x1668   :  { %2775 = vmatprep.mubr.msk.f32.mxu0 %vm179_vm1, %v1990_v54 }
0x1669   :  { %2776 = vmatmul.mubr.msk.f32.vlgmr.msra.gmra.mxu0 %vm179_vm1, %v1991_v55 }
0x166a   :  { %2817 = vmatprep.mubr.msk.f32.mxu0 %vm2916_vm9, %v2909_v0 }
0x1729   :  { %v2777_v12 = vpop.f32.mrf.mxu0 }
0x172a   :  { %v2083_v14 = vadd.f32 %v2777_v12, %v2473_v10 }
0x172b   :  { %v2077_v15 = vpop.f32.mrf.mxu0 }
0x172c   :  { %v2087_v16 = vmul.f32 -1.702, %v2083_v14  ;;  %v2078_v17 = vadd.f32 %v2473_v10, %v2077_v15 }
0x172e   :  { %v2090_v18 = vmul.f32 1.442695, %v2087_v16  ;;  %v2086_v2 = vmul.f32 -1.702, %v2078_v17 }
0x1730   :  { %2899 = vpow2.f32 %v2090_v18  ;;  %v2088_v19 = vmul.f32 1.442695, %v2086_v2 }
0x1732   :  { %2901 = vpow2.f32 %v2088_v19 }
0x173d   :  { %v2900_v20 = vpop.eup %2899 }
0x173e   :  { %v2093_v61 = vadd.f32 1.0, %v2900_v20 }
0x173f   :  { %v2902_v23 = vpop.eup %2901 }
0x1740   :  { %v2092_v25 = vadd.f32 1.0, %v2902_v23  ;;  %2903 = vrcp.f32 %v2093_v61 }
0x1742   :  { %2905 = vrcp.f32 %v2092_v25 }
0x174d   :  { %v2904_v27 = vpop.eup %2903 }
0x174e   :  { %v2099_v24 = vmul.f32 %v2904_v27, %v2083_v14 }
0x174f   :  { %v2906_v28 = vpop.eup %2905 }
0x1750   :  { %v2098_v29 = vmul.f32 %v2906_v28, %v2078_v17 }
0x1752   :  { %2810 = vmatprep.mubr.f32.mxu1 %v2098_v29 }
0x1753   :  { %2811 = vmatmul.mubr.f32.vlgmr.msra.gmra.mxu1 %v2099_v24 }
0x1813   :  { %v2812_v31 = vpop.f32.mrf.mxu1 }
0x1814   :  { %v2193_v26 = vadd.f32 %v2812_v31, %v3477_v21 }
0x1815   :  { %v2183_v32 = vpop.f32.mrf.mxu1 }
0x1816   :  { %v2203_v33 = vadd.f32 %v2493_v11, %v2193_v26  ;;  %v2192_v34 = vadd.f32 %v2183_v32, %v3480_v22 }
0x1818   :  { %v2202_v13 = vadd.f32 %v2493_v11, %v2192_v34  ;;  %2814 = vmatpush3.msk.msra.mxu0 %vm511_vm8, %v2203_v33 }
0x1819   :  { %2815 = vmatprep.subr.mxu0 %v2909_v0 }
0x181a   :  { %2816 = vmatpush3.msra.mxu0 %v2202_v13 }
0x181b   :  { %2818 = vmatmul.mubr.msk.f32.vlgmr.msra.gmra.mxu0 %vm476_vm7, %v2206_v35  ;;  %2820 = vmatprep.subr.mxu0 %v2909_v0 }
0x181c   :  { %2828 = vmatprep.mubr.msk.f32.mxu0 %vm2916_vm9, %v2909_v0  ;;  %2821 = vmatpush3.msra.mxu0 %v2315_v43 }
0x181d   :  { %2822 = vmatprep.subr.mxu0 %v2909_v0 }
0x181e   :  { %2823 = vmatpush3.msra.mxu0 %v2314_v45 }
0x181f   :  { %2824 = vmatprep.subr.mxu0 %v2909_v0 }
0x1820   :  { %2825 = vmatpush3.msra.mxu0 %v2313_v46 }
0x1821   :  { %2826 = vmatprep.subr.mxu0 %v2909_v0 }
0x1822   :  { %2827 = vmatpush3.msra.mxu0 %v2312_v47 }
0x18db   :  { %v2279_v42 = vpop.f32.mrf.mxu0 }
0x18dc   :  { %v2285_v44 = vsel %vm183_vm2, %v2279_v42, 0.0 }
0x18dd   :  { %2286 = vadd.xlane.f32.xlu0 %v2285_v44  ;;  %v2819_v21 = vpop.f32.mrf.mxu0 }
0x1966   :  { %v2287_v22 = vpop.xlane.xlu0 %2286 }
0x1967   :  { %v2288_v37 = vmul.f32 0.03125, %v2287_v22 }
0x1969   :  { %v2289_v39 = vsub.f32 %v2279_v42, %v2288_v37 }
0x196b   :  { %v2290_v40 = vmul.f32 %v2289_v39, %v2289_v39 }
0x196d   :  { %v2291_v41 = vsel %vm183_vm2, %v2290_v40, 0.0 }
0x196e   :  { %2292 = vadd.xlane.f32.xlu1 %v2291_v41 }
0x19f7   :  { %v2293_v48 = vpop.xlane.xlu1 %2292 }
0x19f8   :  { %v2294_v49 = vmul.f32 0.03125, %v2293_v48 }
0x19fa   :  { %v2295_v38 = vadd.f32 1e-05, %v2294_v49 }
0x19fc   :  { %2907 = vrsqrt.f32 %v2295_v38 }
0x1a09   :  { %v2908_v50 = vpop.eup %2907 }
0x1a0a   :  { %v2297_v52 = vmul.f32 %v2908_v50, %v2289_v39 }
0x1a0c   :  { %v2304_v54 = vmul.f32 %v2496_v51, %v2297_v52 }
0x1a0e   :  { %v2311_v55 = vadd.f32 %v2497_v53, %v2304_v54 }
0x1a10   :  { %2829 = vmatmul.mubr.msk.f32.vlgmr.msra.gmra.mxu0 %vm179_vm1, %v2311_v55 }
0x1ad0   :  { %v2385_v0 = vpop.f32.mrf.mxu0 }
0x1ad1   :  { %2389 = vst.msk [vmem:[%s3626_s20] sm:$0x3] %vm183_vm2, %v2385_v0 }
0x1ad2   :  { %v2830_v56 = vpop.f32.mrf.mxu0 }

// kernel: custom_clip_forward.4
= control target key start
LH: loop header
LB: loop body
LE: loop exit
PB: predicated region body
PF: predicated region fallthrough
CT: control target
= control target key end

     0   :  { %vm124_vm0 = vcmask 261120   ;;  %vm374_vm1 = vcmask 130048   ;;  %s4575_s23 = smov 96   ;;  %s4576_s25 = smov 64   ;;  %vm506_vm12 = vcmask 392192   ;;  %vm4582_vm15 = vmmov 0   ;;  %s5782_s0 = inlined_call_operand.vmem [shape: f32[48,32], index: 0, kind: input, shape index: {}]   ;;  %s5783_s4 = inlined_call_operand.vmem [shape: f32[2,32,96], index: 4, kind: input, shape index: {}]   ;;  %s5784_s2 = inlined_call_operand.vmem [shape: f32[2,1,32], index: 2, kind: input, shape index: {}]   ;;  %s5785_s3 = inlined_call_operand.vmem [shape: f32[2,1,32], index: 3, kind: input, shape index: {}]   ;;  %s5786_s5 = inlined_call_operand.vmem [shape: f32[2,1,96], index: 5, kind: input, shape index: {}]   ;;  %s5787_s6 = inlined_call_operand.vmem [shape: f32[2,32,32], index: 6, kind: input, shape index: {}]   ;;  %s5788_s7 = inlined_call_operand.vmem [shape: f32[2,1,32], index: 7, kind: input, shape index: {}]   ;;  %s5789_s10 = inlined_call_operand.vmem [shape: f32[2,32,128], index: 10, kind: input, shape index: {}]   ;;  %s5790_s8 = inlined_call_operand.vmem [shape: f32[2,1,32], index: 8, kind: input, shape index: {}]   ;;  %s5791_s9 = inlined_call_operand.vmem [shape: f32[2,1,32], index: 9, kind: input, shape index: {}]   ;;  %s5792_s12 = inlined_call_operand.vmem [shape: f32[2,128,32], index: 12, kind: input, shape index: {}]   ;;  %s5793_s11 = inlined_call_operand.vmem [shape: f32[2,1,128], index: 11, kind: input, shape index: {}]   ;;  %s5794_s13 = inlined_call_operand.vmem [shape: f32[2,1,32], index: 13, kind: input, shape index: {}]   ;;  %s5795_s14 = inlined_call_operand.vmem [shape: f32[1,32], index: 14, kind: input, shape index: {}]   ;;  %s5796_s15 = inlined_call_operand.vmem [shape: f32[1,32], index: 15, kind: input, shape index: {}]   ;;  %s5797_s1 = inlined_call_operand.vmem [shape: f32[3,48], index: 1, kind: input, shape index: {}]   ;;  %s5798_s16 = inlined_call_operand.vmem [shape: f32[32,32], index: 16, kind: input, shape index: {}]   ;;  %s5799_s17 = inlined_call_operand.vmem [shape: f32[3,32], index: 17, kind: output, shape index: {}]  }
   0x1   :  { %5802 = sst [smem:[#allocation2_spill]] %s5782_s0  ;;  %s4577_s27 = smov 80  }
   0x2   :  { %5803 = sst [smem:[#allocation3_spill]] %s5783_s4  ;;  %s4580_s28 = smov 112  }
   0x3   :  { %s5804_s26 = sld [smem:[#allocation2_spill]]  ;;  %s4581_s29 = smov 48  }
   0x4   :  { %s5805_s24 = sld [smem:[#allocation3_spill]] }
   0x9   :  { %v56_v0 = vld [vmem:[%s5804_s26] sm:$0xff]  ;;  %v58_v1 = vld [vmem:[%s5804_s26 + $0x10] sm:$0xff]  ;;  %v57_v2 = vld [vmem:[%s5804_s26 + $0x8] sm:$0xff] }
   0xa   :  { %v125_v3 = vsel %vm124_vm0, %v56_v0, 0.0  ;;  %v131_v4 = vsel %vm124_vm0, %v58_v1, 0.0  ;;  %v59_v5 = vld [vmem:[%s5804_s26 + $0x18] sm:$0xff]  ;;  %v128_v6 = vsel %vm124_vm0, %v57_v2, 0.0  ;;  %v60_v8 = vld [vmem:[%s5804_s26 + $0x20] sm:$0xff]  ;;  %v61_v9 = vld [vmem:[%s5804_s26 + $0x28] sm:$0xff] }
   0xb   :  { %126 = vadd.xlane.f32.xlu0 %v125_v3  ;;  %132 = vadd.xlane.f32.xlu1 %v131_v4  ;;  %v134_v7 = vsel %vm124_vm0, %v59_v5, 0.0  ;;  %v137_v10 = vsel %vm124_vm0, %v60_v8, 0.0  ;;  %v140_v11 = vsel %vm124_vm0, %v61_v9, 0.0  ;;  %v231_v42 = vld [vmem:[%s5805_s24 + $0x18] sm:$0xff]  ;;  %v230_v43 = vld [vmem:[%s5805_s24 + $0x10] sm:$0xff]  ;;  %v229_v44 = vld [vmem:[%s5805_s24 + $0x8] sm:$0xff] }
   0xc   :  { %3949 = vmatprep.subr.mxu0 %v231_v42  ;;  %v228_v45 = vld [vmem:[%s5805_s24] sm:$0xff] }
   0xd   :  { %3950 = vmatpush3.msra.mxu0 %v231_v42  ;;  %v3550_v3 = vld [vmem:[%s5785_s3] ss:$0 sm:$0xff] }
   0xe   :  { %3951 = vmatprep.subr.mxu0 %v230_v43 }
   0xf   :  { %129 = vadd.xlane.f32.xlu0 %v128_v6  ;;  %135 = vadd.xlane.f32.xlu1 %v134_v7 }
  0x10   :  { %3952 = vmatpush3.msra.mxu0 %v230_v43 }
  0x11   :  { %3953 = vmatprep.subr.mxu0 %v229_v44 }
  0x12   :  { %3954 = vmatpush3.msra.mxu0 %v229_v44 }
  0x13   :  { %138 = vadd.xlane.f32.xlu0 %v137_v10  ;;  %141 = vadd.xlane.f32.xlu1 %v140_v11 }
  0x14   :  { %3955 = vmatprep.subr.mxu0 %v228_v45 }
  0x15   :  { %3956 = vmatpush3.msra.mxu0 %v228_v45 }
  0x94   :  { %v127_v12 = vpop.xlane.xlu0 %126  ;;  %v133_v13 = vpop.xlane.xlu1 %132 }
  0x95   :  { %v144_v14 = vmul.f32 0.03125, %v127_v12  ;;  %v146_v15 = vmul.f32 0.03125, %v133_v13 }
  0x97   :  { %v4697_v16 = vsub.f32 %v56_v0, %v144_v14  ;;  %v4699_v17 = vsub.f32 %v58_v1, %v146_v15  ;;  %v3549_v1 = vld [vmem:[%s5784_s2] ss:$0 sm:$0xff] }
  0x98   :  { %v130_v18 = vpop.xlane.xlu0 %129  ;;  %v136_v19 = vpop.xlane.xlu1 %135 }
  0x99   :  { %v145_v20 = vmul.f32 0.03125, %v130_v18  ;;  %v147_v21 = vmul.f32 0.03125, %v136_v19  ;;  %v156_v22 = vmul.f32 %v4697_v16, %v4697_v16  ;;  %v158_v23 = vmul.f32 %v4699_v17, %v4699_v17 }
  0x9b   :  { %v4705_v24 = vsub.f32 %v57_v2, %v145_v20  ;;  %v4707_v25 = vsub.f32 %v59_v5, %v147_v21  ;;  %v162_v26 = vsel %vm124_vm0, %v156_v22, 0.0  ;;  %v168_v29 = vsel %vm124_vm0, %v158_v23, 0.0 }
  0x9c   :  { %163 = vadd.xlane.f32.xlu0 %v162_v26  ;;  %v139_v27 = vpop.xlane.xlu0 %138  ;;  %v142_v28 = vpop.xlane.xlu1 %141 }
  0x9d   :  { %v148_v30 = vmul.f32 0.03125, %v139_v27  ;;  %v149_v31 = vmul.f32 0.03125, %v142_v28  ;;  %v157_v32 = vmul.f32 %v4705_v24, %v4705_v24  ;;  %v159_v33 = vmul.f32 %v4707_v25, %v4707_v25  ;;  %v3551_v27 = vld [vmem:[%s5786_s5] ss:$0 sm:$0xff] }
  0x9f   :  { %v4715_v34 = vsub.f32 %v60_v8, %v148_v30  ;;  %v4717_v35 = vsub.f32 %v61_v9, %v149_v31  ;;  %v165_v36 = vsel %vm124_vm0, %v157_v32, 0.0  ;;  %v171_v37 = vsel %vm124_vm0, %v159_v33, 0.0 }
  0xa0   :  { %169 = vadd.xlane.f32.xlu0 %v168_v29  ;;  %166 = vadd.xlane.f32.xlu1 %v165_v36 }
  0xa1   :  { %v160_v38 = vmul.f32 %v4715_v34, %v4715_v34  ;;  %v161_v39 = vmul.f32 %v4717_v35, %v4717_v35 }
  0xa3   :  { %v174_v40 = vsel %vm124_vm0, %v160_v38, 0.0  ;;  %v177_v41 = vsel %vm124_vm0, %v161_v39, 0.0 }
  0xa4   :  { %172 = vadd.xlane.f32.xlu1 %v171_v37  ;;  %175 = vadd.xlane.f32.xlu0 %v174_v40 }
  0xa8   :  { %178 = vadd.xlane.f32.xlu1 %v177_v41 }
 0x125   :  { %v164_v46 = vpop.xlane.xlu0 %163 }
 0x126   :  { %v180_v47 = vmul.f32 0.03125, %v164_v46 }
 0x128   :  { %v186_v48 = vadd.f32 1e-05, %v180_v47 }
 0x129   :  { %v167_v49 = vpop.xlane.xlu1 %166  ;;  %v170_v50 = vpop.xlane.xlu0 %169 }
 0x12a   :  { %4365 = vrsqrt.f32 %v186_v48  ;;  %v181_v51 = vmul.f32 0.03125, %v167_v49  ;;  %v182_v52 = vmul.f32 0.03125, %v170_v50 }
 0x12c   :  { %v187_v53 = vadd.f32 1e-05, %v181_v51  ;;  %v188_v54 = vadd.f32 1e-05, %v182_v52  ;;  %v62_v52 = vlaneseq }
 0x12d   :  { %v173_v55 = vpop.xlane.xlu1 %172  ;;  %v176_v56 = vpop.xlane.xlu0 %175 }
 0x12e   :  { %4367 = vrsqrt.f32 %v187_v53  ;;  %v183_v57 = vmul.f32 0.03125, %v173_v55  ;;  %v184_v58 = vmul.f32 0.03125, %v176_v56  ;;  %v63_v53 = vshrl.u32 %v62_v52, 7 }
 0x12f   :  { %4369 = vrsqrt.f32 %v188_v54  ;;  %v4828_v55 = vand.u32 127, %v62_v52 }
 0x130   :  { %v189_v59 = vadd.f32 1e-05, %v183_v57  ;;  %v190_v60 = vadd.f32 1e-05, %v184_v58  ;;  %v64_v54 = vadd.s32 8, %v63_v53  ;;  %v66_v58 = vadd.s32 24, %v63_v53 }
 0x131   :  { %v179_v61 = vpop.xlane.xlu1 %178  ;;  %v89_v57 = vcvt.s32.f32 %v4828_v55  ;;  %vm104_vm5 = vcmp.gt.s32.totalorder %v4828_v55, %v63_v53 }
 0x132   :  { %4371 = vrsqrt.f32 %v189_v59  ;;  %v185_v62 = vmul.f32 0.03125, %v179_v61  ;;  %v72_v56 = vcvt.s32.f32 %v64_v54  ;;  %v71_v61 = vcvt.s32.f32 %v63_v53 }
 0x133   :  { %4373 = vrsqrt.f32 %v190_v60  ;;  %v90_v60 = vmul.f32 0.0625, %v89_v57  ;;  %vm105_vm3 = vcmp.gt.s32.totalorder %v4828_v55, %v64_v54  ;;  %vm107_vm6 = vcmp.gt.s32.totalorder %v4828_v55, %v66_v58 }
 0x134   :  { %v191_v63 = vadd.f32 1e-05, %v185_v62  ;;  %v78_v59 = vmul.f32 0.0625, %v72_v56  ;;  %v65_v62 = vadd.s32 16, %v63_v53 }
 0x136   :  { %4375 = vrsqrt.f32 %v191_v63  ;;  %v74_v63 = vcvt.s32.f32 %v66_v58  ;;  %vm106_vm10 = vcmp.gt.s32.totalorder %v4828_v55, %v65_v62 }
 0x137   :  { %v4366_v0 = vpop.eup %4365 }
 0x138   :  { %v198_v2 = vmul.f32 %v4366_v0, %v4697_v16  ;;  %v68_v0 = vadd.s32 40, %v63_v53 }
 0x13a   :  { %v210_v4 = vmul.f32 %v3549_v1, %v198_v2  ;;  %v91_v2 = vfloor.f32 %v90_v60  ;;  %vm109_vm8 = vcmp.gt.s32.totalorder %v4828_v55, %v68_v0 }
 0x13b   :  { %v4368_v5 = vpop.eup %4367 }
 0x13c   :  { %v4370_v6 = vpop.eup %4369  ;;  %v222_v7 = vadd.f32 %v3550_v3, %v210_v4  ;;  %v199_v8 = vmul.f32 %v4368_v5, %v4705_v24  ;;  %v73_v4 = vcvt.s32.f32 %v65_v62  ;;  %v80_v5 = vmul.f32 0.0625, %v74_v63 }
 0x13d   :  { %v200_v9 = vmul.f32 %v4370_v6, %v4699_v17  ;;  %v76_v6 = vcvt.s32.f32 %v68_v0 }
 0x13e   :  { %3957 = vmatprep.mubr.msk.f32.mxu0 %vm124_vm0, %v222_v7  ;;  %v211_v10 = vmul.f32 %v3549_v1, %v199_v8  ;;  %v67_v7 = vadd.s32 32, %v63_v53 }
 0x13f   :  { %v4372_v11 = vpop.eup %4371  ;;  %v212_v12 = vmul.f32 %v3549_v1, %v200_v9  ;;  %v79_v9 = vmul.f32 0.0625, %v73_v4 }
 0x140   :  { %v4374_v13 = vpop.eup %4373  ;;  %v223_v14 = vadd.f32 %v3550_v3, %v211_v10  ;;  %v201_v15 = vmul.f32 %v4372_v11, %v4707_v25  ;;  %v86_v10 = vfloor.f32 %v80_v5  ;;  %v82_v11 = vmul.f32 0.0625, %v76_v6 }
 0x141   :  { %v224_v16 = vadd.f32 %v3550_v3, %v212_v12  ;;  %v202_v18 = vmul.f32 %v4374_v13, %v4715_v34  ;;  %v75_v12 = vcvt.s32.f32 %v67_v7  ;;  %v4578_v13 = vmov -1e+09  }
 0x142   :  { %3958 = vmatmul.mubr.msk.f32.vlgmr.msra.gmra.mxu0 %vm124_vm0, %v223_v14  ;;  %v213_v19 = vmul.f32 %v3549_v1, %v201_v15  ;;  %v4579_v15 = vmov 0.0   ;;  %vm95_vm7 = vcmp.eq.f32.partialorder %v86_v10, %v91_v2  ;;  %vm108_vm13 = vcmp.gt.s32.totalorder %v4828_v55, %v67_v7 }
 0x143   :  { %v4376_v20 = vpop.eup %4375  ;;  %3960 = vmatprep.mubr.msk.f32.mxu0 %vm124_vm0, %v224_v16  ;;  %v214_v21 = vmul.f32 %v3549_v1, %v202_v18  ;;  %v111_v16 = vsel %vm105_vm3, -1e+09, %v4579_v15  ;;  %v85_v18 = vfloor.f32 %v79_v9 }
 0x144   :  { %v225_v17 = vadd.f32 %v3550_v3, %v213_v19  ;;  %v203_v22 = vmul.f32 %v4376_v20, %v4717_v35  ;;  %v88_v19 = vfloor.f32 %v82_v11  ;;  %v81_v20 = vmul.f32 0.0625, %v75_v12 }
 0x145   :  { %v226_v23 = vadd.f32 %v3550_v3, %v214_v21  ;;  %vm94_vm9 = vcmp.eq.f32.partialorder %v85_v18, %v91_v2 }
 0x146   :  { %3961 = vmatmul.mubr.msk.f32.gmra.mxu0 %vm124_vm0, %v225_v17  ;;  %v215_v24 = vmul.f32 %v3549_v1, %v203_v22  ;;  %v84_v1 = vfloor.f32 %v78_v59  ;;  %v110_v22 = vsel %vm104_vm5, -1e+09, %v4579_v15  ;;  %vm97_vm11 = vcmp.eq.f32.partialorder %v88_v19, %v91_v2 }
 0x147   :  { %3963 = vmatprep.mubr.msk.f32.mxu0 %vm124_vm0, %v226_v23  ;;  %v113_v23 = vsel %vm107_vm6, -1e+09, %v4579_v15 }
 0x148   :  { %v227_v25 = vadd.f32 %v3550_v3, %v215_v24  ;;  %v77_v3 = vmul.f32 0.0625, %v71_v61  ;;  %vm93_vm2 = vcmp.eq.f32.partialorder %v84_v1, %v91_v2  ;;  %v101_v24 = vsel %vm95_vm7, 0.0, %v4578_v13 }
 0x149   :  { %v99_v14 = vsel %vm93_vm2, 0.0, %v4578_v13 }
 0x14a   :  { %3964 = vmatmul.mubr.msk.f32.gmra.mxu0 %vm124_vm0, %v227_v25  ;;  %v83_v8 = vfloor.f32 %v77_v3  ;;  %v4835_v21 = vadd.f32 %v111_v16, %v99_v14 }
 0x14c   :  { %vm92_vm4 = vcmp.eq.f32.partialorder %v83_v8, %v91_v2 }
 0x14d   :  { %v98_v17 = vsel %vm92_vm4, 0.0, %v4578_v13 }
 0x202   :  { %v3959_v26 = vpop.f32.mrf.mxu0 }
 0x203   :  { %v4770_v36 = vadd.f32 %v3959_v26, %v3551_v27  ;;  %v87_v26 = vfloor.f32 %v81_v20 }
 0x204   :  { %v323_v28 = vpop.f32.mrf.mxu0 }
 0x205   :  { %v4760_v29 = vadd.f32 %v3551_v27, %v323_v28  ;;  %v4841_v28 = vadd.f32 %v110_v22, %v98_v17  ;;  %vm96_vm14 = vcmp.eq.f32.partialorder %v87_v26, %v91_v2 }
 0x206   :  { %v3962_v30 = vpop.f32.mrf.mxu0  ;;  %v102_v55 = vsel %vm96_vm14, 0.0, %v4578_v13 }
 0x207   :  { %3978 = vmatprep.mubr.msk.f32.mxu1 %vm374_vm1, %v4760_v29  ;;  %v4774_v37 = vadd.f32 %v3962_v30, %v3551_v27 }
 0x208   :  { %v333_v31 = vpop.f32.mrf.mxu0 }
 0x209   :  { %v4780_v38 = vadd.f32 %v3551_v27, %v333_v31  ;;  %v4843_v31 = vadd.f32 %v113_v23, %v101_v24 }
 0x20a   :  { %v3965_v32 = vpop.f32.mrf.mxu0 }
 0x20b   :  { %v4764_v33 = vadd.f32 %v3965_v32, %v3551_v27  ;;  %v115_v32 = vsel %vm109_vm8, -1e+09, %v4579_v15 }
 0x20c   :  { %v343_v34 = vpop.f32.mrf.mxu0 }
 0x20d   :  { %v4766_v35 = vadd.f32 %v3551_v27, %v343_v34  ;;  %372 = vrot.lane.b32.xlu0 %v4764_v33, %s4575_s23  ;;  %v100_v34 = vsel %vm94_vm9, 0.0, %v4578_v13 }
 0x20f   :  { %370 = vrot.lane.b32.xlu1 %v4766_v35, %s4575_s23 }
 0x211   :  { %364 = vrot.lane.b32.xlu0 %v4770_v36, %s4575_s23 }
 0x213   :  { %368 = vrot.lane.b32.xlu1 %v4774_v37, %s4575_s23 }
 0x215   :  { %583 = vrot.lane.b32.xlu0 %v4764_v33, %s4576_s25 }
 0x217   :  { %366 = vrot.lane.b32.xlu1 %v4780_v38, %s4575_s23 }
 0x219   :  { %579 = vrot.lane.b32.xlu0 %v4774_v37, %s4576_s25 }
 0x21b   :  { %362 = vrot.lane.b32.xlu1 %v4760_v29, %s4575_s23 }
 0x21d   :  { %726 = vrot.lane.b32.xlu0 %v4764_v33, %s4577_s27 }
 0x21f   :  { %577 = vrot.lane.b32.xlu1 %v4780_v38, %s4576_s25 }
 0x223   :  { %575 = vrot.lane.b32.xlu1 %v4770_v36, %s4576_s25 }
 0x227   :  { %573 = vrot.lane.b32.xlu1 %v4760_v29, %s4576_s25 }
 0x22b   :  { %581 = vrot.lane.b32.xlu1 %v4766_v35, %s4576_s25 }
 0x22f   :  { %724 = vrot.lane.b32.xlu1 %v4766_v35, %s4577_s27 }
 0x27f   :  { %v373_v39 = vpop.permute.xlu0 %372 }
 0x280   :  { %3966 = vmatprep.subr.msk.mxu1 %vm374_vm1, %v373_v39 }
 0x281   :  { %3967 = vmatpush3.xpose.msk.msra.mxu1 %vm374_vm1, %v373_v39  ;;  %v371_v40 = vpop.permute.xlu1 %370  ;;  %v112_v39 = vsel %vm106_vm10, -1e+09, %v4579_v15 }
 0x282   :  { %3968 = vmatprep.subr.msk.mxu1 %vm374_vm1, %v371_v40 }
 0x283   :  { %v365_v41 = vpop.permute.xlu0 %364 }
 0x285   :  { %3969 = vmatpush3.xpose.msk.msra.mxu1 %vm374_vm1, %v371_v40  ;;  %v369_v42 = vpop.permute.xlu1 %368 }
 0x286   :  { %3970 = vmatprep.subr.msk.mxu1 %vm374_vm1, %v369_v42 }
 0x287   :  { %v584_v43 = vpop.permute.xlu0 %583 }
 0x288   :  { %3987 = vmatprep.subr.mxu0 %v584_v43 }
 0x289   :  { %3971 = vmatpush3.xpose.msk.msra.mxu1 %vm374_vm1, %v369_v42  ;;  %3988 = vmatpush3.msra.mxu0 %v584_v43  ;;  %v367_v44 = vpop.permute.xlu1 %366  ;;  %v103_v42 = vsel %vm97_vm11, 0.0, %v4578_v13 }
 0x28a   :  { %3972 = vmatprep.subr.msk.mxu1 %vm374_vm1, %v367_v44 }
 0x28b   :  { %v580_v50 = vpop.permute.xlu0 %579 }
 0x28d   :  { %3973 = vmatpush3.xpose.msk.msra.mxu1 %vm374_vm1, %v367_v44  ;;  %v363_v45 = vpop.permute.xlu1 %362 }
 0x28e   :  { %3974 = vmatprep.subr.msk.mxu1 %vm374_vm1, %v365_v41 }
 0x28f   :  { %v4824_v51 = vpop.permute.xlu0 %726 }
 0x291   :  { %3975 = vmatpush3.xpose.msk.msra.mxu1 %vm374_vm1, %v365_v41  ;;  %v578_v46 = vpop.permute.xlu1 %577 }
 0x292   :  { %3976 = vmatprep.subr.msk.mxu1 %vm374_vm1, %v363_v45 }
 0x295   :  { %3977 = vmatpush3.xpose.msk.msra.mxu1 %vm374_vm1, %v363_v45  ;;  %v576_v47 = vpop.permute.xlu1 %575 }
 0x298   :  { %3979 = vmatmul.mubr.msk.f32.vlgmr.msra.gmra.mxu1 %vm374_vm1, %v4770_v36 }
 0x299   :  { %3981 = vmatprep.mubr.msk.f32.mxu1 %vm374_vm1, %v4780_v38  ;;  %v574_v48 = vpop.permute.xlu1 %573 }
 0x29c   :  { %3982 = vmatmul.mubr.msk.f32.gmra.mxu1 %vm374_vm1, %v4774_v37 }
 0x29d   :  { %3984 = vmatprep.mubr.msk.f32.mxu1 %vm374_vm1, %v4766_v35  ;;  %v582_v49 = vpop.permute.xlu1 %581 }
 0x29e   :  { %3989 = vmatprep.subr.mxu0 %v582_v49 }
 0x29f   :  { %3990 = vmatpush3.msra.mxu0 %v582_v49  ;;  %v4853_v49 = vadd.f32 %v112_v39, %v100_v34 }
 0x2a0   :  { %3985 = vmatmul.mubr.msk.f32.gmra.mxu1 %vm374_vm1, %v4764_v33  ;;  %3991 = vmatprep.subr.mxu0 %v580_v50 }
 0x2a1   :  { %3992 = vmatpush3.msra.mxu0 %v580_v50  ;;  %v114_v50 = vsel %vm108_vm13, -1e+09, %v4579_v15  ;;  %v4871_v4 = vpop.permute.xlu1 %724 }
 0x2a2   :  { %3993 = vmatprep.subr.mxu0 %v578_v46  ;;  %v4858_v59 = vadd.f32 %v114_v50, %v102_v55 }
 0x2a3   :  { %3994 = vmatpush3.msra.mxu0 %v578_v46 }
 0x2a4   :  { %3995 = vmatprep.subr.mxu0 %v576_v47 }
 0x2a5   :  { %3996 = vmatpush3.msra.mxu0 %v576_v47 }
 0x2a6   :  { %3997 = vmatprep.subr.mxu0 %v574_v48 }
 0x2a7   :  { %3998 = vmatpush3.msra.mxu0 %v574_v48  ;;  %v4851_v48 = vadd.f32 %v115_v32, %v103_v42 }
 0x2a8   :  { %4008 = vmatprep.subr.msk.mxu0 %vm374_vm1, %v4824_v51 }
 0x358   :  { %v3980_v25 = vpop.f32.mrf.mxu1 }
 0x359   :  { %v495_v27 = vmul.f32 0.25, %v3980_v25 }
 0x35a   :  { %v465_v30 = vpop.f32.mrf.mxu1 }
 0x35b   :  { %v494_v40 = vmul.f32 0.25, %v465_v30  ;;  %v501_v41 = vadd.f32 %v495_v27, %v4835_v21 }
 0x35c   :  { %v3983_v43 = vpop.f32.mrf.mxu1 }
 0x35d   :  { %v497_v44 = vmul.f32 0.25, %v3983_v43  ;;  %v510_v45 = vsel %vm506_vm12, %v501_v41, -inf  ;;  %v500_v46 = vadd.f32 %v494_v40, %v4841_v28 }
 0x35e   :  { %511 = vmax.xlane.f32.xlu1 %v510_v45  ;;  %v475_v47 = vpop.f32.mrf.mxu1 }
 0x35f   :  { %v496_v52 = vmul.f32 0.25, %v475_v47  ;;  %v507_v53 = vsel %vm506_vm12, %v500_v46, -inf  ;;  %v503_v54 = vadd.f32 %v497_v44, %v4843_v31 }
 0x360   :  { %508 = vmax.xlane.f32.xlu0 %v507_v53  ;;  %v3986_v56 = vpop.f32.mrf.mxu1 }
 0x361   :  { %v499_v57 = vmul.f32 0.25, %v3986_v56  ;;  %v516_v61 = vsel %vm506_vm12, %v503_v54, -inf  ;;  %v502_v63 = vadd.f32 %v496_v52, %v4853_v49 }
 0x362   :  { %v485_v58 = vpop.f32.mrf.mxu1 }
 0x363   :  { %v498_v60 = vmul.f32 0.25, %v485_v58  ;;  %v505_v62 = vadd.f32 %v499_v57, %v4851_v48  ;;  %v513_v1 = vsel %vm506_vm12, %v502_v63, -inf }
 0x364   :  { %517 = vmax.xlane.f32.xlu0 %v516_v61 }
 0x365   :  { %v522_v0 = vsel %vm506_vm12, %v505_v62, -inf  ;;  %v504_v2 = vadd.f32 %v498_v60, %v4858_v59 }
 0x366   :  { %523 = vmax.xlane.f32.xlu1 %v522_v0 }
 0x367   :  { %v519_v3 = vsel %vm506_vm12, %v504_v2, -inf }
 0x368   :  { %514 = vmax.xlane.f32.xlu0 %v513_v1 }
 0x36c   :  { %520 = vmax.xlane.f32.xlu0 %v519_v3 }
 0x377   :  { %720 = vrot.lane.b32.xlu1 %v4780_v38, %s4577_s27 }
 0x382   :  { %722 = vrot.lane.b32.xlu0 %v4774_v37, %s4577_s27 }
 0x3e7   :  { %v512_v5 = vpop.xlane.xlu1 %511 }
 0x3e8   :  { %v526_v6 = vsub.f32 %v501_v41, %v512_v5 }
 0x3e9   :  { %v509_v7 = vpop.xlane.xlu0 %508 }
 0x3ea   :  { %v533_v8 = vmul.f32 1.442695, %v526_v6  ;;  %v525_v9 = vsub.f32 %v500_v46, %v509_v7 }
 0x3ec   :  { %4377 = vpow2.f32 %v533_v8  ;;  %v531_v10 = vmul.f32 1.442695, %v525_v9 }
 0x3ed   :  { %v518_v11 = vpop.xlane.xlu0 %517 }
 0x3ee   :  { %4379 = vpow2.f32 %v531_v10  ;;  %v528_v12 = vsub.f32 %v503_v54, %v518_v11 }
 0x3ef   :  { %v524_v32 = vpop.xlane.xlu1 %523 }
 0x3f0   :  { %v537_v13 = vmul.f32 1.442695, %v528_v12  ;;  %v530_v34 = vsub.f32 %v505_v62, %v524_v32 }
 0x3f1   :  { %v515_v14 = vpop.xlane.xlu0 %514 }
 0x3f2   :  { %4381 = vpow2.f32 %v537_v13  ;;  %v527_v16 = vsub.f32 %v502_v63, %v515_v14  ;;  %v541_v40 = vmul.f32 1.442695, %v530_v34 }
 0x3f3   :  { %v721_v45 = vpop.permute.xlu1 %720 }
 0x3f4   :  { %v535_v18 = vmul.f32 1.442695, %v527_v16 }
 0x3f5   :  { %v521_v27 = vpop.xlane.xlu0 %520 }
 0x3f6   :  { %4383 = vpow2.f32 %v535_v18  ;;  %v529_v30 = vsub.f32 %v504_v2, %v521_v27 }
 0x3f8   :  { %v539_v39 = vmul.f32 1.442695, %v529_v30 }
 0x3f9   :  { %v4378_v19 = vpop.eup %4377  ;;  %v723_v46 = vpop.permute.xlu0 %722 }
 0x3fa   :  { %v546_v20 = vsel %vm506_vm12, %v4378_v19, 0.0  ;;  %4385 = vpow2.f32 %v539_v39 }
 0x3fb   :  { %v4380_v17 = vpop.eup %4379  ;;  %547 = vadd.xlane.f32.xlu1 %v546_v20  ;;  %4387 = vpow2.f32 %v541_v40 }
 0x3fc   :  { %v543_v22 = vsel %vm506_vm12, %v4380_v17, 0.0 }
 0x3fd   :  { %544 = vadd.xlane.f32.xlu0 %v543_v22 }
 0x3ff   :  { %v4382_v23 = vpop.eup %4381 }
 0x400   :  { %v552_v24 = vsel %vm506_vm12, %v4382_v23, 0.0 }
 0x401   :  { %553 = vadd.xlane.f32.xlu1 %v552_v24 }
 0x403   :  { %v4384_v25 = vpop.eup %4383 }
 0x404   :  { %v549_v26 = vsel %vm506_vm12, %v4384_v25, 0.0 }
 0x405   :  { %550 = vadd.xlane.f32.xlu0 %v549_v26 }
 0x407   :  { %v4386_v41 = vpop.eup %4385 }
 0x408   :  { %v555_v42 = vsel %vm506_vm12, %v4386_v41, 0.0  ;;  %v4388_v43 = vpop.eup %4387 }
 0x409   :  { %v558_v44 = vsel %vm506_vm12, %v4388_v43, 0.0 }
 0x412   :  { %716 = vrot.lane.b32.xlu1 %v4760_v29, %s4577_s27 }
 0x41b   :  { %718 = vrot.lane.b32.xlu0 %v4770_v36, %s4577_s27 }
 0x436   :  { %556 = vadd.xlane.f32.xlu1 %v555_v42 }
 0x43a   :  { %559 = vadd.xlane.f32.xlu0 %v558_v44 }
 0x447   :  { %706 = vrot.lane.b32.xlu1 %v4770_v36, %s4580_s28 }
 0x44b   :  { %710 = vrot.lane.b32.xlu1 %v4774_v37, %s4580_s28 }
 0x44f   :  { %714 = vrot.lane.b32.xlu1 %v4764_v33, %s4580_s28 }
 0x450   :  { %704 = vrot.lane.b32.xlu0 %v4760_v29, %s4580_s28 }
 0x454   :  { %708 = vrot.lane.b32.xlu0 %v4780_v38, %s4580_s28 }
 0x458   :  { %712 = vrot.lane.b32.xlu0 %v4766_v35, %s4580_s28 }
 0x484   :  { %v548_v47 = vpop.xlane.xlu1 %547 }
 0x485   :  { %4389 = vrcp.f32 %v548_v47 }
 0x486   :  { %v545_v50 = vpop.xlane.xlu0 %544 }
 0x487   :  { %4391 = vrcp.f32 %v545_v50 }
 0x48a   :  { %v554_v52 = vpop.xlane.xlu1 %553 }
 0x48b   :  { %4393 = vrcp.f32 %v554_v52 }
 0x48e   :  { %v551_v53 = vpop.xlane.xlu0 %550  ;;  %v717_v63 = vpop.permute.xlu1 %716 }
 0x48f   :  { %4395 = vrcp.f32 %v551_v53 }
 0x492   :  { %v4390_v54 = vpop.eup %4389 }
 0x493   :  { %v568_v57 = vmul.f32 %v4390_v54, %v4378_v19 }
 0x494   :  { %v4392_v55 = vpop.eup %4391 }
 0x495   :  { %v567_v56 = vmul.f32 %v4392_v55, %v4380_v17 }
 0x497   :  { %3999 = vmatprep.mubr.msk.f32.mxu0 %vm506_vm12, %v567_v56 }
 0x498   :  { %4000 = vmatmul.mubr.msk.f32.vlgmr.msra.gmra.mxu0 %vm506_vm12, %v568_v57  ;;  %v4394_v58 = vpop.eup %4393 }
 0x499   :  { %4009 = vmatpush3.xpose.msk.msra.mxu0 %vm374_vm1, %v4824_v51  ;;  %v570_v62 = vmul.f32 %v4394_v58, %v4382_v23  ;;  %v719_v51 = vpop.permute.xlu0 %718 }
 0x49a   :  { %4010 = vmatprep.subr.msk.mxu0 %vm374_vm1, %v4871_v4 }
 0x49c   :  { %v4396_v60 = vpop.eup %4395 }
 0x49d   :  { %4011 = vmatpush3.xpose.msk.msra.mxu0 %vm374_vm1, %v4871_v4  ;;  %v569_v61 = vmul.f32 %v4396_v60, %v4384_v25 }
 0x49e   :  { %4012 = vmatprep.subr.msk.mxu0 %vm374_vm1, %v723_v46 }
 0x49f   :  { %4002 = vmatprep.mubr.msk.f32.mxu0 %vm506_vm12, %v569_v61 }
 0x4a0   :  { %4003 = vmatmul.mubr.msk.f32.gmra.mxu0 %vm506_vm12, %v570_v62 }
 0x4a1   :  { %4013 = vmatpush3.xpose.msk.msra.mxu0 %vm374_vm1, %v723_v46 }
 0x4a2   :  { %4014 = vmatprep.subr.msk.mxu0 %vm374_vm1, %v721_v45 }
 0x4a5   :  { %4015 = vmatpush3.xpose.msk.msra.mxu0 %vm374_vm1, %v721_v45 }
 0x4a6   :  { %4016 = vmatprep.subr.msk.mxu0 %vm374_vm1, %v719_v51 }
 0x4a9   :  { %4017 = vmatpush3.xpose.msk.msra.mxu0 %vm374_vm1, %v719_v51 }
 0x4aa   :  { %4018 = vmatprep.subr.msk.mxu0 %vm374_vm1, %v717_v63 }
 0x4ad   :  { %4019 = vmatpush3.xpose.msk.msra.mxu0 %vm374_vm1, %v717_v63 }
 0x4bf   :  { %v557_v0 = vpop.xlane.xlu1 %556 }
 0x4c0   :  { %4397 = vrcp.f32 %v557_v0 }
 0x4c3   :  { %v560_v1 = vpop.xlane.xlu0 %559  ;;  %v707_v7 = vpop.permute.xlu1 %706 }
 0x4c4   :  { %4399 = vrcp.f32 %v560_v1 }
 0x4c7   :  { %v705_v4 = vpop.permute.xlu0 %704  ;;  %v711_v9 = vpop.permute.xlu1 %710 }
 0x4cb   :  { %v709_v8 = vpop.permute.xlu0 %708  ;;  %v715_v11 = vpop.permute.xlu1 %714 }
 0x4cd   :  { %v4398_v2 = vpop.eup %4397 }
 0x4ce   :  { %v571_v3 = vmul.f32 %v4398_v2, %v4386_v41 }
 0x4cf   :  { %v713_v10 = vpop.permute.xlu0 %712 }
 0x4d0   :  { %4005 = vmatprep.mubr.msk.f32.mxu0 %vm506_vm12, %v571_v3 }
 0x4d1   :  { %v4400_v5 = vpop.eup %4399 }
 0x4d2   :  { %v572_v6 = vmul.f32 %v4400_v5, %v4388_v43 }
 0x4d4   :  { %4006 = vmatmul.mubr.msk.f32.gmra.mxu0 %vm506_vm12, %v572_v6 }
 0x4d5   :  { %4020 = vmatprep.mubr.msk.f32.mxu0 %vm374_vm1, %v705_v4 }
 0x4d8   :  { %4021 = vmatmul.mubr.msk.f32.vlgmr.msra.gmra.mxu0 %vm374_vm1, %v707_v7 }
 0x4d9   :  { %4023 = vmatprep.mubr.msk.f32.mxu0 %vm374_vm1, %v709_v8 }
 0x4dc   :  { %4024 = vmatmul.mubr.msk.f32.gmra.mxu0 %vm374_vm1, %v711_v9 }
 0x4dd   :  { %4026 = vmatprep.mubr.msk.f32.mxu0 %vm374_vm1, %v713_v10 }
 0x4e0   :  { %4027 = vmatmul.mubr.msk.f32.gmra.mxu0 %vm374_vm1, %v715_v11 }
 0x558   :  { %v4921_v12 = vpop.f32.mrf.mxu0 }
 0x55a   :  { %v4923_v13 = vpop.f32.mrf.mxu0 }
 0x560   :  { %v4925_v14 = vpop.f32.mrf.mxu0 }
 0x562   :  { %v4927_v16 = vpop.f32.mrf.mxu0 }
 0x594   :  { %v4929_v18 = vpop.f32.mrf.mxu0 }
 0x596   :  { %v4931_v19 = vpop.f32.mrf.mxu0 }
 0x598   :  { %v4022_v20 = vpop.f32.mrf.mxu0 }
 0x599   :  { %v848_v17 = vmul.f32 0.25, %v4022_v20 }
 0x59a   :  { %v818_v22 = vpop.f32.mrf.mxu0 }
 0x59b   :  { %v847_v23 = vmul.f32 0.25, %v818_v22  ;;  %v854_v24 = vadd.f32 %v848_v17, %v4835_v21 }
 0x59c   :  { %v4025_v25 = vpop.f32.mrf.mxu0 }
 0x59d   :  { %v850_v26 = vmul.f32 0.25, %v4025_v25  ;;  %v862_v27 = vsel %vm506_vm12, %v854_v24, -inf  ;;  %v853_v30 = vadd.f32 %v847_v23, %v4841_v28 }
 0x59e   :  { %863 = vmax.xlane.f32.xlu1 %v862_v27  ;;  %v828_v32 = vpop.f32.mrf.mxu0 }
 0x59f   :  { %v849_v34 = vmul.f32 0.25, %v828_v32  ;;  %v859_v39 = vsel %vm506_vm12, %v853_v30, -inf  ;;  %v856_v40 = vadd.f32 %v850_v26, %v4843_v31 }
 0x5a0   :  { %860 = vmax.xlane.f32.xlu0 %v859_v39  ;;  %v4028_v41 = vpop.f32.mrf.mxu0 }
 0x5a1   :  { %v852_v42 = vmul.f32 0.25, %v4028_v41  ;;  %v868_v45 = vsel %vm506_vm12, %v856_v40, -inf  ;;  %v855_v47 = vadd.f32 %v849_v34, %v4853_v49 }
 0x5a2   :  { %v838_v43 = vpop.f32.mrf.mxu0 }
 0x5a3   :  { %v851_v44 = vmul.f32 0.25, %v838_v43  ;;  %v858_v46 = vadd.f32 %v852_v42, %v4851_v48  ;;  %v865_v52 = vsel %vm506_vm12, %v855_v47, -inf }
 0x5a4   :  { %869 = vmax.xlane.f32.xlu0 %v868_v45 }
 0x5a5   :  { %v874_v50 = vsel %vm506_vm12, %v858_v46, -inf  ;;  %v857_v53 = vadd.f32 %v851_v44, %v4858_v59 }
 0x5a6   :  { %875 = vmax.xlane.f32.xlu1 %v874_v50 }
 0x5a7   :  { %v871_v54 = vsel %vm506_vm12, %v857_v53, -inf }
 0x5a8   :  { %866 = vmax.xlane.f32.xlu0 %v865_v52  ;;  %v352_v52 = vld [vmem:[%s5787_s6] sm:$0xff] }
 0x5ac   :  { %872 = vmax.xlane.f32.xlu0 %v871_v54 }
 0x5b7   :  { %933 = vrot.lane.b32.xlu1 %v4766_v35, %s4581_s29 }
 0x5bb   :  { %931 = vrot.lane.b32.xlu1 %v4774_v37, %s4581_s29 }
 0x5bf   :  { %929 = vrot.lane.b32.xlu1 %v4780_v38, %s4581_s29 }
 0x5c2   :  { %935 = vrot.lane.b32.xlu0 %v4764_v33, %s4581_s29 }
 0x627   :  { %v864_v55 = vpop.xlane.xlu1 %863 }
 0x628   :  { %v878_v56 = vsub.f32 %v854_v24, %v864_v55 }
 0x629   :  { %v861_v57 = vpop.xlane.xlu0 %860 }
 0x62a   :  { %v885_v58 = vmul.f32 1.442695, %v878_v56  ;;  %v877_v60 = vsub.f32 %v853_v30, %v861_v57 }
 0x62c   :  { %4401 = vpow2.f32 %v885_v58  ;;  %v883_v61 = vmul.f32 1.442695, %v877_v60 }
 0x62d   :  { %v870_v62 = vpop.xlane.xlu0 %869 }
 0x62e   :  { %4403 = vpow2.f32 %v883_v61  ;;  %v880_v51 = vsub.f32 %v856_v40, %v870_v62 }
 0x62f   :  { %v876_v35 = vpop.xlane.xlu1 %875 }
 0x630   :  { %v889_v63 = vmul.f32 1.442695, %v880_v51  ;;  %v882_v0 = vsub.f32 %v858_v46, %v876_v35 }
 0x631   :  { %v867_v37 = vpop.xlane.xlu0 %866 }
 0x632   :  { %4405 = vpow2.f32 %v889_v63  ;;  %v893_v1 = vmul.f32 1.442695, %v882_v0  ;;  %v879_v38 = vsub.f32 %v855_v47, %v867_v37  ;;  %v353_v47 = vld [vmem:[%s5787_s6 + $0x8] sm:$0xff] }
 0x633   :  { %v934_v3 = vpop.permute.xlu1 %933 }
 0x634   :  { %v887_v2 = vmul.f32 1.442695, %v879_v38  ;;  %4407 = vpow2.f32 %v893_v1  ;;  %v3606_v1 = vld [vmem:[%s5788_s7] ss:$0 sm:$0xff] }
 0x635   :  { %v873_v33 = vpop.xlane.xlu0 %872 }
 0x636   :  { %4409 = vpow2.f32 %v887_v2  ;;  %v881_v4 = vsub.f32 %v857_v53, %v873_v33 }
 0x637   :  { %v932_v8 = vpop.permute.xlu1 %931 }
 0x638   :  { %v891_v5 = vmul.f32 1.442695, %v881_v4 }
 0x639   :  { %v4402_v6 = vpop.eup %4401  ;;  %v936_v7 = vpop.permute.xlu0 %935 }
 0x63a   :  { %4411 = vpow2.f32 %v891_v5  ;;  %4029 = vmatprep.subr.mxu0 %v936_v7  ;;  %4345 = vmatprep.subr.mxu1 %v936_v7  ;;  %v898_v9 = vsel %vm506_vm12, %v4402_v6, 0.0 }
 0x63b   :  { %v4404_v10 = vpop.eup %4403  ;;  %4030 = vmatpush3.msra.mxu0 %v936_v7  ;;  %4351 = vmatpush3.msra.mxu1 %v936_v7  ;;  %v930_v17 = vpop.permute.xlu1 %929 }
 0x63c   :  { %899 = vadd.xlane.f32.xlu1 %v898_v9  ;;  %4031 = vmatprep.subr.mxu0 %v934_v3  ;;  %v895_v11 = vsel %vm506_vm12, %v4404_v10, 0.0 }
 0x63d   :  { %4346 = vmatprep.subr.mxu1 %v934_v3  ;;  %896 = vadd.xlane.f32.xlu0 %v895_v11 }
 0x63e   :  { %4032 = vmatpush3.msra.mxu0 %v934_v3  ;;  %4352 = vmatpush3.msra.mxu1 %v934_v3  ;;  %v4569_v3 = vld [vmem:[%s5804_s26 + $0x8] sm:$0xff] }
 0x63f   :  { %v4406_v20 = vpop.eup %4405  ;;  %4033 = vmatprep.subr.mxu0 %v932_v8  ;;  %4347 = vmatprep.subr.mxu1 %v932_v8 }
 0x640   :  { %4034 = vmatpush3.msra.mxu0 %v932_v8  ;;  %4353 = vmatpush3.msra.mxu1 %v932_v8  ;;  %v904_v22 = vsel %vm506_vm12, %v4406_v20, 0.0 }
 0x641   :  { %4035 = vmatprep.subr.mxu0 %v930_v17  ;;  %4348 = vmatprep.subr.mxu1 %v930_v17  ;;  %v4408_v23 = vpop.eup %4407 }
 0x642   :  { %905 = vadd.xlane.f32.xlu1 %v904_v22  ;;  %4036 = vmatpush3.msra.mxu0 %v930_v17  ;;  %v910_v26 = vsel %vm506_vm12, %v4408_v23, 0.0  ;;  %v4571_v22 = vld [vmem:[%s5804_s26 + $0x18] sm:$0xff] }
 0x643   :  { %v4410_v24 = vpop.eup %4409  ;;  %4354 = vmatpush3.msra.mxu1 %v930_v17 }
 0x644   :  { %v901_v25 = vsel %vm506_vm12, %v4410_v24, 0.0 }
 0x645   :  { %902 = vadd.xlane.f32.xlu0 %v901_v25 }
 0x646   :  { %911 = vadd.xlane.f32.xlu1 %v910_v26 }
 0x647   :  { %v4412_v27 = vpop.eup %4411 }
 0x648   :  { %v907_v30 = vsel %vm506_vm12, %v4412_v27, 0.0 }
 0x649   :  { %908 = vadd.xlane.f32.xlu0 %v907_v30  ;;  %v4572_v30 = vld [vmem:[%s5804_s26 + $0x10] sm:$0xff] }
 0x657   :  { %925 = vrot.lane.b32.xlu1 %v4760_v29, %s4581_s29 }
 0x65f   :  { %927 = vrot.lane.b32.xlu0 %v4770_v36, %s4581_s29 }
 0x6c5   :  { %v900_v32 = vpop.xlane.xlu1 %899 }
 0x6c6   :  { %v897_v34 = vpop.xlane.xlu0 %896 }
 0x6c7   :  { %4413 = vrcp.f32 %v897_v34 }
 0x6c8   :  { %4415 = vrcp.f32 %v900_v32 }
 0x6cb   :  { %v906_v39 = vpop.xlane.xlu1 %905 }
 0x6cc   :  { %4417 = vrcp.f32 %v906_v39 }
 0x6ce   :  { %v903_v40 = vpop.xlane.xlu0 %902 }
 0x6cf   :  { %4419 = vrcp.f32 %v903_v40  ;;  %v912_v41 = vpop.xlane.xlu1 %911 }
 0x6d0   :  { %4421 = vrcp.f32 %v912_v41  ;;  %v4573_v41 = vld [vmem:[%s5804_s26 + $0x28] sm:$0xff] }
 0x6d2   :  { %v909_v42 = vpop.xlane.xlu0 %908 }
 0x6d3   :  { %4423 = vrcp.f32 %v909_v42  ;;  %v926_v29 = vpop.permute.xlu1 %925 }
 0x6d4   :  { %v4414_v43 = vpop.eup %4413 }
 0x6d5   :  { %v919_v44 = vmul.f32 %v4414_v43, %v4404_v10  ;;  %v4416_v45 = vpop.eup %4415 }
 0x6d6   :  { %v928_v46 = vpop.permute.xlu0 %927  ;;  %v920_v36 = vmul.f32 %v4416_v45, %v4402_v6  ;;  %v4570_v6 = vld [vmem:[%s5804_s26] sm:$0xff] }
 0x6d7   :  { %4037 = vmatprep.subr.mxu0 %v928_v46  ;;  %4349 = vmatprep.subr.mxu1 %v928_v46 }
 0x6d8   :  { %4041 = vmatprep.mubr.msk.f32.mxu0 %vm506_vm12, %v919_v44  ;;  %4038 = vmatpush3.msra.mxu0 %v928_v46 }
 0x6d9   :  { %4355 = vmatpush3.msra.mxu1 %v928_v46  ;;  %4039 = vmatprep.subr.mxu0 %v926_v29  ;;  %v4418_v50 = vpop.eup %4417 }
 0x6da   :  { %4350 = vmatprep.subr.mxu1 %v926_v29  ;;  %4040 = vmatpush3.msra.mxu0 %v926_v29  ;;  %v922_v55 = vmul.f32 %v4418_v50, %v4406_v20 }
 0x6db   :  { %4356 = vmatpush3.msra.mxu1 %v926_v29  ;;  %4042 = vmatmul.mubr.msk.f32.vlgmr.msra.gmra.mxu0 %vm506_vm12, %v920_v36  ;;  %v4574_v29 = vld [vmem:[%s5804_s26 + $0x20] sm:$0xff] }
 0x6dc   :  { %v4420_v53 = vpop.eup %4419  ;;  %4063 = vmatprep.subr.mxu0 %v353_v47 }
 0x6dd   :  { %v921_v54 = vmul.f32 %v4420_v53, %v4410_v24  ;;  %4064 = vmatpush3.msra.mxu0 %v353_v47  ;;  %v4422_v56 = vpop.eup %4421 }
 0x6de   :  { %4065 = vmatprep.subr.mxu0 %v352_v52  ;;  %v924_v60 = vmul.f32 %v4422_v56, %v4408_v23 }
 0x6df   :  { %4044 = vmatprep.mubr.msk.f32.mxu0 %vm506_vm12, %v921_v54  ;;  %4066 = vmatpush3.msra.mxu0 %v352_v52 }
 0x6e0   :  { %v4424_v57 = vpop.eup %4423  ;;  %4045 = vmatmul.mubr.msk.f32.gmra.mxu0 %vm506_vm12, %v922_v55 }
 0x6e1   :  { %4067 = vmatprep.mubr.msk.f32.mxu0 %vm374_vm1, %v4923_v13  ;;  %v923_v58 = vmul.f32 %v4424_v57, %v4412_v27  ;;  %v355_v13 = vld [vmem:[%s5787_s6 + $0x18] sm:$0xff] }
 0x6e2   :  { %4050 = vmatprep.subr.mxu1 %v355_v13 }
 0x6e3   :  { %4047 = vmatprep.mubr.msk.f32.mxu1 %vm506_vm12, %v923_v58 }
 0x6e4   :  { %4048 = vmatmul.mubr.msk.f32.vlgmr.msra.gmra.mxu1 %vm506_vm12, %v924_v60  ;;  %4068 = vmatmul.mubr.msk.f32.vlgmr.msra.gmra.mxu0 %vm374_vm1, %v4921_v12  ;;  %v354_v12 = vld [vmem:[%s5787_s6 + $0x10] sm:$0xff] }
 0x6e5   :  { %4070 = vmatprep.mubr.msk.f32.mxu0 %vm374_vm1, %v4927_v16  ;;  %4051 = vmatpush3.msra.mxu1 %v355_v13 }
 0x6e6   :  { %4052 = vmatprep.subr.mxu1 %v354_v12 }
 0x6e7   :  { %4053 = vmatpush3.msra.mxu1 %v354_v12 }
 0x6e8   :  { %4071 = vmatmul.mubr.msk.f32.gmra.mxu0 %vm374_vm1, %v4925_v14 }
 0x6e9   :  { %4073 = vmatprep.mubr.msk.f32.mxu0 %vm374_vm1, %v4931_v19 }
 0x6ec   :  { %4074 = vmatmul.mubr.msk.f32.gmra.mxu0 %vm374_vm1, %v4929_v18 }
 0x79b   :  { %v4043_v16 = vpop.f32.mrf.mxu0 }
 0x79d   :  { %v1027_v14 = vpop.f32.mrf.mxu0 }
 0x79e   :  { %4054 = vmatprep.mubr.msk.f32.mxu1 %vm374_vm1, %v1027_v14 }
 0x79f   :  { %4055 = vmatmul.mubr.msk.f32.vlgmr.msra.gmra.mxu1 %vm374_vm1, %v4043_v16 }
 0x7a0   :  { %v4046_v19 = vpop.f32.mrf.mxu0 }
 0x7a2   :  { %v1037_v18 = vpop.f32.mrf.mxu0 }
 0x7a3   :  { %4057 = vmatprep.mubr.msk.f32.mxu1 %vm374_vm1, %v1037_v18 }
 0x7a4   :  { %v4049_v61 = vpop.f32.mrf.mxu1  ;;  %4058 = vmatmul.mubr.msk.f32.gmra.mxu1 %vm374_vm1, %v4046_v19  ;;  %v4069_v51 = vpop.f32.mrf.mxu0 }
 0x7a6   :  { %v1047_v62 = vpop.f32.mrf.mxu1  ;;  %v1253_v35 = vpop.f32.mrf.mxu0 }
 0x7a7   :  { %4060 = vmatprep.mubr.msk.f32.mxu1 %vm374_vm1, %v1047_v62 }
 0x7a8   :  { %4061 = vmatmul.mubr.msk.f32.gmra.mxu1 %vm374_vm1, %v4049_v61  ;;  %v4072_v63 = vpop.f32.mrf.mxu0 }
 0x7aa   :  { %v1263_v2 = vpop.f32.mrf.mxu0 }
 0x7ac   :  { %v4075_v10 = vpop.f32.mrf.mxu0 }
 0x7ae   :  { %v1273_v39 = vpop.f32.mrf.mxu0 }
 0x85f   :  { %v4056_v0 = vpop.f32.mrf.mxu1 }
 0x860   :  { %v1259_v37 = vadd.f32 %v4069_v51, %v4056_v0 }
 0x861   :  { %v1140_v38 = vpop.f32.mrf.mxu1 }
 0x862   :  { %v1283_v33 = vadd.f32 %v4569_v3, %v1259_v37  ;;  %v1254_v4 = vadd.f32 %v1253_v35, %v1140_v38 }
 0x864   :  { %v5005_v5 = vadd.f32 %v3606_v1, %v1283_v33  ;;  %v1282_v7 = vadd.f32 %v4570_v6, %v1254_v4  ;;  %v4059_v8 = vpop.f32.mrf.mxu1 }
 0x865   :  { %v1269_v9 = vadd.f32 %v4072_v63, %v4059_v8 }
 0x866   :  { %v5010_v11 = vadd.f32 %v3606_v1, %v1282_v7  ;;  %v1150_v20 = vpop.f32.mrf.mxu1  ;;  %v1306_v17 = vsel %vm124_vm0, %v5005_v5, 0.0 }
 0x867   :  { %v1285_v23 = vadd.f32 %v4571_v22, %v1269_v9  ;;  %v1264_v24 = vadd.f32 %v1263_v2, %v1150_v20  ;;  %1307 = vadd.xlane.f32.xlu1 %v1306_v17  ;;  %v1408_v20 = vld [vmem:[%s5789_s10 + $0x18] sm:$0xff]  ;;  %v1407_v17 = vld [vmem:[%s5789_s10 + $0x10] sm:$0xff]  ;;  %v1406_v22 = vld [vmem:[%s5789_s10 + $0x8] sm:$0xff] }
 0x868   :  { %v4062_v25 = vpop.f32.mrf.mxu1  ;;  %v1303_v26 = vsel %vm124_vm0, %v5010_v11, 0.0  ;;  %4076 = vmatprep.subr.mxu1 %v1408_v20 }
 0x869   :  { %v5019_v27 = vadd.f32 %v3606_v1, %v1285_v23  ;;  %v1284_v32 = vadd.f32 %v4572_v30, %v1264_v24  ;;  %v1279_v34 = vadd.f32 %v4075_v10, %v4062_v25  ;;  %1304 = vadd.xlane.f32.xlu0 %v1303_v26  ;;  %4077 = vmatpush3.msra.mxu1 %v1408_v20  ;;  %v1405_v23 = vld [vmem:[%s5789_s10] sm:$0xff] }
 0x86a   :  { %v1160_v40 = vpop.f32.mrf.mxu1  ;;  %4078 = vmatprep.subr.mxu1 %v1407_v17  ;;  %v1583_v20 = vld [vmem:[%s5792_s12 + $0x60] sm:$0xff] }
 0x86b   :  { %v1287_v42 = vadd.f32 %v4573_v41, %v1279_v34  ;;  %v1274_v43 = vadd.f32 %v1273_v39, %v1160_v40  ;;  %v1312_v44 = vsel %vm124_vm0, %v5019_v27, 0.0  ;;  %v5029_v45 = vadd.f32 %v3606_v1, %v1284_v32  ;;  %4079 = vmatpush3.msra.mxu1 %v1407_v17  ;;  %v1582_v17 = vld [vmem:[%s5792_s12 + $0x58] sm:$0xff] }
 0x86c   :  { %4080 = vmatprep.subr.mxu1 %v1406_v22 }
 0x86d   :  { %v5031_v46 = vadd.f32 %v3606_v1, %v1287_v42  ;;  %v1286_v36 = vadd.f32 %v4574_v29, %v1274_v43  ;;  %1313 = vadd.xlane.f32.xlu0 %v1312_v44  ;;  %v1309_v52 = vsel %vm124_vm0, %v5029_v45, 0.0  ;;  %4081 = vmatpush3.msra.mxu1 %v1406_v22  ;;  %v1581_v22 = vld [vmem:[%s5792_s12 + $0x50] sm:$0xff] }
 0x86e   :  { %4082 = vmatprep.subr.mxu1 %v1405_v23 }
 0x86f   :  { %v1318_v47 = vsel %vm124_vm0, %v5031_v46, 0.0  ;;  %v5038_v50 = vadd.f32 %v3606_v1, %v1286_v36  ;;  %4083 = vmatpush3.msra.mxu1 %v1405_v23  ;;  %v1580_v23 = vld [vmem:[%s5792_s12 + $0x48] sm:$0xff] }
 0x870   :  { %1319 = vadd.xlane.f32.xlu1 %v1318_v47 }
 0x871   :  { %1310 = vadd.xlane.f32.xlu0 %v1309_v52  ;;  %v1315_v53 = vsel %vm124_vm0, %v5038_v50, 0.0 }
 0x875   :  { %1316 = vadd.xlane.f32.xlu0 %v1315_v53 }
 0x8f0   :  { %v1308_v54 = vpop.xlane.xlu1 %1307 }
 0x8f1   :  { %v1322_v55 = vmul.f32 0.03125, %v1308_v54 }
 0x8f2   :  { %v1305_v56 = vpop.xlane.xlu0 %1304 }
 0x8f3   :  { %v5045_v57 = vsub.f32 %v5005_v5, %v1322_v55  ;;  %v1321_v58 = vmul.f32 0.03125, %v1305_v56  ;;  %v3607_v56 = vld [vmem:[%s5790_s8] ss:$0 sm:$0xff] }
 0x8f5   :  { %v5048_v60 = vsub.f32 %v5010_v11, %v1321_v58  ;;  %v1334_v13 = vmul.f32 %v5045_v57, %v5045_v57 }
 0x8f6   :  { %v1314_v12 = vpop.xlane.xlu0 %1313 }
 0x8f7   :  { %v1324_v16 = vmul.f32 0.03125, %v1314_v12  ;;  %v1342_v14 = vsel %vm124_vm0, %v1334_v13, 0.0  ;;  %v1333_v19 = vmul.f32 %v5048_v60, %v5048_v60 }
 0x8f8   :  { %1343 = vadd.xlane.f32.xlu1 %v1342_v14  ;;  %v3608_v14 = vld [vmem:[%s5791_s9] ss:$0 sm:$0xff] }
 0x8f9   :  { %v5056_v18 = vsub.f32 %v5019_v27, %v1324_v16  ;;  %v1320_v61 = vpop.xlane.xlu1 %1319  ;;  %v1339_v62 = vsel %vm124_vm0, %v1333_v19, 0.0 }
 0x8fa   :  { %v1326_v51 = vmul.f32 0.03125, %v1320_v61  ;;  %v1311_v35 = vpop.xlane.xlu0 %1310  ;;  %1340 = vadd.xlane.f32.xlu0 %v1339_v62 }
 0x8fb   :  { %v1323_v63 = vmul.f32 0.03125, %v1311_v35  ;;  %v1336_v0 = vmul.f32 %v5056_v18, %v5056_v18 }
 0x8fc   :  { %v5062_v37 = vsub.f32 %v5031_v46, %v1326_v51 }
 0x8fd   :  { %v5065_v1 = vsub.f32 %v5029_v45, %v1323_v63  ;;  %v1348_v38 = vsel %vm124_vm0, %v1336_v0, 0.0 }
 0x8fe   :  { %1349 = vadd.xlane.f32.xlu1 %v1348_v38  ;;  %v1317_v2 = vpop.xlane.xlu0 %1316  ;;  %v1338_v3 = vmul.f32 %v5062_v37, %v5062_v37 }
 0x8ff   :  { %v1325_v33 = vmul.f32 0.03125, %v1317_v2  ;;  %v1335_v4 = vmul.f32 %v5065_v1, %v5065_v1 }
 0x900   :  { %v1354_v6 = vsel %vm124_vm0, %v1338_v3, 0.0 }
 0x901   :  { %v5074_v7 = vsub.f32 %v5038_v50, %v1325_v33  ;;  %v1345_v8 = vsel %vm124_vm0, %v1335_v4, 0.0 }
 0x902   :  { %1355 = vadd.xlane.f32.xlu1 %v1354_v6  ;;  %1346 = vadd.xlane.f32.xlu0 %v1345_v8 }
 0x903   :  { %v1337_v9 = vmul.f32 %v5074_v7, %v5074_v7 }
 0x905   :  { %v1351_v10 = vsel %vm124_vm0, %v1337_v9, 0.0 }
 0x906   :  { %1352 = vadd.xlane.f32.xlu0 %v1351_v10 }
 0x981   :  { %v1344_v24 = vpop.xlane.xlu1 %1343 }
 0x982   :  { %v1358_v25 = vmul.f32 0.03125, %v1344_v24  ;;  %v1579_v24 = vld [vmem:[%s5792_s12 + $0x40] sm:$0xff] }
 0x983   :  { %v1341_v26 = vpop.xlane.xlu0 %1340 }
 0x984   :  { %v1364_v30 = vadd.f32 1e-05, %v1358_v25  ;;  %v1357_v32 = vmul.f32 0.03125, %v1341_v26  ;;  %v1578_v25 = vld [vmem:[%s5792_s12 + $0x38] sm:$0xff]  ;;  %v1577_v26 = vld [vmem:[%s5792_s12 + $0x30] sm:$0xff] }
 0x986   :  { %4425 = vrsqrt.f32 %v1364_v30  ;;  %v1363_v34 = vadd.f32 1e-05, %v1357_v32  ;;  %v1576_v30 = vld [vmem:[%s5792_s12 + $0x28] sm:$0xff]  ;;  %v1575_v32 = vld [vmem:[%s5792_s12 + $0x20] sm:$0xff] }
 0x987   :  { %v1350_v39 = vpop.xlane.xlu1 %1349 }
 0x988   :  { %4427 = vrsqrt.f32 %v1363_v34  ;;  %v1360_v40 = vmul.f32 0.03125, %v1350_v39  ;;  %v1574_v34 = vld [vmem:[%s5792_s12 + $0x18] sm:$0xff]  ;;  %v1573_v39 = vld [vmem:[%s5792_s12 + $0x10] sm:$0xff] }
 0x98a   :  { %v1366_v41 = vadd.f32 1e-05, %v1360_v40  ;;  %v1572_v40 = vld [vmem:[%s5792_s12 + $0x8] sm:$0xff] }
 0x98b   :  { %v1356_v42 = vpop.xlane.xlu1 %1355  ;;  %v1347_v43 = vpop.xlane.xlu0 %1346 }
 0x98c   :  { %4429 = vrsqrt.f32 %v1366_v41  ;;  %v1362_v44 = vmul.f32 0.03125, %v1356_v42  ;;  %v1359_v29 = vmul.f32 0.03125, %v1347_v43  ;;  %v1571_v41 = vld [vmem:[%s5792_s12] sm:$0xff] }
 0x98d   :  { %v3609_v42 = vld [vmem:[%s5793_s11] ss:$0 sm:$0xff] }
 0x98e   :  { %v1368_v36 = vadd.f32 1e-05, %v1362_v44  ;;  %v1365_v47 = vadd.f32 1e-05, %v1359_v29 }
 0x98f   :  { %v1353_v52 = vpop.xlane.xlu0 %1352 }
 0x990   :  { %4431 = vrsqrt.f32 %v1368_v36  ;;  %v1361_v53 = vmul.f32 0.03125, %v1353_v52 }
 0x991   :  { %4433 = vrsqrt.f32 %v1365_v47 }
 0x992   :  { %v1367_v54 = vadd.f32 1e-05, %v1361_v53 }
 0x993   :  { %v4426_v55 = vpop.eup %4425 }
 0x994   :  { %v1376_v58 = vmul.f32 %v4426_v55, %v5045_v57  ;;  %4435 = vrsqrt.f32 %v1367_v54 }
 0x995   :  { %v4428_v13 = vpop.eup %4427 }
 0x996   :  { %v1375_v12 = vmul.f32 %v4428_v13, %v5048_v60  ;;  %v1388_v16 = vmul.f32 %v3607_v56, %v1376_v58 }
 0x998   :  { %v1387_v19 = vmul.f32 %v3607_v56, %v1375_v12  ;;  %v1400_v51 = vadd.f32 %v3608_v14, %v1388_v16 }
 0x999   :  { %v4430_v61 = vpop.eup %4429 }
 0x99a   :  { %v1399_v62 = vadd.f32 %v3608_v14, %v1387_v19  ;;  %v1378_v35 = vmul.f32 %v4430_v61, %v5056_v18 }
 0x99c   :  { %4084 = vmatprep.mubr.msk.f32.mxu1 %vm124_vm0, %v1399_v62  ;;  %v1390_v60 = vmul.f32 %v3607_v56, %v1378_v35 }
 0x99d   :  { %v4432_v63 = vpop.eup %4431  ;;  %4085 = vmatmul.mubr.msk.f32.vlgmr.msra.gmra.mxu1 %vm124_vm0, %v1400_v51 }
 0x99e   :  { %v4434_v57 = vpop.eup %4433  ;;  %v1380_v38 = vmul.f32 %v4432_v63, %v5062_v37  ;;  %v1402_v6 = vadd.f32 %v3608_v14, %v1390_v60  ;;  %v1586_v37 = vld [vmem:[%s5792_s12 + $0x78] sm:$0xff] }
 0x99f   :  { %v1377_v0 = vmul.f32 %v4434_v57, %v5065_v1  ;;  %4093 = vmatprep.subr.mxu0 %v1586_v37  ;;  %v1585_v1 = vld [vmem:[%s5792_s12 + $0x70] sm:$0xff] }
 0x9a0   :  { %v1392_v9 = vmul.f32 %v3607_v56, %v1380_v38  ;;  %4094 = vmatpush3.msra.mxu0 %v1586_v37 }
 0x9a1   :  { %v4436_v2 = vpop.eup %4435  ;;  %v1389_v3 = vmul.f32 %v3607_v56, %v1377_v0  ;;  %4095 = vmatprep.subr.mxu0 %v1585_v1 }
 0x9a2   :  { %v1379_v33 = vmul.f32 %v4436_v2, %v5074_v7  ;;  %v1404_v10 = vadd.f32 %v3608_v14, %v1392_v9  ;;  %4096 = vmatpush3.msra.mxu0 %v1585_v1  ;;  %v1584_v7 = vld [vmem:[%s5792_s12 + $0x68] sm:$0xff] }
 0x9a3   :  { %v1401_v4 = vadd.f32 %v3608_v14, %v1389_v3  ;;  %4097 = vmatprep.subr.mxu0 %v1584_v7 }
 0x9a4   :  { %v1391_v8 = vmul.f32 %v3607_v56, %v1379_v33  ;;  %4098 = vmatpush3.msra.mxu0 %v1584_v7 }
 0x9a5   :  { %4087 = vmatprep.mubr.msk.f32.mxu1 %vm124_vm0, %v1401_v4  ;;  %4099 = vmatprep.subr.mxu0 %v1583_v20 }
 0x9a6   :  { %4088 = vmatmul.mubr.msk.f32.gmra.mxu1 %vm124_vm0, %v1402_v6  ;;  %v1403_v18 = vadd.f32 %v3608_v14, %v1391_v8  ;;  %4100 = vmatpush3.msra.mxu0 %v1583_v20 }
 0x9a7   :  { %4101 = vmatprep.subr.mxu0 %v1582_v17 }
 0x9a8   :  { %4090 = vmatprep.mubr.msk.f32.mxu1 %vm124_vm0, %v1403_v18  ;;  %4102 = vmatpush3.msra.mxu0 %v1582_v17 }
 0x9a9   :  { %4103 = vmatprep.subr.mxu0 %v1581_v22 }
 0x9aa   :  { %4091 = vmatmul.mubr.msk.f32.gmra.mxu1 %vm124_vm0, %v1404_v10  ;;  %4104 = vmatpush3.msra.mxu0 %v1581_v22 }
 0x9ab   :  { %4105 = vmatprep.subr.mxu0 %v1580_v23 }
 0x9ac   :  { %4106 = vmatpush3.msra.mxu0 %v1580_v23 }
 0x9ad   :  { %4107 = vmatprep.subr.mxu0 %v1579_v24 }
 0x9ae   :  { %4108 = vmatpush3.msra.mxu0 %v1579_v24 }
 0x9af   :  { %4109 = vmatprep.subr.mxu0 %v1578_v25 }
 0x9b0   :  { %4110 = vmatpush3.msra.mxu0 %v1578_v25 }
 0x9b1   :  { %4111 = vmatprep.subr.mxu0 %v1577_v26 }
 0x9b2   :  { %4112 = vmatpush3.msra.mxu0 %v1577_v26 }
 0x9b3   :  { %4113 = vmatprep.subr.mxu0 %v1576_v30 }
 0x9b4   :  { %4114 = vmatpush3.msra.mxu0 %v1576_v30 }
 0x9b5   :  { %4115 = vmatprep.subr.mxu0 %v1575_v32 }
 0x9b6   :  { %4116 = vmatpush3.msra.mxu0 %v1575_v32 }
 0x9b7   :  { %4117 = vmatprep.subr.mxu0 %v1574_v34 }
 0x9b8   :  { %4118 = vmatpush3.msra.mxu0 %v1574_v34 }
 0x9b9   :  { %4119 = vmatprep.subr.mxu0 %v1573_v39 }
 0x9ba   :  { %4120 = vmatpush3.msra.mxu0 %v1573_v39 }
 0x9bb   :  { %4121 = vmatprep.subr.mxu0 %v1572_v40 }
 0x9bc   :  { %4122 = vmatpush3.msra.mxu0 %v1572_v40 }
 0x9bd   :  { %4123 = vmatprep.subr.mxu0 %v1571_v41 }
 0x9be   :  { %4124 = vmatpush3.msra.mxu0 %v1571_v41  ;;  %v3616_v41 = vld [vmem:[%s5794_s13] ss:$0 sm:$0xff] }
 0xa5d   :  { %v4086_v43 = vpop.f32.mrf.mxu1 }
 0xa5e   :  { %v1506_v44 = vadd.f32 %v4086_v43, %v3609_v42 }
 0xa5f   :  { %v1500_v29 = vpop.f32.mrf.mxu1 }
 0xa60   :  { %v1530_v36 = vmul.f32 -1.702, %v1506_v44  ;;  %v1501_v47 = vadd.f32 %v3609_v42, %v1500_v29 }
 0xa62   :  { %v1537_v52 = vmul.f32 1.442695, %v1530_v36  ;;  %v1529_v53 = vmul.f32 -1.702, %v1501_v47 }
 0xa64   :  { %4437 = vpow2.f32 %v1537_v52  ;;  %v1535_v54 = vmul.f32 1.442695, %v1529_v53 }
 0xa66   :  { %4439 = vpow2.f32 %v1535_v54  ;;  %v4089_v55 = vpop.f32.mrf.mxu1 }
 0xa67   :  { %v1516_v56 = vadd.f32 %v4089_v55, %v3609_v42 }
 0xa68   :  { %v1510_v58 = vpop.f32.mrf.mxu1 }
 0xa69   :  { %v1532_v13 = vmul.f32 -1.702, %v1516_v56  ;;  %v1511_v12 = vadd.f32 %v3609_v42, %v1510_v58 }
 0xa6a   :  { %v4092_v16 = vpop.f32.mrf.mxu1 }
 0xa6b   :  { %v1541_v14 = vmul.f32 1.442695, %v1532_v13  ;;  %v1531_v19 = vmul.f32 -1.702, %v1511_v12  ;;  %v1526_v61 = vadd.f32 %v4092_v16, %v3609_v42 }
 0xa6c   :  { %v1520_v62 = vpop.f32.mrf.mxu1 }
 0xa6d   :  { %4441 = vpow2.f32 %v1541_v14  ;;  %v1539_v51 = vmul.f32 1.442695, %v1531_v19  ;;  %v1534_v35 = vmul.f32 -1.702, %v1526_v61  ;;  %v1521_v63 = vadd.f32 %v3609_v42, %v1520_v62 }
 0xa6f   :  { %4443 = vpow2.f32 %v1539_v51  ;;  %v1545_v57 = vmul.f32 1.442695, %v1534_v35  ;;  %v1533_v0 = vmul.f32 -1.702, %v1521_v63 }
 0xa71   :  { %v4438_v60 = vpop.eup %4437  ;;  %4445 = vpow2.f32 %v1545_v57  ;;  %v1543_v38 = vmul.f32 1.442695, %v1533_v0 }
 0xa72   :  { %v1548_v2 = vadd.f32 1.0, %v4438_v60 }
 0xa73   :  { %v4440_v3 = vpop.eup %4439  ;;  %4447 = vpow2.f32 %v1543_v38 }
 0xa74   :  { %v1547_v33 = vadd.f32 1.0, %v4440_v3  ;;  %4449 = vrcp.f32 %v1548_v2 }
 0xa76   :  { %4451 = vrcp.f32 %v1547_v33 }
 0xa7a   :  { %v4442_v4 = vpop.eup %4441 }
 0xa7b   :  { %v1550_v6 = vadd.f32 1.0, %v4442_v4 }
 0xa7c   :  { %v4444_v8 = vpop.eup %4443 }
 0xa7d   :  { %v1549_v9 = vadd.f32 1.0, %v4444_v8  ;;  %4453 = vrcp.f32 %v1550_v6 }
 0xa7e   :  { %v4446_v18 = vpop.eup %4445 }
 0xa7f   :  { %4455 = vrcp.f32 %v1549_v9  ;;  %v1552_v10 = vadd.f32 1.0, %v4446_v18 }
 0xa80   :  { %v4448_v37 = vpop.eup %4447 }
 0xa81   :  { %v1551_v1 = vadd.f32 1.0, %v4448_v37  ;;  %v4450_v7 = vpop.eup %4449  ;;  %4457 = vrcp.f32 %v1552_v10 }
 0xa82   :  { %v1566_v22 = vmul.f32 %v4450_v7, %v1506_v44 }
 0xa83   :  { %v4452_v20 = vpop.eup %4451  ;;  %4459 = vrcp.f32 %v1551_v1 }
 0xa84   :  { %v1565_v17 = vmul.f32 %v4452_v20, %v1501_v47 }
 0xa86   :  { %4125 = vmatprep.mubr.f32.mxu0 %v1565_v17 }
 0xa87   :  { %4126 = vmatmul.mubr.f32.vlgmr.msra.gmra.mxu0 %v1566_v22 }
 0xa8a   :  { %v4454_v23 = vpop.eup %4453 }
 0xa8b   :  { %v1568_v26 = vmul.f32 %v4454_v23, %v1516_v56 }
 0xa8c   :  { %v4456_v24 = vpop.eup %4455 }
 0xa8d   :  { %v1567_v25 = vmul.f32 %v4456_v24, %v1511_v12 }
 0xa8e   :  { %v4458_v30 = vpop.eup %4457 }
 0xa8f   :  { %4128 = vmatprep.mubr.f32.mxu0 %v1567_v25  ;;  %v1570_v39 = vmul.f32 %v4458_v30, %v1526_v61 }
 0xa90   :  { %v4460_v32 = vpop.eup %4459  ;;  %4129 = vmatmul.mubr.f32.gmra.mxu0 %v1568_v26 }
 0xa91   :  { %v1569_v34 = vmul.f32 %v4460_v32, %v1521_v63 }
 0xa93   :  { %4131 = vmatprep.mubr.f32.mxu0 %v1569_v34  ;;  %v3624_v34 = vld [vmem:[%s5805_s24 + $0x38] sm:$0xff] }
 0xa94   :  { %4132 = vmatmul.mubr.f32.gmra.mxu0 %v1570_v39  ;;  %v3623_v39 = vld [vmem:[%s5805_s24 + $0x30] sm:$0xff]  ;;  %4134 = vmatprep.subr.mxu1 %v3624_v34 }
 0xa95   :  { %4135 = vmatpush3.msra.mxu1 %v3624_v34 }
 0xa96   :  { %4136 = vmatprep.subr.mxu1 %v3623_v39 }
 0xa97   :  { %4137 = vmatpush3.msra.mxu1 %v3623_v39 }
 0xb47   :  { %v4127_v40 = vpop.f32.mrf.mxu0 }
 0xb48   :  { %v1683_v42 = vadd.f32 %v4127_v40, %v5005_v5  ;;  %v3622_v40 = vld [vmem:[%s5805_s24 + $0x28] sm:$0xff] }
 0xb49   :  { %v1653_v43 = vpop.f32.mrf.mxu0  ;;  %4138 = vmatprep.subr.mxu1 %v3622_v40 }
 0xb4a   :  { %v5165_v44 = vadd.f32 %v3616_v41, %v1683_v42  ;;  %v1682_v29 = vadd.f32 %v1653_v43, %v5010_v11  ;;  %4139 = vmatpush3.msra.mxu1 %v3622_v40 }
 0xb4c   :  { %v5168_v36 = vadd.f32 %v3616_v41, %v1682_v29  ;;  %v1708_v47 = vsel %vm124_vm0, %v5165_v44, 0.0 }
 0xb4d   :  { %1709 = vadd.xlane.f32.xlu1 %v1708_v47 }
 0xb4e   :  { %v1705_v52 = vsel %vm124_vm0, %v5168_v36, 0.0 }
 0xb4f   :  { %1706 = vadd.xlane.f32.xlu0 %v1705_v52 }
 0xb50   :  { %v4130_v53 = vpop.f32.mrf.mxu0 }
 0xb51   :  { %v1685_v54 = vadd.f32 %v4130_v53, %v5019_v27 }
 0xb52   :  { %v1663_v55 = vpop.f32.mrf.mxu0 }
 0xb53   :  { %v5175_v5 = vadd.f32 %v3616_v41, %v1685_v54  ;;  %v1684_v56 = vadd.f32 %v1663_v55, %v5029_v45 }
 0xb54   :  { %v4133_v58 = vpop.f32.mrf.mxu0 }
 0xb55   :  { %v5178_v11 = vadd.f32 %v3616_v41, %v1684_v56  ;;  %v1687_v13 = vadd.f32 %v4133_v58, %v5031_v46  ;;  %v1714_v12 = vsel %vm124_vm0, %v5175_v5, 0.0 }
 0xb56   :  { %1715 = vadd.xlane.f32.xlu1 %v1714_v12  ;;  %v1673_v16 = vpop.f32.mrf.mxu0 }
 0xb57   :  { %v5183_v14 = vadd.f32 %v3616_v41, %v1687_v13  ;;  %v1686_v19 = vadd.f32 %v1673_v16, %v5038_v50  ;;  %v1711_v27 = vsel %vm124_vm0, %v5178_v11, 0.0 }
 0xb58   :  { %1712 = vadd.xlane.f32.xlu0 %v1711_v27 }
 0xb59   :  { %v5188_v61 = vadd.f32 %v3616_v41, %v1686_v19  ;;  %v1720_v45 = vsel %vm124_vm0, %v5183_v14, 0.0  ;;  %v3621_v41 = vld [vmem:[%s5805_s24 + $0x20] sm:$0xff] }
 0xb5a   :  { %1721 = vadd.xlane.f32.xlu1 %v1720_v45  ;;  %4140 = vmatprep.subr.mxu1 %v3621_v41 }
 0xb5b   :  { %v1717_v46 = vsel %vm124_vm0, %v5188_v61, 0.0  ;;  %4141 = vmatpush3.msra.mxu1 %v3621_v41 }
 0xb5c   :  { %1718 = vadd.xlane.f32.xlu0 %v1717_v46 }
 0xbd6   :  { %v1710_v62 = vpop.xlane.xlu1 %1709 }
 0xbd7   :  { %v1724_v51 = vmul.f32 0.03125, %v1710_v62 }
 0xbd8   :  { %v1707_v35 = vpop.xlane.xlu0 %1706 }
 0xbd9   :  { %v5195_v63 = vsub.f32 %v5165_v44, %v1724_v51  ;;  %v1723_v50 = vmul.f32 0.03125, %v1707_v35  ;;  %v3619_v51 = vld [vmem:[%s5784_s2 + $0x1] ss:$0 sm:$0xff] }
 0xbdb   :  { %v5198_v57 = vsub.f32 %v5168_v36, %v1723_v50  ;;  %v1736_v0 = vmul.f32 %v5195_v63, %v5195_v63 }
 0xbdd   :  { %v1744_v60 = vsel %vm124_vm0, %v1736_v0, 0.0  ;;  %v1735_v38 = vmul.f32 %v5198_v57, %v5198_v57 }
 0xbde   :  { %1745 = vadd.xlane.f32.xlu1 %v1744_v60  ;;  %v3620_v60 = vld [vmem:[%s5785_s3 + $0x1] ss:$0 sm:$0xff] }
 0xbdf   :  { %v1716_v2 = vpop.xlane.xlu1 %1715  ;;  %v1741_v3 = vsel %vm124_vm0, %v1735_v38, 0.0 }
 0xbe0   :  { %v1726_v33 = vmul.f32 0.03125, %v1716_v2  ;;  %1742 = vadd.xlane.f32.xlu0 %v1741_v3 }
 0xbe1   :  { %v1713_v4 = vpop.xlane.xlu0 %1712 }
 0xbe2   :  { %v5207_v6 = vsub.f32 %v5175_v5, %v1726_v33  ;;  %v1725_v8 = vmul.f32 0.03125, %v1713_v4 }
 0xbe3   :  { %v1722_v9 = vpop.xlane.xlu1 %1721 }
 0xbe4   :  { %v5210_v18 = vsub.f32 %v5178_v11, %v1725_v8  ;;  %v1728_v10 = vmul.f32 0.03125, %v1722_v9  ;;  %v1738_v37 = vmul.f32 %v5207_v6, %v5207_v6 }
 0xbe5   :  { %v1719_v1 = vpop.xlane.xlu0 %1718 }
 0xbe6   :  { %v5215_v7 = vsub.f32 %v5183_v14, %v1728_v10  ;;  %v1727_v20 = vmul.f32 0.03125, %v1719_v1  ;;  %v1750_v17 = vsel %vm124_vm0, %v1738_v37, 0.0  ;;  %v1737_v22 = vmul.f32 %v5210_v18, %v5210_v18 }
 0xbe7   :  { %1751 = vadd.xlane.f32.xlu1 %v1750_v17 }
 0xbe8   :  { %v5221_v23 = vsub.f32 %v5188_v61, %v1727_v20  ;;  %v1747_v24 = vsel %vm124_vm0, %v1737_v22, 0.0  ;;  %v1740_v25 = vmul.f32 %v5215_v7, %v5215_v7 }
 0xbe9   :  { %1748 = vadd.xlane.f32.xlu0 %v1747_v24 }
 0xbea   :  { %v1756_v26 = vsel %vm124_vm0, %v1740_v25, 0.0  ;;  %v1739_v30 = vmul.f32 %v5221_v23, %v5221_v23 }
 0xbeb   :  { %1757 = vadd.xlane.f32.xlu1 %v1756_v26 }
 0xbec   :  { %v1753_v32 = vsel %vm124_vm0, %v1739_v30, 0.0 }
 0xbed   :  { %1754 = vadd.xlane.f32.xlu0 %v1753_v32 }
 0xc67   :  { %v1746_v42 = vpop.xlane.xlu1 %1745 }
 0xc68   :  { %v1760_v43 = vmul.f32 0.03125, %v1746_v42 }
 0xc69   :  { %v1743_v29 = vpop.xlane.xlu0 %1742 }
 0xc6a   :  { %v1766_v47 = vadd.f32 1e-05, %v1760_v43  ;;  %v1759_v52 = vmul.f32 0.03125, %v1743_v29 }
 0xc6c   :  { %4461 = vrsqrt.f32 %v1766_v47  ;;  %v1765_v53 = vadd.f32 1e-05, %v1759_v52 }
 0xc6e   :  { %4463 = vrsqrt.f32 %v1765_v53 }
 0xc70   :  { %v1752_v54 = vpop.xlane.xlu1 %1751 }
 0xc71   :  { %v1762_v55 = vmul.f32 0.03125, %v1752_v54 }
 0xc72   :  { %v1749_v56 = vpop.xlane.xlu0 %1748 }
 0xc73   :  { %v1768_v58 = vadd.f32 1e-05, %v1762_v55  ;;  %v1761_v13 = vmul.f32 0.03125, %v1749_v56 }
 0xc74   :  { %v1758_v12 = vpop.xlane.xlu1 %1757 }
 0xc75   :  { %4465 = vrsqrt.f32 %v1768_v58  ;;  %v1767_v16 = vadd.f32 1e-05, %v1761_v13  ;;  %v1764_v19 = vmul.f32 0.03125, %v1758_v12 }
 0xc76   :  { %v1755_v27 = vpop.xlane.xlu0 %1754 }
 0xc77   :  { %4467 = vrsqrt.f32 %v1767_v16  ;;  %v1770_v45 = vadd.f32 1e-05, %v1764_v19  ;;  %v1763_v46 = vmul.f32 0.03125, %v1755_v27 }
 0xc79   :  { %v4462_v62 = vpop.eup %4461  ;;  %4469 = vrsqrt.f32 %v1770_v45  ;;  %v1769_v35 = vadd.f32 1e-05, %v1763_v46 }
 0xc7a   :  { %v1778_v50 = vmul.f32 %v4462_v62, %v5195_v63 }
 0xc7b   :  { %v4464_v0 = vpop.eup %4463  ;;  %4471 = vrsqrt.f32 %v1769_v35 }
 0xc7c   :  { %v1790_v38 = vmul.f32 %v3619_v51, %v1778_v50  ;;  %v1777_v2 = vmul.f32 %v4464_v0, %v5198_v57 }
 0xc7e   :  { %v1789_v3 = vmul.f32 %v3619_v51, %v1777_v2  ;;  %v1802_v33 = vadd.f32 %v3620_v60, %v1790_v38 }
 0xc80   :  { %v1801_v4 = vadd.f32 %v3620_v60, %v1789_v3 }
 0xc82   :  { %v4466_v8 = vpop.eup %4465  ;;  %4142 = vmatprep.mubr.msk.f32.mxu1 %vm124_vm0, %v1801_v4 }
 0xc83   :  { %4143 = vmatmul.mubr.msk.f32.vlgmr.msra.gmra.mxu1 %vm124_vm0, %v1802_v33  ;;  %v1780_v9 = vmul.f32 %v4466_v8, %v5207_v6 }
 0xc84   :  { %v4468_v63 = vpop.eup %4467 }
 0xc85   :  { %v1779_v10 = vmul.f32 %v4468_v63, %v5210_v18  ;;  %v1792_v37 = vmul.f32 %v3619_v51, %v1780_v9 }
 0xc86   :  { %v4470_v1 = vpop.eup %4469 }
 0xc87   :  { %v1791_v20 = vmul.f32 %v3619_v51, %v1779_v10  ;;  %v1804_v17 = vadd.f32 %v3620_v60, %v1792_v37  ;;  %v1782_v22 = vmul.f32 %v4470_v1, %v5215_v7  ;;  %v3626_v7 = vld [vmem:[%s5786_s5 + $0x1] ss:$0 sm:$0xff] }
 0xc88   :  { %v4472_v57 = vpop.eup %4471 }
 0xc89   :  { %v1803_v24 = vadd.f32 %v3620_v60, %v1791_v20  ;;  %v1781_v25 = vmul.f32 %v4472_v57, %v5221_v23  ;;  %v1794_v26 = vmul.f32 %v3619_v51, %v1782_v22 }
 0xc8b   :  { %4145 = vmatprep.mubr.msk.f32.mxu1 %vm124_vm0, %v1803_v24  ;;  %v1793_v30 = vmul.f32 %v3619_v51, %v1781_v25  ;;  %v1806_v32 = vadd.f32 %v3620_v60, %v1794_v26 }
 0xc8c   :  { %4146 = vmatmul.mubr.msk.f32.gmra.mxu1 %vm124_vm0, %v1804_v17 }
 0xc8d   :  { %v1805_v6 = vadd.f32 %v3620_v60, %v1793_v30 }
 0xc8f   :  { %4148 = vmatprep.mubr.msk.f32.mxu1 %vm124_vm0, %v1805_v6 }
 0xc90   :  { %4149 = vmatmul.mubr.msk.f32.gmra.mxu1 %vm124_vm0, %v1806_v32 }
 0xd43   :  { %v4144_v18 = vpop.f32.mrf.mxu1 }
 0xd44   :  { %v5273_v47 = vadd.f32 %v4144_v18, %v3626_v7 }
 0xd45   :  { %v1904_v34 = vpop.f32.mrf.mxu1 }
 0xd46   :  { %v5263_v39 = vadd.f32 %v3626_v7, %v1904_v34 }
 0xd48   :  { %4163 = vmatprep.mubr.msk.f32.mxu1 %vm374_vm1, %v5263_v39 }
 0xd4c   :  { %v4147_v23 = vpop.f32.mrf.mxu1 }
 0xd4d   :  { %v5277_v52 = vadd.f32 %v4147_v23, %v3626_v7 }
 0xd4e   :  { %v1914_v40 = vpop.f32.mrf.mxu1 }
 0xd4f   :  { %v5283_v53 = vadd.f32 %v3626_v7, %v1914_v40 }
 0xd50   :  { %v4150_v41 = vpop.f32.mrf.mxu1 }
 0xd51   :  { %v5267_v42 = vadd.f32 %v4150_v41, %v3626_v7 }
 0xd52   :  { %v1924_v43 = vpop.f32.mrf.mxu1 }
 0xd53   :  { %v5269_v29 = vadd.f32 %v3626_v7, %v1924_v43  ;;  %1954 = vrot.lane.b32.xlu0 %v5267_v42, %s4575_s23 }
 0xd55   :  { %1952 = vrot.lane.b32.xlu1 %v5269_v29, %s4575_s23 }
 0xd57   :  { %1946 = vrot.lane.b32.xlu0 %v5273_v47, %s4575_s23 }
 0xd59   :  { %1950 = vrot.lane.b32.xlu1 %v5277_v52, %s4575_s23 }
 0xd5b   :  { %2306 = vrot.lane.b32.xlu0 %v5267_v42, %s4577_s27 }
 0xd5d   :  { %1948 = vrot.lane.b32.xlu1 %v5283_v53, %s4575_s23 }
 0xd5f   :  { %2302 = vrot.lane.b32.xlu0 %v5277_v52, %s4577_s27 }
 0xd61   :  { %1944 = vrot.lane.b32.xlu1 %v5263_v39, %s4575_s23 }
 0xd63   :  { %2298 = vrot.lane.b32.xlu0 %v5273_v47, %s4577_s27 }
 0xd65   :  { %2304 = vrot.lane.b32.xlu1 %v5269_v29, %s4577_s27 }
 0xd67   :  { %2284 = vrot.lane.b32.xlu0 %v5263_v39, %s4580_s28 }
 0xd69   :  { %2300 = vrot.lane.b32.xlu1 %v5283_v53, %s4577_s27 }
 0xd6b   :  { %2288 = vrot.lane.b32.xlu0 %v5283_v53, %s4580_s28 }
 0xd6d   :  { %2296 = vrot.lane.b32.xlu1 %v5263_v39, %s4577_s27 }
 0xd6f   :  { %2292 = vrot.lane.b32.xlu0 %v5269_v29, %s4580_s28 }
 0xd71   :  { %2286 = vrot.lane.b32.xlu1 %v5273_v47, %s4580_s28 }
 0xd73   :  { %2159 = vrot.lane.b32.xlu0 %v5277_v52, %s4576_s25 }
 0xd75   :  { %2290 = vrot.lane.b32.xlu1 %v5277_v52, %s4580_s28 }
 0xd77   :  { %2161 = vrot.lane.b32.xlu0 %v5269_v29, %s4576_s25 }
 0xd79   :  { %2294 = vrot.lane.b32.xlu1 %v5267_v42, %s4580_s28 }
 0xd7d   :  { %2163 = vrot.lane.b32.xlu1 %v5267_v42, %s4576_s25 }
 0xd81   :  { %2157 = vrot.lane.b32.xlu1 %v5283_v53, %s4576_s25 }
 0xdc5   :  { %v1955_v54 = vpop.permute.xlu0 %1954 }
 0xdc6   :  { %4151 = vmatprep.subr.msk.mxu1 %vm374_vm1, %v1955_v54 }
 0xdc7   :  { %4152 = vmatpush3.xpose.msk.msra.mxu1 %vm374_vm1, %v1955_v54  ;;  %v1953_v55 = vpop.permute.xlu1 %1952 }
 0xdc8   :  { %4153 = vmatprep.subr.msk.mxu1 %vm374_vm1, %v1953_v55 }
 0xdc9   :  { %v1947_v56 = vpop.permute.xlu0 %1946 }
 0xdcb   :  { %4154 = vmatpush3.xpose.msk.msra.mxu1 %vm374_vm1, %v1953_v55  ;;  %v1951_v58 = vpop.permute.xlu1 %1950 }
 0xdcc   :  { %4155 = vmatprep.subr.msk.mxu1 %vm374_vm1, %v1951_v58 }
 0xdcd   :  { %v2307_v13 = vpop.permute.xlu0 %2306 }
 0xdcf   :  { %4156 = vmatpush3.xpose.msk.msra.mxu1 %vm374_vm1, %v1951_v58  ;;  %v1949_v12 = vpop.permute.xlu1 %1948 }
 0xdd0   :  { %4157 = vmatprep.subr.msk.mxu1 %vm374_vm1, %v1949_v12 }
 0xdd1   :  { %v2303_v16 = vpop.permute.xlu0 %2302 }
 0xdd3   :  { %4158 = vmatpush3.xpose.msk.msra.mxu1 %vm374_vm1, %v1949_v12  ;;  %v1945_v19 = vpop.permute.xlu1 %1944 }
 0xdd4   :  { %4159 = vmatprep.subr.msk.mxu1 %vm374_vm1, %v1947_v56 }
 0xdd5   :  { %v2299_v27 = vpop.permute.xlu0 %2298 }
 0xdd7   :  { %4160 = vmatpush3.xpose.msk.msra.mxu1 %vm374_vm1, %v1947_v56  ;;  %v2305_v45 = vpop.permute.xlu1 %2304 }
 0xdd8   :  { %4161 = vmatprep.subr.msk.mxu1 %vm374_vm1, %v1945_v19 }
 0xdd9   :  { %v2285_v46 = vpop.permute.xlu0 %2284 }
 0xddb   :  { %4162 = vmatpush3.xpose.msk.msra.mxu1 %vm374_vm1, %v1945_v19  ;;  %v2301_v62 = vpop.permute.xlu1 %2300 }
 0xddc   :  { %4193 = vmatprep.subr.msk.mxu1 %vm374_vm1, %v2307_v13 }
 0xddd   :  { %v2289_v51 = vpop.permute.xlu0 %2288 }
 0xdde   :  { %4164 = vmatmul.mubr.msk.f32.vlgmr.msra.gmra.mxu1 %vm374_vm1, %v5273_v47 }
 0xddf   :  { %4166 = vmatprep.mubr.msk.f32.mxu1 %vm374_vm1, %v5283_v53  ;;  %4194 = vmatpush3.xpose.msk.msra.mxu1 %vm374_vm1, %v2307_v13  ;;  %v2297_v35 = vpop.permute.xlu1 %2296 }
 0xde0   :  { %4195 = vmatprep.subr.msk.mxu1 %vm374_vm1, %v2305_v45 }
 0xde1   :  { %v2293_v0 = vpop.permute.xlu0 %2292 }
 0xde2   :  { %4167 = vmatmul.mubr.msk.f32.gmra.mxu1 %vm374_vm1, %v5277_v52 }
 0xde3   :  { %4169 = vmatprep.mubr.msk.f32.mxu1 %vm374_vm1, %v5269_v29  ;;  %4196 = vmatpush3.xpose.msk.msra.mxu1 %vm374_vm1, %v2305_v45  ;;  %v2287_v50 = vpop.permute.xlu1 %2286 }
 0xde4   :  { %4197 = vmatprep.subr.msk.mxu1 %vm374_vm1, %v2303_v16 }
 0xde5   :  { %v2160_v38 = vpop.permute.xlu0 %2159 }
 0xde6   :  { %4170 = vmatmul.mubr.msk.f32.gmra.mxu1 %vm374_vm1, %v5267_v42 }
 0xde7   :  { %4198 = vmatpush3.xpose.msk.msra.mxu1 %vm374_vm1, %v2303_v16  ;;  %4205 = vmatprep.mubr.msk.f32.mxu1 %vm374_vm1, %v2285_v46  ;;  %v2291_v60 = vpop.permute.xlu1 %2290 }
 0xde8   :  { %4199 = vmatprep.subr.msk.mxu1 %vm374_vm1, %v2301_v62 }
 0xde9   :  { %v2162_v33 = vpop.permute.xlu0 %2161 }
 0xdeb   :  { %4200 = vmatpush3.xpose.msk.msra.mxu1 %vm374_vm1, %v2301_v62  ;;  %v2295_v2 = vpop.permute.xlu1 %2294 }
 0xdec   :  { %4201 = vmatprep.subr.msk.mxu1 %vm374_vm1, %v2299_v27 }
 0xdef   :  { %4202 = vmatpush3.xpose.msk.msra.mxu1 %vm374_vm1, %v2299_v27  ;;  %v2164_v3 = vpop.permute.xlu1 %2163 }
 0xdf0   :  { %4172 = vmatprep.subr.mxu0 %v2164_v3  ;;  %4203 = vmatprep.subr.msk.mxu1 %vm374_vm1, %v2297_v35 }
 0xdf1   :  { %4173 = vmatpush3.msra.mxu0 %v2164_v3 }
 0xdf2   :  { %4174 = vmatprep.subr.mxu0 %v2162_v33 }
 0xdf3   :  { %4175 = vmatpush3.msra.mxu0 %v2162_v33  ;;  %4204 = vmatpush3.xpose.msk.msra.mxu1 %vm374_vm1, %v2297_v35  ;;  %v2158_v4 = vpop.permute.xlu1 %2157 }
 0xdf4   :  { %4176 = vmatprep.subr.mxu0 %v2160_v38 }
 0xdf5   :  { %4177 = vmatpush3.msra.mxu0 %v2160_v38 }
 0xdf6   :  { %4178 = vmatprep.subr.mxu0 %v2158_v4  ;;  %4206 = vmatmul.mubr.msk.f32.vlgmr.msra.gmra.mxu1 %vm374_vm1, %v2287_v50 }
 0xdf7   :  { %4179 = vmatpush3.msra.mxu0 %v2158_v4  ;;  %4208 = vmatprep.mubr.msk.f32.mxu1 %vm374_vm1, %v2289_v51 }
 0xdfa   :  { %4209 = vmatmul.mubr.msk.f32.gmra.mxu1 %vm374_vm1, %v2291_v60 }
 0xdfb   :  { %4211 = vmatprep.mubr.msk.f32.mxu1 %vm374_vm1, %v2293_v0 }
 0xdfe   :  { %4212 = vmatmul.mubr.msk.f32.gmra.mxu1 %vm374_vm1, %v2295_v2 }
 0xe9e   :  { %v4165_v8 = vpop.f32.mrf.mxu1 }
 0xe9f   :  { %v2076_v9 = vmul.f32 0.25, %v4165_v8 }
 0xea0   :  { %v2046_v63 = vpop.f32.mrf.mxu1 }
 0xea1   :  { %v5362_v10 = vadd.f32 %v2076_v9, %v4835_v21  ;;  %v2075_v37 = vmul.f32 0.25, %v2046_v63 }
 0xea2   :  { %v4168_v1 = vpop.f32.mrf.mxu1 }
 0xea3   :  { %v5365_v20 = vadd.f32 %v2075_v37, %v4841_v28  ;;  %v2078_v17 = vmul.f32 0.25, %v4168_v1  ;;  %v2090_v22 = vsel %vm506_vm12, %v5362_v10, -inf }
 0xea4   :  { %2091 = vmax.xlane.f32.xlu1 %v2090_v22  ;;  %v2056_v57 = vpop.f32.mrf.mxu1 }
 0xea5   :  { %v5370_v24 = vadd.f32 %v2078_v17, %v4843_v31  ;;  %v2077_v25 = vmul.f32 0.25, %v2056_v57  ;;  %v2087_v26 = vsel %vm506_vm12, %v5365_v20, -inf }
 0xea6   :  { %2088 = vmax.xlane.f32.xlu0 %v2087_v26  ;;  %v4171_v30 = vpop.f32.mrf.mxu1 }
 0xea7   :  { %v2080_v32 = vmul.f32 0.25, %v4171_v30  ;;  %v5375_v18 = vadd.f32 %v2077_v25, %v4853_v49  ;;  %v2096_v23 = vsel %vm506_vm12, %v5370_v24, -inf }
 0xea8   :  { %v2066_v6 = vpop.f32.mrf.mxu1 }
 0xea9   :  { %v2086_v7 = vadd.f32 %v2080_v32, %v4851_v48  ;;  %v2079_v34 = vmul.f32 0.25, %v2066_v6  ;;  %v2093_v43 = vsel %vm506_vm12, %v5375_v18, -inf }
 0xeaa   :  { %2097 = vmax.xlane.f32.xlu0 %v2096_v23 }
 0xeab   :  { %v2102_v40 = vsel %vm506_vm12, %v2086_v7, -inf  ;;  %v5382_v41 = vadd.f32 %v2079_v34, %v4858_v59 }
 0xeac   :  { %2103 = vmax.xlane.f32.xlu1 %v2102_v40 }
 0xead   :  { %v2099_v54 = vsel %vm506_vm12, %v5382_v41, -inf }
 0xeae   :  { %2094 = vmax.xlane.f32.xlu0 %v2093_v43 }
 0xeb2   :  { %2100 = vmax.xlane.f32.xlu0 %v2099_v54 }
 0xeb6   :  { %v4207_v55 = vpop.f32.mrf.mxu1 }
 0xeb7   :  { %v2428_v56 = vmul.f32 0.25, %v4207_v55 }
 0xeb8   :  { %v2398_v58 = vpop.f32.mrf.mxu1 }
 0xeb9   :  { %v5389_v13 = vadd.f32 %v2428_v56, %v4835_v21  ;;  %v2427_v12 = vmul.f32 0.25, %v2398_v58 }
 0xeba   :  { %v4210_v16 = vpop.f32.mrf.mxu1 }
 0xebb   :  { %v5392_v19 = vadd.f32 %v2427_v12, %v4841_v28  ;;  %v2430_v27 = vmul.f32 0.25, %v4210_v16  ;;  %v2442_v45 = vsel %vm506_vm12, %v5389_v13, -inf }
 0xebc   :  { %2443 = vmax.xlane.f32.xlu1 %v2442_v45  ;;  %v2408_v46 = vpop.f32.mrf.mxu1 }
 0xebd   :  { %v5397_v62 = vadd.f32 %v2430_v27, %v4843_v31  ;;  %v2429_v51 = vmul.f32 0.25, %v2408_v46  ;;  %v2439_v35 = vsel %vm506_vm12, %v5392_v19, -inf }
 0xebe   :  { %2440 = vmax.xlane.f32.xlu0 %v2439_v35  ;;  %v4213_v21 = vpop.f32.mrf.mxu1 }
 0xebf   :  { %v5402_v50 = vadd.f32 %v2429_v51, %v4853_v49  ;;  %v2432_v28 = vmul.f32 0.25, %v4213_v21  ;;  %v2448_v0 = vsel %vm506_vm12, %v5397_v62, -inf }
 0xec0   :  { %2449 = vmax.xlane.f32.xlu1 %v2448_v0  ;;  %v2418_v60 = vpop.f32.mrf.mxu1 }
 0xec1   :  { %v5407_v38 = vadd.f32 %v2432_v28, %v4851_v48  ;;  %v2431_v31 = vmul.f32 0.25, %v2418_v60  ;;  %v2445_v2 = vsel %vm506_vm12, %v5402_v50, -inf }
 0xec2   :  { %2446 = vmax.xlane.f32.xlu0 %v2445_v2 }
 0xec3   :  { %v5412_v3 = vadd.f32 %v2431_v31, %v4858_v59  ;;  %v2454_v49 = vsel %vm506_vm12, %v5407_v38, -inf }
 0xec4   :  { %2455 = vmax.xlane.f32.xlu1 %v2454_v49 }
 0xec5   :  { %v2451_v33 = vsel %vm506_vm12, %v5412_v3, -inf }
 0xec6   :  { %2452 = vmax.xlane.f32.xlu0 %v2451_v33 }
 0xed5   :  { %2153 = vrot.lane.b32.xlu1 %v5263_v39, %s4576_s25 }
 0xed9   :  { %2515 = vrot.lane.b32.xlu1 %v5267_v42, %s4581_s29 }
 0xedc   :  { %2155 = vrot.lane.b32.xlu0 %v5273_v47, %s4576_s25 }
 0xedd   :  { %2513 = vrot.lane.b32.xlu1 %v5269_v29, %s4581_s29 }
 0xee1   :  { %2511 = vrot.lane.b32.xlu1 %v5277_v52, %s4581_s29 }
 0xee5   :  { %2509 = vrot.lane.b32.xlu1 %v5283_v53, %s4581_s29 }
 0xf2d   :  { %v2092_v48 = vpop.xlane.xlu1 %2091 }
 0xf2e   :  { %v2106_v59 = vsub.f32 %v5362_v10, %v2092_v48 }
 0xf2f   :  { %v2089_v4 = vpop.xlane.xlu0 %2088 }
 0xf30   :  { %v2113_v8 = vmul.f32 1.442695, %v2106_v59  ;;  %v2105_v9 = vsub.f32 %v5365_v20, %v2089_v4 }
 0xf32   :  { %4473 = vpow2.f32 %v2113_v8  ;;  %v2111_v42 = vmul.f32 1.442695, %v2105_v9 }
 0xf33   :  { %v2098_v63 = vpop.xlane.xlu0 %2097 }
 0xf34   :  { %4475 = vpow2.f32 %v2111_v42  ;;  %v2108_v37 = vsub.f32 %v5370_v24, %v2098_v63 }
 0xf35   :  { %v2104_v29 = vpop.xlane.xlu1 %2103 }
 0xf36   :  { %v2117_v1 = vmul.f32 1.442695, %v2108_v37  ;;  %v2110_v17 = vsub.f32 %v2086_v7, %v2104_v29 }
 0xf37   :  { %v2095_v52 = vpop.xlane.xlu0 %2094 }
 0xf38   :  { %4477 = vpow2.f32 %v2117_v1  ;;  %v2121_v22 = vmul.f32 1.442695, %v2110_v17  ;;  %v2107_v53 = vsub.f32 %v5375_v18, %v2095_v52 }
 0xf3a   :  { %4479 = vpow2.f32 %v2121_v22  ;;  %v2115_v10 = vmul.f32 1.442695, %v2107_v53 }
 0xf3b   :  { %v2101_v57 = vpop.xlane.xlu0 %2100 }
 0xf3c   :  { %4481 = vpow2.f32 %v2115_v10  ;;  %v2109_v20 = vsub.f32 %v5382_v41, %v2101_v57 }
 0xf3e   :  { %v2119_v25 = vmul.f32 1.442695, %v2109_v20 }
 0xf3f   :  { %v5435_v26 = vpop.eup %4473 }
 0xf40   :  { %4483 = vpow2.f32 %v2119_v25  ;;  %v2126_v24 = vsel %vm506_vm12, %v5435_v26, 0.0 }
 0xf41   :  { %v5439_v30 = vpop.eup %4475  ;;  %2127 = vadd.xlane.f32.xlu1 %v2126_v24 }
 0xf42   :  { %v2123_v32 = vsel %vm506_vm12, %v5439_v30, 0.0 }
 0xf43   :  { %2124 = vadd.xlane.f32.xlu0 %v2123_v32 }
 0xf45   :  { %v5443_v6 = vpop.eup %4477  ;;  %v2444_v18 = vpop.xlane.xlu1 %2443 }
 0xf46   :  { %v2458_v7 = vsub.f32 %v5389_v13, %v2444_v18  ;;  %v2132_v34 = vsel %vm506_vm12, %v5443_v6, 0.0 }
 0xf47   :  { %v5448_v23 = vpop.eup %4479  ;;  %v2441_v40 = vpop.xlane.xlu0 %2440  ;;  %2133 = vadd.xlane.f32.xlu1 %v2132_v34 }
 0xf48   :  { %v2465_v41 = vmul.f32 1.442695, %v2458_v7  ;;  %v2457_v43 = vsub.f32 %v5392_v19, %v2441_v40  ;;  %v2138_v56 = vsel %vm506_vm12, %v5448_v23, 0.0 }
 0xf49   :  { %v5451_v54 = vpop.eup %4481  ;;  %v2450_v55 = vpop.xlane.xlu1 %2449 }
 0xf4a   :  { %4485 = vpow2.f32 %v2465_v41  ;;  %v2463_v58 = vmul.f32 1.442695, %v2457_v43  ;;  %v2460_v13 = vsub.f32 %v5397_v62, %v2450_v55  ;;  %v2129_v12 = vsel %vm506_vm12, %v5451_v54, 0.0 }
 0xf4b   :  { %v2447_v16 = vpop.xlane.xlu0 %2446  ;;  %2130 = vadd.xlane.f32.xlu0 %v2129_v12  ;;  %2139 = vadd.xlane.f32.xlu1 %v2138_v56 }
 0xf4c   :  { %4487 = vpow2.f32 %v2463_v58  ;;  %v2469_v27 = vmul.f32 1.442695, %v2460_v13  ;;  %v2459_v19 = vsub.f32 %v5402_v50, %v2447_v16 }
 0xf4d   :  { %v5459_v45 = vpop.eup %4483  ;;  %v2456_v46 = vpop.xlane.xlu1 %2455 }
 0xf4e   :  { %4489 = vpow2.f32 %v2469_v27  ;;  %v2467_v51 = vmul.f32 1.442695, %v2459_v19  ;;  %v2462_v35 = vsub.f32 %v5407_v38, %v2456_v46  ;;  %v2135_v62 = vsel %vm506_vm12, %v5459_v45, 0.0 }
 0xf4f   :  { %2136 = vadd.xlane.f32.xlu0 %v2135_v62  ;;  %v2453_v21 = vpop.xlane.xlu0 %2452 }
 0xf50   :  { %v2461_v28 = vsub.f32 %v5412_v3, %v2453_v21  ;;  %4491 = vpow2.f32 %v2467_v51  ;;  %v2473_v60 = vmul.f32 1.442695, %v2462_v35 }
 0xf51   :  { %v2154_v0 = vpop.permute.xlu1 %2153 }
 0xf52   :  { %v2471_v31 = vmul.f32 1.442695, %v2461_v28 }
 0xf53   :  { %v2156_v2 = vpop.permute.xlu0 %2155 }
 0xf54   :  { %4493 = vpow2.f32 %v2471_v31  ;;  %4180 = vmatprep.subr.mxu0 %v2156_v2  ;;  %v3633_v31 = vld [vmem:[%s5787_s6 + $0x20] sm:$0xff] }
 0xf55   :  { %4181 = vmatpush3.msra.mxu0 %v2156_v2  ;;  %4495 = vpow2.f32 %v2473_v60  ;;  %v2516_v38 = vpop.permute.xlu1 %2515  ;;  %v3634_v60 = vld [vmem:[%s5787_s6 + $0x28] sm:$0xff]  ;;  %v3636_v2 = vld [vmem:[%s5787_s6 + $0x38] sm:$0xff] }
 0xf56   :  { %4182 = vmatprep.subr.mxu0 %v2154_v0  ;;  %4248 = vmatprep.subr.mxu1 %v3634_v60 }
 0xf57   :  { %v5465_v50 = vpop.eup %4485  ;;  %4183 = vmatpush3.msra.mxu0 %v2154_v0  ;;  %4249 = vmatpush3.msra.mxu1 %v3634_v60 }
 0xf58   :  { %4214 = vmatprep.subr.mxu0 %v2516_v38  ;;  %v2478_v49 = vsel %vm506_vm12, %v5465_v50, 0.0  ;;  %4250 = vmatprep.subr.mxu1 %v3633_v31 }
 0xf59   :  { %v5469_v33 = vpop.eup %4487  ;;  %2479 = vadd.xlane.f32.xlu1 %v2478_v49  ;;  %v2514_v29 = vpop.permute.xlu1 %2513  ;;  %4251 = vmatpush3.msra.mxu1 %v3633_v31 }
 0xf5a   :  { %v2475_v3 = vsel %vm506_vm12, %v5469_v33, 0.0 }
 0xf5b   :  { %v5473_v48 = vpop.eup %4489  ;;  %2476 = vadd.xlane.f32.xlu0 %v2475_v3 }
 0xf5c   :  { %v2484_v59 = vsel %vm506_vm12, %v5473_v48, 0.0 }
 0xf5d   :  { %v5477_v4 = vpop.eup %4491  ;;  %v2512_v1 = vpop.permute.xlu1 %2511 }
 0xf5e   :  { %v2481_v42 = vsel %vm506_vm12, %v5477_v4, 0.0 }
 0xf5f   :  { %2485 = vadd.xlane.f32.xlu0 %v2484_v59 }
 0xf61   :  { %v5479_v8 = vpop.eup %4493  ;;  %v2510_v17 = vpop.permute.xlu1 %2509 }
 0xf62   :  { %v2487_v9 = vsel %vm506_vm12, %v5479_v8, 0.0  ;;  %v5485_v63 = vpop.eup %4495 }
 0xf63   :  { %2488 = vadd.xlane.f32.xlu1 %v2487_v9  ;;  %2482 = vadd.xlane.f32.xlu0 %v2481_v42  ;;  %v2490_v37 = vsel %vm506_vm12, %v5485_v63, 0.0 }
 0xf67   :  { %2491 = vadd.xlane.f32.xlu0 %v2490_v37 }
 0xf74   :  { %2505 = vrot.lane.b32.xlu1 %v5263_v39, %s4581_s29 }
 0xf7d   :  { %2507 = vrot.lane.b32.xlu0 %v5273_v47, %s4581_s29 }
 0xfca   :  { %v2128_v52 = vpop.xlane.xlu1 %2127 }
 0xfcb   :  { %4497 = vrcp.f32 %v2128_v52 }
 0xfcc   :  { %v2125_v22 = vpop.xlane.xlu0 %2124 }
 0xfcd   :  { %4499 = vrcp.f32 %v2125_v22 }
 0xfd0   :  { %v2134_v53 = vpop.xlane.xlu1 %2133 }
 0xfd1   :  { %4501 = vrcp.f32 %v2134_v53  ;;  %v3686_v53 = vld [vmem:[%s5788_s7 + $0x1] ss:$0 sm:$0xff] }
 0xfd4   :  { %v2131_v10 = vpop.xlane.xlu0 %2130  ;;  %v2140_v57 = vpop.xlane.xlu1 %2139 }
 0xfd5   :  { %4503 = vrcp.f32 %v2131_v10 }
 0xfd6   :  { %4505 = vrcp.f32 %v2140_v57 }
 0xfd8   :  { %v2137_v20 = vpop.xlane.xlu0 %2136  ;;  %v4498_v25 = vpop.eup %4497 }
 0xfd9   :  { %4507 = vrcp.f32 %v2137_v20  ;;  %v2148_v47 = vmul.f32 %v4498_v25, %v5435_v26 }
 0xfda   :  { %v4500_v39 = vpop.eup %4499 }
 0xfdb   :  { %v2147_v24 = vmul.f32 %v4500_v39, %v5439_v30 }
 0xfdd   :  { %4184 = vmatprep.mubr.msk.f32.mxu0 %vm506_vm12, %v2147_v24 }
 0xfde   :  { %4185 = vmatmul.mubr.msk.f32.vlgmr.msra.gmra.mxu0 %vm506_vm12, %v2148_v47  ;;  %v4502_v32 = vpop.eup %4501 }
 0xfdf   :  { %4215 = vmatpush3.msra.mxu0 %v2516_v38  ;;  %v2150_v30 = vmul.f32 %v4502_v32, %v5443_v6 }
 0xfe0   :  { %4216 = vmatprep.subr.mxu0 %v2514_v29 }
 0xfe1   :  { %4217 = vmatpush3.msra.mxu0 %v2514_v29 }
 0xfe2   :  { %v4504_v18 = vpop.eup %4503  ;;  %4218 = vmatprep.subr.mxu0 %v2512_v1  ;;  %v2480_v34 = vpop.xlane.xlu1 %2479 }
 0xfe3   :  { %4219 = vmatpush3.msra.mxu0 %v2512_v1  ;;  %v2149_v7 = vmul.f32 %v4504_v18, %v5451_v54  ;;  %v4506_v41 = vpop.eup %4505 }
 0xfe4   :  { %4220 = vmatprep.subr.mxu0 %v2510_v17  ;;  %v2477_v40 = vpop.xlane.xlu0 %2476  ;;  %v2152_v56 = vmul.f32 %v4506_v41, %v5448_v23 }
 0xfe5   :  { %4509 = vrcp.f32 %v2477_v40  ;;  %4221 = vmatpush3.msra.mxu0 %v2510_v17  ;;  %4187 = vmatprep.mubr.msk.f32.mxu0 %vm506_vm12, %v2149_v7 }
 0xfe6   :  { %v4508_v26 = vpop.eup %4507  ;;  %4188 = vmatmul.mubr.msk.f32.gmra.mxu0 %vm506_vm12, %v2150_v30  ;;  %4511 = vrcp.f32 %v2480_v34 }
 0xfe7   :  { %v2151_v43 = vmul.f32 %v4508_v26, %v5459_v45 }
 0xfe8   :  { %v2486_v55 = vpop.xlane.xlu0 %2485 }
 0xfe9   :  { %4190 = vmatprep.mubr.msk.f32.mxu0 %vm506_vm12, %v2151_v43  ;;  %4513 = vrcp.f32 %v2486_v55 }
 0xfea   :  { %4191 = vmatmul.mubr.msk.f32.gmra.mxu0 %vm506_vm12, %v2152_v56 }
 0xfec   :  { %v2483_v6 = vpop.xlane.xlu0 %2482  ;;  %v2489_v54 = vpop.xlane.xlu1 %2488 }
 0xfed   :  { %4515 = vrcp.f32 %v2483_v6 }
 0xfee   :  { %4517 = vrcp.f32 %v2489_v54 }
 0xff0   :  { %v2492_v58 = vpop.xlane.xlu0 %2491  ;;  %v2506_v23 = vpop.permute.xlu1 %2505 }
 0xff1   :  { %4519 = vrcp.f32 %v2492_v58 }
 0xff2   :  { %v4510_v13 = vpop.eup %4509 }
 0xff3   :  { %v2499_v12 = vmul.f32 %v4510_v13, %v5469_v33  ;;  %v4512_v16 = vpop.eup %4511 }
 0xff4   :  { %v2508_v27 = vpop.permute.xlu0 %2507  ;;  %v2500_v19 = vmul.f32 %v4512_v16, %v5465_v50  ;;  %v3635_v50 = vld [vmem:[%s5787_s6 + $0x30] sm:$0xff] }
 0xff5   :  { %4222 = vmatprep.subr.mxu0 %v2508_v27  ;;  %4226 = vmatprep.mubr.msk.f32.mxu0 %vm506_vm12, %v2499_v12 }
 0xff6   :  { %4223 = vmatpush3.msra.mxu0 %v2508_v27  ;;  %v4514_v45 = vpop.eup %4513 }
 0xff7   :  { %4224 = vmatprep.subr.mxu0 %v2506_v23  ;;  %v2502_v62 = vmul.f32 %v4514_v45, %v5473_v48 }
 0xff8   :  { %4225 = vmatpush3.msra.mxu0 %v2506_v23 }
 0xff9   :  { %4227 = vmatmul.mubr.msk.f32.vlgmr.msra.gmra.mxu0 %vm506_vm12, %v2500_v19  ;;  %4235 = vmatprep.subr.mxu0 %v3636_v2 }
 0xffa   :  { %v4516_v46 = vpop.eup %4515  ;;  %4236 = vmatpush3.msra.mxu0 %v3636_v2 }
 0xffb   :  { %v4518_v51 = vpop.eup %4517  ;;  %v2501_v35 = vmul.f32 %v4516_v46, %v5477_v4  ;;  %4237 = vmatprep.subr.mxu0 %v3635_v50 }
 0xffc   :  { %v2503_v21 = vmul.f32 %v4518_v51, %v5479_v8  ;;  %4238 = vmatpush3.msra.mxu0 %v3635_v50 }
 0xffd   :  { %4229 = vmatprep.mubr.msk.f32.mxu0 %vm506_vm12, %v2501_v35 }
 0xffe   :  { %v4520_v28 = vpop.eup %4519  ;;  %4230 = vmatmul.mubr.msk.f32.gmra.mxu0 %vm506_vm12, %v2502_v62 }
 0xfff   :  { %4232 = vmatprep.mubr.msk.f32.mxu0 %vm506_vm12, %v2503_v21  ;;  %v2504_v0 = vmul.f32 %v4520_v28, %v5485_v63 }
0x1002   :  { %4233 = vmatmul.mubr.msk.f32.gmra.mxu0 %vm506_vm12, %v2504_v0 }
0x109e   :  { %v4186_v38 = vpop.f32.mrf.mxu0 }
0x10a0   :  { %v2255_v49 = vpop.f32.mrf.mxu0 }
0x10a1   :  { %4252 = vmatprep.mubr.msk.f32.mxu1 %vm374_vm1, %v2255_v49 }
0x10a2   :  { %4253 = vmatmul.mubr.msk.f32.vlgmr.msra.gmra.mxu1 %vm374_vm1, %v4186_v38 }
0x10a6   :  { %v4189_v33 = vpop.f32.mrf.mxu0 }
0x10a8   :  { %v2265_v3 = vpop.f32.mrf.mxu0 }
0x10a9   :  { %4255 = vmatprep.mubr.msk.f32.mxu1 %vm374_vm1, %v2265_v3 }
0x10aa   :  { %v4192_v48 = vpop.f32.mrf.mxu0  ;;  %4256 = vmatmul.mubr.msk.f32.gmra.mxu1 %vm374_vm1, %v4189_v33 }
0x10ac   :  { %v2275_v59 = vpop.f32.mrf.mxu0 }
0x10ad   :  { %4258 = vmatprep.mubr.msk.f32.mxu1 %vm374_vm1, %v2275_v59 }
0x10ae   :  { %4259 = vmatmul.mubr.msk.f32.gmra.mxu1 %vm374_vm1, %v4192_v48 }
0x10b9   :  { %v4228_v4 = vpop.f32.mrf.mxu0 }
0x10bb   :  { %v2607_v8 = vpop.f32.mrf.mxu0 }
0x10bc   :  { %4239 = vmatprep.mubr.msk.f32.mxu0 %vm374_vm1, %v2607_v8 }
0x10bd   :  { %4240 = vmatmul.mubr.msk.f32.vlgmr.msra.gmra.mxu0 %vm374_vm1, %v4228_v4 }
0x10be   :  { %v4231_v9 = vpop.f32.mrf.mxu0 }
0x10c0   :  { %v2617_v42 = vpop.f32.mrf.mxu0 }
0x10c1   :  { %4242 = vmatprep.mubr.msk.f32.mxu0 %vm374_vm1, %v2617_v42 }
0x10c2   :  { %v4234_v63 = vpop.f32.mrf.mxu0  ;;  %4243 = vmatmul.mubr.msk.f32.gmra.mxu0 %vm374_vm1, %v4231_v9 }
0x10c4   :  { %v2627_v37 = vpop.f32.mrf.mxu0 }
0x10c5   :  { %4245 = vmatprep.mubr.msk.f32.mxu0 %vm374_vm1, %v2627_v37 }
0x10c6   :  { %4246 = vmatmul.mubr.msk.f32.gmra.mxu0 %vm374_vm1, %v4234_v63  ;;  %vm3543_vm1 = vcmask 256000  }
0x1162   :  { %v4254_v29 = vpop.f32.mrf.mxu1 }
0x1164   :  { %v2833_v1 = vpop.f32.mrf.mxu1 }
0x116a   :  { %v4257_v17 = vpop.f32.mrf.mxu1 }
0x116c   :  { %v2843_v57 = vpop.f32.mrf.mxu1 }
0x116e   :  { %v4260_v18 = vpop.f32.mrf.mxu1 }
0x1170   :  { %v2853_v56 = vpop.f32.mrf.mxu1 }
0x117d   :  { %v4241_v52 = vpop.f32.mrf.mxu0 }
0x117e   :  { %v2839_v22 = vadd.f32 %v4254_v29, %v4241_v52 }
0x117f   :  { %v2720_v10 = vpop.f32.mrf.mxu0 }
0x1180   :  { %v2863_v20 = vadd.f32 %v2839_v22, %v5165_v44  ;;  %v2834_v25 = vadd.f32 %v2833_v1, %v2720_v10  ;;  %v3694_v22 = vld [vmem:[%s5789_s10 + $0x38] sm:$0xff]  ;;  %v3692_v10 = vld [vmem:[%s5789_s10 + $0x28] sm:$0xff] }
0x1181   :  { %4261 = vmatprep.subr.mxu0 %v3694_v22 }
0x1182   :  { %v5545_v39 = vadd.f32 %v3686_v53, %v2863_v20  ;;  %v2862_v24 = vadd.f32 %v2834_v25, %v5168_v36  ;;  %v4244_v47 = vpop.f32.mrf.mxu0  ;;  %4262 = vmatpush3.msra.mxu0 %v3694_v22  ;;  %v3709_v22 = vld [vmem:[%s5792_s12 + $0xb0] sm:$0xff] }
0x1183   :  { %v2849_v32 = vadd.f32 %v4257_v17, %v4244_v47 }
0x1184   :  { %v5548_v7 = vadd.f32 %v3686_v53, %v2862_v24  ;;  %v2730_v34 = vpop.f32.mrf.mxu0  ;;  %v2889_v40 = vsel %vm124_vm0, %v5545_v39, 0.0 }
0x1185   :  { %v2865_v30 = vadd.f32 %v2849_v32, %v5175_v5  ;;  %v2844_v41 = vadd.f32 %v2843_v57, %v2730_v34  ;;  %2890 = vadd.xlane.f32.xlu1 %v2889_v40  ;;  %v3691_v57 = vld [vmem:[%s5789_s10 + $0x20] sm:$0xff] }
0x1186   :  { %v4247_v26 = vpop.f32.mrf.mxu0  ;;  %v2886_v44 = vsel %vm124_vm0, %v5548_v7, 0.0 }
0x1187   :  { %v5555_v43 = vadd.f32 %v3686_v53, %v2865_v30  ;;  %v2864_v36 = vadd.f32 %v2844_v41, %v5178_v11  ;;  %v2859_v55 = vadd.f32 %v4260_v18, %v4247_v26  ;;  %2887 = vadd.xlane.f32.xlu0 %v2886_v44 }
0x1188   :  { %v2740_v6 = vpop.f32.mrf.mxu0 }
0x1189   :  { %v2867_v54 = vadd.f32 %v2859_v55, %v5183_v14  ;;  %v2854_v58 = vadd.f32 %v2853_v56, %v2740_v6  ;;  %v2895_v5 = vsel %vm124_vm0, %v5555_v43, 0.0  ;;  %v5561_v13 = vadd.f32 %v3686_v53, %v2864_v36 }
0x118b   :  { %v5563_v12 = vadd.f32 %v3686_v53, %v2867_v54  ;;  %v2866_v16 = vadd.f32 %v2854_v58, %v5188_v61  ;;  %2896 = vadd.xlane.f32.xlu0 %v2895_v5  ;;  %v2892_v14 = vsel %vm124_vm0, %v5561_v13, 0.0 }
0x118d   :  { %v2901_v11 = vsel %vm124_vm0, %v5563_v12, 0.0  ;;  %v5568_v27 = vadd.f32 %v3686_v53, %v2866_v16  ;;  %v3693_v53 = vld [vmem:[%s5789_s10 + $0x30] sm:$0xff]  ;;  %v3689_v16 = vld [vmem:[%s5790_s8 + $0x1] ss:$0 sm:$0xff] }
0x118e   :  { %2902 = vadd.xlane.f32.xlu1 %v2901_v11  ;;  %4263 = vmatprep.subr.mxu0 %v3693_v53 }
0x118f   :  { %2893 = vadd.xlane.f32.xlu0 %v2892_v14  ;;  %v2898_v23 = vsel %vm124_vm0, %v5568_v27, 0.0  ;;  %4264 = vmatpush3.msra.mxu0 %v3693_v53  ;;  %v3708_v53 = vld [vmem:[%s5792_s12 + $0xa8] sm:$0xff] }
0x1190   :  { %4265 = vmatprep.subr.mxu0 %v3692_v10 }
0x1191   :  { %4266 = vmatpush3.msra.mxu0 %v3692_v10  ;;  %v3707_v10 = vld [vmem:[%s5792_s12 + $0xa0] sm:$0xff] }
0x1192   :  { %4267 = vmatprep.subr.mxu0 %v3691_v57 }
0x1193   :  { %2899 = vadd.xlane.f32.xlu0 %v2898_v23  ;;  %4268 = vmatpush3.msra.mxu0 %v3691_v57  ;;  %v3706_v57 = vld [vmem:[%s5792_s12 + $0x98] sm:$0xff] }
0x1194   :  { %4319 = vmatprep.subr.mxu0 %v4579_v15 }
0x120e   :  { %v2891_v19 = vpop.xlane.xlu1 %2890 }
0x120f   :  { %v2905_v45 = vmul.f32 0.03125, %v2891_v19 }
0x1210   :  { %v2888_v46 = vpop.xlane.xlu0 %2887 }
0x1211   :  { %v5575_v61 = vsub.f32 %v5545_v39, %v2905_v45  ;;  %v2904_v51 = vmul.f32 0.03125, %v2888_v46  ;;  %v3690_v45 = vld [vmem:[%s5791_s9 + $0x1] ss:$0 sm:$0xff] }
0x1213   :  { %v5578_v35 = vsub.f32 %v5548_v7, %v2904_v51  ;;  %v2917_v62 = vmul.f32 %v5575_v61, %v5575_v61 }
0x1214   :  { %v2897_v21 = vpop.xlane.xlu0 %2896 }
0x1215   :  { %v2907_v28 = vmul.f32 0.03125, %v2897_v21  ;;  %v2925_v0 = vsel %vm124_vm0, %v2917_v62, 0.0  ;;  %v2916_v60 = vmul.f32 %v5578_v35, %v5578_v35 }
0x1216   :  { %2926 = vadd.xlane.f32.xlu1 %v2925_v0 }
0x1217   :  { %v5586_v31 = vsub.f32 %v5555_v43, %v2907_v28  ;;  %v2903_v2 = vpop.xlane.xlu1 %2902  ;;  %v2922_v50 = vsel %vm124_vm0, %v2916_v60, 0.0 }
0x1218   :  { %v2909_v38 = vmul.f32 0.03125, %v2903_v2  ;;  %v2894_v49 = vpop.xlane.xlu0 %2893  ;;  %2923 = vadd.xlane.f32.xlu0 %v2922_v50 }
0x1219   :  { %v2906_v33 = vmul.f32 0.03125, %v2894_v49  ;;  %v2919_v3 = vmul.f32 %v5586_v31, %v5586_v31 }
0x121a   :  { %v5592_v48 = vsub.f32 %v5563_v12, %v2909_v38 }
0x121b   :  { %v5595_v59 = vsub.f32 %v5561_v13, %v2906_v33  ;;  %v2931_v4 = vsel %vm124_vm0, %v2919_v3, 0.0 }
0x121c   :  { %2932 = vadd.xlane.f32.xlu1 %v2931_v4  ;;  %v2900_v8 = vpop.xlane.xlu0 %2899  ;;  %v2921_v9 = vmul.f32 %v5592_v48, %v5592_v48 }
0x121d   :  { %v2908_v42 = vmul.f32 0.03125, %v2900_v8  ;;  %v2918_v63 = vmul.f32 %v5595_v59, %v5595_v59 }
0x121e   :  { %v2937_v37 = vsel %vm124_vm0, %v2921_v9, 0.0 }
0x121f   :  { %v5604_v29 = vsub.f32 %v5568_v27, %v2908_v42  ;;  %v2928_v1 = vsel %vm124_vm0, %v2918_v63, 0.0  ;;  %v3716_v42 = vld [vmem:[%s5792_s12 + $0xe8] sm:$0xff]  ;;  %v3715_v63 = vld [vmem:[%s5792_s12 + $0xe0] sm:$0xff] }
0x1220   :  { %2938 = vadd.xlane.f32.xlu1 %v2937_v37  ;;  %2929 = vadd.xlane.f32.xlu0 %v2928_v1  ;;  %v3714_v37 = vld [vmem:[%s5792_s12 + $0xd8] sm:$0xff]  ;;  %v3712_v1 = vld [vmem:[%s5792_s12 + $0xc8] sm:$0xff] }
0x1221   :  { %v2920_v17 = vmul.f32 %v5604_v29, %v5604_v29 }
0x1223   :  { %v2934_v52 = vsel %vm124_vm0, %v2920_v17, 0.0  ;;  %v3711_v17 = vld [vmem:[%s5792_s12 + $0xc0] sm:$0xff] }
0x1224   :  { %2935 = vadd.xlane.f32.xlu0 %v2934_v52  ;;  %v3710_v52 = vld [vmem:[%s5792_s12 + $0xb8] sm:$0xff] }
0x129f   :  { %v2927_v20 = vpop.xlane.xlu1 %2926 }
0x12a0   :  { %v2941_v25 = vmul.f32 0.03125, %v2927_v20  ;;  %v3705_v20 = vld [vmem:[%s5792_s12 + $0x90] sm:$0xff] }
0x12a1   :  { %v2924_v24 = vpop.xlane.xlu0 %2923 }
0x12a2   :  { %v2947_v47 = vadd.f32 1e-05, %v2941_v25  ;;  %v2940_v32 = vmul.f32 0.03125, %v2924_v24  ;;  %v3704_v25 = vld [vmem:[%s5792_s12 + $0x88] sm:$0xff]  ;;  %v3703_v24 = vld [vmem:[%s5792_s12 + $0x80] sm:$0xff] }
0x12a4   :  { %4521 = vrsqrt.f32 %v2947_v47  ;;  %v2946_v18 = vadd.f32 1e-05, %v2940_v32  ;;  %v3696_v47 = vld [vmem:[%s5793_s11 + $0x1] ss:$0 sm:$0xff] }
0x12a5   :  { %v2933_v34 = vpop.xlane.xlu1 %2932 }
0x12a6   :  { %4523 = vrsqrt.f32 %v2946_v18  ;;  %v2943_v40 = vmul.f32 0.03125, %v2933_v34 }
0x12a8   :  { %v2949_v30 = vadd.f32 1e-05, %v2943_v40 }
0x12a9   :  { %v2939_v41 = vpop.xlane.xlu1 %2938  ;;  %v2930_v26 = vpop.xlane.xlu0 %2929 }
0x12aa   :  { %4525 = vrsqrt.f32 %v2949_v30  ;;  %v2945_v44 = vmul.f32 0.03125, %v2939_v41  ;;  %v2942_v36 = vmul.f32 0.03125, %v2930_v26 }
0x12ac   :  { %v2951_v55 = vadd.f32 1e-05, %v2945_v44  ;;  %v2948_v56 = vadd.f32 1e-05, %v2942_v36 }
0x12ad   :  { %v2936_v6 = vpop.xlane.xlu0 %2935 }
0x12ae   :  { %4527 = vrsqrt.f32 %v2951_v55  ;;  %v2944_v54 = vmul.f32 0.03125, %v2936_v6 }
0x12af   :  { %4529 = vrsqrt.f32 %v2948_v56 }
0x12b0   :  { %v2950_v58 = vadd.f32 1e-05, %v2944_v54 }
0x12b1   :  { %v4522_v5 = vpop.eup %4521 }
0x12b2   :  { %v2959_v11 = vmul.f32 %v4522_v5, %v5575_v61  ;;  %4531 = vrsqrt.f32 %v2950_v58 }
0x12b3   :  { %v4524_v14 = vpop.eup %4523 }
0x12b4   :  { %v2958_v23 = vmul.f32 %v4524_v14, %v5578_v35  ;;  %v2971_v19 = vmul.f32 %v3689_v16, %v2959_v11 }
0x12b6   :  { %v2970_v46 = vmul.f32 %v3689_v16, %v2958_v23  ;;  %v2983_v21 = vadd.f32 %v3690_v45, %v2971_v19 }
0x12b7   :  { %v4526_v51 = vpop.eup %4525 }
0x12b8   :  { %v2982_v62 = vadd.f32 %v3690_v45, %v2970_v46  ;;  %v2961_v28 = vmul.f32 %v4526_v51, %v5586_v31 }
0x12ba   :  { %4269 = vmatprep.mubr.msk.f32.mxu0 %vm124_vm0, %v2982_v62  ;;  %v2973_v35 = vmul.f32 %v3689_v16, %v2961_v28 }
0x12bb   :  { %v4528_v0 = vpop.eup %4527  ;;  %4270 = vmatmul.mubr.msk.f32.vlgmr.msra.gmra.mxu0 %vm124_vm0, %v2983_v21 }
0x12bc   :  { %v4530_v61 = vpop.eup %4529  ;;  %v2963_v2 = vmul.f32 %v4528_v0, %v5592_v48  ;;  %v2985_v3 = vadd.f32 %v3690_v45, %v2973_v35  ;;  %v3718_v48 = vld [vmem:[%s5792_s12 + $0xf8] sm:$0xff] }
0x12bd   :  { %v2960_v60 = vmul.f32 %v4530_v61, %v5595_v59  ;;  %4278 = vmatprep.subr.mxu1 %v3718_v48  ;;  %v3717_v59 = vld [vmem:[%s5792_s12 + $0xf0] sm:$0xff] }
0x12be   :  { %v2975_v8 = vmul.f32 %v3689_v16, %v2963_v2  ;;  %4279 = vmatpush3.msra.mxu1 %v3718_v48 }
0x12bf   :  { %v4532_v50 = vpop.eup %4531  ;;  %v2972_v38 = vmul.f32 %v3689_v16, %v2960_v60  ;;  %4280 = vmatprep.subr.mxu1 %v3717_v59 }
0x12c0   :  { %v2962_v49 = vmul.f32 %v4532_v50, %v5604_v29  ;;  %v2987_v9 = vadd.f32 %v3690_v45, %v2975_v8  ;;  %4281 = vmatpush3.msra.mxu1 %v3717_v59  ;;  %v3713_v29 = vld [vmem:[%s5792_s12 + $0xd0] sm:$0xff] }
0x12c1   :  { %v2984_v33 = vadd.f32 %v3690_v45, %v2972_v38  ;;  %4282 = vmatprep.subr.mxu1 %v3716_v42 }
0x12c2   :  { %v2974_v4 = vmul.f32 %v3689_v16, %v2962_v49  ;;  %4283 = vmatpush3.msra.mxu1 %v3716_v42 }
0x12c3   :  { %4272 = vmatprep.mubr.msk.f32.mxu0 %vm124_vm0, %v2984_v33  ;;  %4284 = vmatprep.subr.mxu1 %v3715_v63 }
0x12c4   :  { %4273 = vmatmul.mubr.msk.f32.gmra.mxu0 %vm124_vm0, %v2985_v3  ;;  %v2986_v31 = vadd.f32 %v3690_v45, %v2974_v4  ;;  %4285 = vmatpush3.msra.mxu1 %v3715_v63 }
0x12c5   :  { %4286 = vmatprep.subr.mxu1 %v3714_v37 }
0x12c6   :  { %4275 = vmatprep.mubr.msk.f32.mxu0 %vm124_vm0, %v2986_v31  ;;  %4287 = vmatpush3.msra.mxu1 %v3714_v37 }
0x12c7   :  { %4288 = vmatprep.subr.mxu1 %v3713_v29 }
0x12c8   :  { %4276 = vmatmul.mubr.msk.f32.gmra.mxu0 %vm124_vm0, %v2987_v9  ;;  %4289 = vmatpush3.msra.mxu1 %v3713_v29 }
0x12c9   :  { %4290 = vmatprep.subr.mxu1 %v3712_v1  ;;  %4331 = vmatprep.mubr.msk.f32.mxu0 %vm4582_vm15, %v4579_v15 }
0x12ca   :  { %4291 = vmatpush3.msra.mxu1 %v3712_v1 }
0x12cb   :  { %4292 = vmatprep.subr.mxu1 %v3711_v17 }
0x12cc   :  { %4293 = vmatpush3.msra.mxu1 %v3711_v17 }
0x12cd   :  { %4294 = vmatprep.subr.mxu1 %v3710_v52 }
0x12ce   :  { %4295 = vmatpush3.msra.mxu1 %v3710_v52 }
0x12cf   :  { %4296 = vmatprep.subr.mxu1 %v3709_v22 }
0x12d0   :  { %4297 = vmatpush3.msra.mxu1 %v3709_v22 }
0x12d1   :  { %4298 = vmatprep.subr.mxu1 %v3708_v53 }
0x12d2   :  { %4299 = vmatpush3.msra.mxu1 %v3708_v53 }
0x12d3   :  { %4300 = vmatprep.subr.mxu1 %v3707_v10 }
0x12d4   :  { %4301 = vmatpush3.msra.mxu1 %v3707_v10 }
0x12d5   :  { %4302 = vmatprep.subr.mxu1 %v3706_v57 }
0x12d6   :  { %4303 = vmatpush3.msra.mxu1 %v3706_v57 }
0x12d7   :  { %4304 = vmatprep.subr.mxu1 %v3705_v20 }
0x12d8   :  { %4305 = vmatpush3.msra.mxu1 %v3705_v20 }
0x12d9   :  { %4306 = vmatprep.subr.mxu1 %v3704_v25 }
0x12da   :  { %4307 = vmatpush3.msra.mxu1 %v3704_v25 }
0x12db   :  { %4308 = vmatprep.subr.mxu1 %v3703_v24 }
0x12dc   :  { %4309 = vmatpush3.msra.mxu1 %v3703_v24  ;;  %v3720_v24 = vld [vmem:[%s5794_s13 + $0x1] ss:$0 sm:$0xff] }
0x137b   :  { %v4271_v32 = vpop.f32.mrf.mxu0 }
0x137c   :  { %v3091_v18 = vadd.f32 %v4271_v32, %v3696_v47 }
0x137d   :  { %v3085_v34 = vpop.f32.mrf.mxu0 }
0x137e   :  { %v3115_v40 = vmul.f32 -1.702, %v3091_v18  ;;  %v3086_v30 = vadd.f32 %v3696_v47, %v3085_v34 }
0x1380   :  { %v3122_v41 = vmul.f32 1.442695, %v3115_v40  ;;  %v3114_v26 = vmul.f32 -1.702, %v3086_v30 }
0x1382   :  { %4533 = vpow2.f32 %v3122_v41  ;;  %v3120_v44 = vmul.f32 1.442695, %v3114_v26 }
0x1384   :  { %4535 = vpow2.f32 %v3120_v44  ;;  %v4274_v36 = vpop.f32.mrf.mxu0 }
0x1385   :  { %v3101_v55 = vadd.f32 %v4274_v36, %v3696_v47 }
0x1386   :  { %v3095_v56 = vpop.f32.mrf.mxu0 }
0x1387   :  { %v3117_v6 = vmul.f32 -1.702, %v3101_v55  ;;  %v3096_v54 = vadd.f32 %v3696_v47, %v3095_v56 }
0x1388   :  { %v4277_v58 = vpop.f32.mrf.mxu0 }
0x1389   :  { %v3126_v5 = vmul.f32 1.442695, %v3117_v6  ;;  %v3116_v16 = vmul.f32 -1.702, %v3096_v54  ;;  %v3111_v11 = vadd.f32 %v4277_v58, %v3696_v47 }
0x138a   :  { %v3105_v14 = vpop.f32.mrf.mxu0 }
0x138b   :  { %4537 = vpow2.f32 %v3126_v5  ;;  %v3124_v23 = vmul.f32 1.442695, %v3116_v16  ;;  %v3119_v19 = vmul.f32 -1.702, %v3111_v11  ;;  %v3106_v45 = vadd.f32 %v3696_v47, %v3105_v14 }
0x138d   :  { %4539 = vpow2.f32 %v3124_v23  ;;  %v3130_v46 = vmul.f32 1.442695, %v3119_v19  ;;  %v3118_v51 = vmul.f32 -1.702, %v3106_v45 }
0x138f   :  { %v4534_v62 = vpop.eup %4533  ;;  %4541 = vpow2.f32 %v3130_v46  ;;  %v3128_v21 = vmul.f32 1.442695, %v3118_v51 }
0x1390   :  { %v3133_v28 = vadd.f32 1.0, %v4534_v62 }
0x1391   :  { %v4536_v0 = vpop.eup %4535  ;;  %4543 = vpow2.f32 %v3128_v21 }
0x1392   :  { %v3132_v61 = vadd.f32 1.0, %v4536_v0  ;;  %4545 = vrcp.f32 %v3133_v28 }
0x1394   :  { %4547 = vrcp.f32 %v3132_v61 }
0x1398   :  { %v4538_v60 = vpop.eup %4537 }
0x1399   :  { %v3135_v35 = vadd.f32 1.0, %v4538_v60 }
0x139a   :  { %v4540_v2 = vpop.eup %4539 }
0x139b   :  { %v3134_v50 = vadd.f32 1.0, %v4540_v2  ;;  %4549 = vrcp.f32 %v3135_v35 }
0x139c   :  { %v4542_v38 = vpop.eup %4541 }
0x139d   :  { %4551 = vrcp.f32 %v3134_v50  ;;  %v3137_v49 = vadd.f32 1.0, %v4542_v38 }
0x139e   :  { %v4544_v33 = vpop.eup %4543 }
0x139f   :  { %v3136_v3 = vadd.f32 1.0, %v4544_v33  ;;  %v4546_v4 = vpop.eup %4545  ;;  %4553 = vrcp.f32 %v3137_v49 }
0x13a0   :  { %v3151_v9 = vmul.f32 %v4546_v4, %v3091_v18 }
0x13a1   :  { %v4548_v8 = vpop.eup %4547  ;;  %4555 = vrcp.f32 %v3136_v3 }
0x13a2   :  { %v3150_v31 = vmul.f32 %v4548_v8, %v3086_v30 }
0x13a4   :  { %4310 = vmatprep.mubr.f32.mxu1 %v3150_v31 }
0x13a5   :  { %4311 = vmatmul.mubr.f32.vlgmr.msra.gmra.mxu1 %v3151_v9 }
0x13a8   :  { %v4550_v48 = vpop.eup %4549 }
0x13a9   :  { %v3153_v63 = vmul.f32 %v4550_v48, %v3101_v55 }
0x13aa   :  { %v4552_v59 = vpop.eup %4551 }
0x13ab   :  { %v3152_v42 = vmul.f32 %v4552_v59, %v3096_v54 }
0x13ac   :  { %v4554_v37 = vpop.eup %4553 }
0x13ad   :  { %4313 = vmatprep.mubr.f32.mxu1 %v3152_v42  ;;  %v3155_v17 = vmul.f32 %v4554_v37, %v3111_v11 }
0x13ae   :  { %v4556_v29 = vpop.eup %4555  ;;  %4314 = vmatmul.mubr.f32.gmra.mxu1 %v3153_v63 }
0x13af   :  { %v3154_v1 = vmul.f32 %v4556_v29, %v3106_v45 }
0x13b1   :  { %4316 = vmatprep.mubr.f32.mxu1 %v3154_v1 }
0x13b2   :  { %4317 = vmatmul.mubr.f32.gmra.mxu1 %v3155_v17 }
0x1465   :  { %v4312_v52 = vpop.f32.mrf.mxu1 }
0x1466   :  { %v3269_v40 = vadd.f32 %v4312_v52, %v5545_v39 }
0x1467   :  { %v3239_v22 = vpop.f32.mrf.mxu1 }
0x1468   :  { %v3283_v36 = vadd.f32 %v3720_v24, %v3269_v40 }
0x146a   :  { %v3293_v39 = vsel %vm124_vm0, %v3283_v36, 0.0 }
0x146e   :  { %v4315_v53 = vpop.f32.mrf.mxu1 }
0x146f   :  { %v3271_v20 = vadd.f32 %v4315_v53, %v5555_v43  ;;  %v3268_v43 = vadd.f32 %v3239_v22, %v5548_v7 }
0x1470   :  { %v3249_v10 = vpop.f32.mrf.mxu1 }
0x1471   :  { %v3270_v32 = vadd.f32 %v3249_v10, %v5561_v13  ;;  %v3285_v30 = vadd.f32 %v3720_v24, %v3271_v20  ;;  %v3282_v13 = vadd.f32 %v3720_v24, %v3268_v43 }
0x1472   :  { %v4318_v57 = vpop.f32.mrf.mxu1 }
0x1473   :  { %v3273_v25 = vadd.f32 %v4318_v57, %v5563_v12  ;;  %v3284_v12 = vadd.f32 %v3720_v24, %v3270_v32  ;;  %v3299_v55 = vsel %vm124_vm0, %v3285_v30, 0.0  ;;  %v3290_v56 = vsel %vm124_vm0, %v3282_v13, 0.0 }
0x1474   :  { %v3259_v47 = vpop.f32.mrf.mxu1 }
0x1475   :  { %v3287_v18 = vadd.f32 %v3720_v24, %v3273_v25  ;;  %v3272_v34 = vadd.f32 %v3259_v47, %v5568_v27  ;;  %v3296_v27 = vsel %vm124_vm0, %v3284_v12, 0.0 }
0x1477   :  { %v3286_v41 = vadd.f32 %v3720_v24, %v3272_v34  ;;  %v3305_v26 = vsel %vm124_vm0, %v3287_v18, 0.0  ;;  %v3721_v34 = vld [vmem:[%s5795_s14] ss:$0 sm:$0xff] }
0x1478   :  { %3306 = vadd.xlane.f32.xlu0 %v3305_v26 }
0x1479   :  { %v3302_v44 = vsel %vm124_vm0, %v3286_v41, 0.0 }
0x147a   :  { %3303 = vadd.xlane.f32.xlu1 %v3302_v44 }
0x147c   :  { %3300 = vadd.xlane.f32.xlu0 %v3299_v55 }
0x147e   :  { %3297 = vadd.xlane.f32.xlu1 %v3296_v27 }
0x1480   :  { %3294 = vadd.xlane.f32.xlu0 %v3293_v39 }
0x1482   :  { %3291 = vadd.xlane.f32.xlu1 %v3290_v56 }
0x1501   :  { %v3307_v6 = vpop.xlane.xlu0 %3306 }
0x1502   :  { %v3313_v7 = vmul.f32 0.03125, %v3307_v6 }
0x1503   :  { %v3304_v54 = vpop.xlane.xlu1 %3303 }
0x1504   :  { %v5707_v58 = vsub.f32 %v3287_v18, %v3313_v7  ;;  %v3312_v5 = vmul.f32 0.03125, %v3304_v54 }
0x1505   :  { %v3301_v16 = vpop.xlane.xlu0 %3300 }
0x1506   :  { %v5709_v11 = vsub.f32 %v3286_v41, %v3312_v5  ;;  %v3311_v14 = vmul.f32 0.03125, %v3301_v16  ;;  %v3325_v23 = vmul.f32 %v5707_v58, %v5707_v58  ;;  %v3722_v41 = vld [vmem:[%s5796_s15] ss:$0 sm:$0xff] }
0x1507   :  { %v3298_v19 = vpop.xlane.xlu1 %3297 }
0x1508   :  { %v5713_v45 = vsub.f32 %v3285_v30, %v3311_v14  ;;  %v3310_v46 = vmul.f32 0.03125, %v3298_v19  ;;  %v3341_v51 = vsel %vm124_vm0, %v3325_v23, 0.0  ;;  %v3324_v62 = vmul.f32 %v5709_v11, %v5709_v11 }
0x1509   :  { %3342 = vadd.xlane.f32.xlu0 %v3341_v51  ;;  %v3295_v21 = vpop.xlane.xlu0 %3294  ;;  %v3469_v51 = vld [vmem:[%s5798_s16 + $0x18] sm:$0xff] }
0x150a   :  { %v5718_v28 = vsub.f32 %v3284_v12, %v3310_v46  ;;  %v3309_v0 = vmul.f32 0.03125, %v3295_v21  ;;  %v3338_v61 = vsel %vm124_vm0, %v3324_v62, 0.0  ;;  %v3323_v60 = vmul.f32 %v5713_v45, %v5713_v45  ;;  %v3392_v46 = vld [vmem:[%s5797_s1] sm:$0x7]  ;;  %v3468_v62 = vld [vmem:[%s5798_s16 + $0x10] sm:$0xff]  ;;  %v3467_v21 = vld [vmem:[%s5798_s16 + $0x8] sm:$0xff] }
0x150b   :  { %3339 = vadd.xlane.f32.xlu1 %v3338_v61  ;;  %v3292_v35 = vpop.xlane.xlu1 %3291 }
0x150c   :  { %v5723_v2 = vsub.f32 %v3283_v36, %v3309_v0  ;;  %v3308_v50 = vmul.f32 0.03125, %v3292_v35  ;;  %v3335_v38 = vsel %vm124_vm0, %v3323_v60, 0.0  ;;  %v3322_v49 = vmul.f32 %v5718_v28, %v5718_v28 }
0x150d   :  { %3336 = vadd.xlane.f32.xlu0 %v3335_v38 }
0x150e   :  { %v5728_v33 = vsub.f32 %v3282_v13, %v3308_v50  ;;  %v3332_v3 = vsel %vm124_vm0, %v3322_v49, 0.0  ;;  %v3321_v4 = vmul.f32 %v5723_v2, %v5723_v2 }
0x150f   :  { %3333 = vadd.xlane.f32.xlu1 %v3332_v3 }
0x1510   :  { %v3329_v8 = vsel %vm124_vm0, %v3321_v4, 0.0  ;;  %v3320_v31 = vmul.f32 %v5728_v33, %v5728_v33 }
0x1511   :  { %3330 = vadd.xlane.f32.xlu0 %v3329_v8 }
0x1512   :  { %v3326_v9 = vsel %vm124_vm0, %v3320_v31, 0.0 }
0x1513   :  { %3327 = vadd.xlane.f32.xlu1 %v3326_v9 }
0x1592   :  { %v3343_v48 = vpop.xlane.xlu0 %3342 }
0x1593   :  { %v3349_v59 = vmul.f32 0.03125, %v3343_v48 }
0x1594   :  { %v3340_v42 = vpop.xlane.xlu1 %3339 }
0x1595   :  { %v3355_v63 = vadd.f32 1e-05, %v3349_v59  ;;  %v3348_v37 = vmul.f32 0.03125, %v3340_v42 }
0x1596   :  { %v3337_v29 = vpop.xlane.xlu0 %3336 }
0x1597   :  { %4557 = vrsqrt.f32 %v3355_v63  ;;  %v3354_v1 = vadd.f32 1e-05, %v3348_v37  ;;  %v3347_v17 = vmul.f32 0.03125, %v3337_v29 }
0x1598   :  { %v3334_v52 = vpop.xlane.xlu1 %3333 }
0x1599   :  { %4559 = vrsqrt.f32 %v3354_v1  ;;  %v3353_v22 = vadd.f32 1e-05, %v3347_v17  ;;  %v3346_v53 = vmul.f32 0.03125, %v3334_v52 }
0x159a   :  { %v3331_v10 = vpop.xlane.xlu0 %3330 }
0x159b   :  { %4561 = vrsqrt.f32 %v3353_v22  ;;  %v3352_v57 = vadd.f32 1e-05, %v3346_v53  ;;  %v3345_v20 = vmul.f32 0.03125, %v3331_v10 }
0x159c   :  { %v3328_v25 = vpop.xlane.xlu1 %3327 }
0x159d   :  { %4563 = vrsqrt.f32 %v3352_v57  ;;  %v3351_v24 = vadd.f32 1e-05, %v3345_v20  ;;  %v3344_v47 = vmul.f32 0.03125, %v3328_v25 }
0x159f   :  { %4565 = vrsqrt.f32 %v3351_v24  ;;  %v3350_v32 = vadd.f32 1e-05, %v3344_v47 }
0x15a1   :  { %4567 = vrsqrt.f32 %v3350_v32 }
0x15a4   :  { %v4558_v18 = vpop.eup %4557 }
0x15a5   :  { %v3367_v40 = vmul.f32 %v4558_v18, %v5707_v58 }
0x15a6   :  { %v4560_v30 = vpop.eup %4559 }
0x15a7   :  { %v3379_v26 = vmul.f32 %v3721_v34, %v3367_v40  ;;  %v3366_v43 = vmul.f32 %v4560_v30, %v5709_v11 }
0x15a8   :  { %v4562_v12 = vpop.eup %4561 }
0x15a9   :  { %v3391_v44 = vadd.f32 %v3722_v41, %v3379_v26  ;;  %v3378_v36 = vmul.f32 %v3721_v34, %v3366_v43  ;;  %v3365_v55 = vmul.f32 %v4562_v12, %v5713_v45 }
0x15aa   :  { %v4564_v13 = vpop.eup %4563 }
0x15ab   :  { %4320 = vmatpush3.msra.mxu0 %v3391_v44  ;;  %v3390_v27 = vadd.f32 %v3722_v41, %v3378_v36  ;;  %v3377_v39 = vmul.f32 %v3721_v34, %v3365_v55  ;;  %v3364_v56 = vmul.f32 %v4564_v13, %v5718_v28  ;;  %v3466_v28 = vld [vmem:[%s5798_s16] sm:$0xff] }
0x15ac   :  { %v4566_v6 = vpop.eup %4565  ;;  %4321 = vmatprep.subr.mxu0 %v4579_v15 }
0x15ad   :  { %4322 = vmatpush3.msra.mxu0 %v3390_v27  ;;  %v3389_v7 = vadd.f32 %v3722_v41, %v3377_v39  ;;  %v3376_v54 = vmul.f32 %v3721_v34, %v3364_v56  ;;  %v3363_v58 = vmul.f32 %v4566_v6, %v5723_v2 }
0x15ae   :  { %v4568_v5 = vpop.eup %4567  ;;  %4323 = vmatprep.subr.mxu0 %v4579_v15 }
0x15af   :  { %4324 = vmatpush3.msra.mxu0 %v3389_v7  ;;  %v3388_v16 = vadd.f32 %v3722_v41, %v3376_v54  ;;  %v3375_v11 = vmul.f32 %v3721_v34, %v3363_v58  ;;  %v3362_v14 = vmul.f32 %v4568_v5, %v5728_v33 }
0x15b0   :  { %4325 = vmatprep.subr.mxu0 %v4579_v15 }
0x15b1   :  { %4326 = vmatpush3.msra.mxu0 %v3388_v16  ;;  %v3387_v23 = vadd.f32 %v3722_v41, %v3375_v11  ;;  %v3374_v19 = vmul.f32 %v3721_v34, %v3362_v14 }
0x15b2   :  { %4327 = vmatprep.subr.mxu0 %v4579_v15 }
0x15b3   :  { %4328 = vmatpush3.msra.mxu0 %v3387_v23  ;;  %v3386_v45 = vadd.f32 %v3722_v41, %v3374_v19 }
0x15b4   :  { %4329 = vmatprep.subr.mxu0 %v4579_v15 }
0x15b5   :  { %4330 = vmatpush3.msra.mxu0 %v3386_v45 }
0x15b6   :  { %4332 = vmatmul.mubr.msk.f32.vlgmr.msra.gmra.mxu0 %vm506_vm12, %v3392_v46  ;;  %4334 = vmatprep.subr.mxu0 %v4579_v15 }
0x15b7   :  { %4335 = vmatpush3.msra.mxu0 %v3469_v51  ;;  %4342 = vmatprep.mubr.msk.f32.mxu0 %vm4582_vm15, %v4579_v15 }
0x15b8   :  { %4336 = vmatprep.subr.mxu0 %v4579_v15 }
0x15b9   :  { %4337 = vmatpush3.msra.mxu0 %v3468_v62 }
0x15ba   :  { %4338 = vmatprep.subr.mxu0 %v4579_v15 }
0x15bb   :  { %4339 = vmatpush3.msra.mxu0 %v3467_v21 }
0x15bc   :  { %4340 = vmatprep.subr.mxu0 %v4579_v15 }
0x15bd   :  { %4341 = vmatpush3.msra.mxu0 %v3466_v28 }
0x1676   :  { %v3462_v0 = vpop.f32.mrf.mxu0 }
0x1677   :  { %4343 = vmatmul.mubr.msk.f32.vlgmr.msra.gmra.mxu0 %vm124_vm0, %v3462_v0 }
0x1678   :  { %v4333_v61 = vpop.f32.mrf.mxu0 }
0x1737   :  { %v3539_v60 = vpop.f32.mrf.mxu0 }
0x1738   :  { %3544 = vst.msk [vmem:[%s5799_s17] sm:$0x7] %vm3543_vm1, %v3539_v60 }
0x1739   :  { %v4344_v35 = vpop.f32.mrf.mxu0 }

</bundles_post_ra>
